<compile_context>
chip_gen: v7x
topology: tpu7x:2x2x1
jax: 0.10.0
libtpu: 0.0.40
codegen_flags: <defaults>
</compile_context>

<pallas_src>
import functools

import jax
import jax.numpy as jnp
from jax.experimental import pallas as pl
from jax.experimental.pallas import tpu as pltpu

# ----------------------------- static geometry -----------------------------
IMG = 32                   # input 3 x 32 x 32
KH = KW = 5
TAPS = KH * KW             # 25
CP = 8                     # channel slots per tap (sublane-aligned)
KPAD = TAPS * CP           # 200 : padded contraction dim of both conv matmuls

XW = 1152                  # flattened image row 32*32=1024 (+ slack for tap offsets)
A1W = 960                  # conv1 output width, dilated layout (lane = 32*y + x)
P1W = A1W - 33             # 927 : pooled1 width (valid at lane 64*py + 2*px)
A2W = 640                  # conv2 output width, dilated (lane = 64*oy + 2*ox)
P2W = A2W - 66             # 574 : pooled2 width (valid at lane 128*qy + 4*qx)
FEATW = 128                # compacted conv features per channel (25 valid + pad)

FC_IN = 512                # 400 padded to a lane multiple
FC_H1 = 128                # 120 padded
FC_H2 = 128                # 84 padded
FC_OUT = 128               # 10 padded


def _round_up(x, m):
    return (x + m - 1) // m * m


# ------------------------------ Pallas kernels ------------------------------

def convnet_kernel(x_ref, w1_ref, b1_ref, w2_ref, b2_ref, sel_ref, o_ref,
                   p1_ref, p2_ref, *, tb):
    """conv1 -> relu -> pool -> conv2 -> relu -> pool for `tb` images per step.

    x_ref  : (tb, 3, XW)   flattened (row-major) 32x32 images + zero slack
    w*_ref : (O, KPAD)     conv weights, tap-major, channels padded to 8 per tap
    sel_ref: (P2W, FEATW)  one-hot lane-compaction matrix for the pooled map
    o_ref  : (tb, 16, FEATW) pooled conv2 features; cols 0..24 valid (qy*5+qx)
    p1/p2  : VMEM patch scratch (im2col never touches HBM)
    """
    # Zero the patch scratch each step so the unused channel slots (rows
    # t*CP + c, c >= C_in) contribute exactly 0 (also keeps "parallel" safe).
    p1_ref[...] = jnp.zeros_like(p1_ref)
    p2_ref[...] = jnp.zeros_like(p2_ref)
    sel = sel_ref[...]

    for b in range(tb):
        xv = x_ref[b]                                    # (3, XW)

        # ---- conv1: in-kernel im2col via contiguous lane slices + MXU matmul ----
        for i in range(KH):
            for j in range(KW):
                t = i * KW + j
                s = i * IMG + j
                p1_ref[t * CP:t * CP + 3, :] = xv[:, s:s + A1W]
        a1 = jnp.dot(w1_ref[...], p1_ref[...], preferred_element_type=jnp.float32)
        a1 = jnp.maximum(a1 + b1_ref[...], 0.0)          # (6, A1W), valid l = 32*y + x

        # ---- 2x2/2 max pool (stay in the dilated row-major layout) ----
        m1 = jnp.maximum(a1[:, :A1W - 1], a1[:, 1:])                 # + dx
        m1 = jnp.maximum(m1[:, :P1W], m1[:, IMG:IMG + P1W])          # + dy
        # m1 valid at lane 64*py + 2*px   (py, px in [0, 14))

        # ---- conv2 on the dilated pooled map (tap offset = 64*i + 2*j) ----
        for i in range(KH):
            for j in range(KW):
                t = i * KW + j
                s = 2 * IMG * i + 2 * j
                p2_ref[t * CP:t * CP + 6, :] = m1[:, s:s + A2W]
        a2 = jnp.dot(w2_ref[...], p2_ref[...], preferred_element_type=jnp.float32)
        a2 = jnp.maximum(a2 + b2_ref[...], 0.0)          # (16, A2W), valid l = 64*oy + 2*ox

        # ---- second 2x2/2 max pool (shifts 2 / 64 in the dilated layout) ----
        m2 = jnp.maximum(a2[:, :A2W - 2], a2[:, 2:])
        m2 = jnp.maximum(m2[:, :P2W], m2[:, 2 * IMG:2 * IMG + P2W])
        # m2 valid at lane 128*qy + 4*qx  (qy, qx in [0, 5))

        # ---- compact the 25 valid lanes into dense columns with a one-hot matmul ----
        o_ref[b] = jnp.dot(m2, sel, preferred_element_type=jnp.float32
                           ).astype(o_ref.dtype)         # (16, FEATW)


def fc_kernel(x_ref, w1_ref, b1_ref, w2_ref, b2_ref, w3_ref, b3_ref, o_ref):
    """Fused fc1 -> relu -> fc2 -> relu -> fc3; all dims lane-padded (unmasked)."""
    h = jnp.dot(x_ref[...], w1_ref[...], preferred_element_type=jnp.float32)
    h = jnp.maximum(h + b1_ref[...], 0.0)
    h = jnp.dot(h, w2_ref[...], preferred_element_type=jnp.float32)
    h = jnp.maximum(h + b2_ref[...], 0.0)
    o = jnp.dot(h, w3_ref[...], preferred_element_type=jnp.float32) + b3_ref[...]
    o_ref[...] = o.astype(o_ref.dtype)


# ------------------------------ layer wrappers ------------------------------

def conv_stage(params, x):
    """x: (N, 3, 32, 32) -> (N, 400) pooled conv features in torch .view order."""
    N = x.shape[0]
    tb = max(1, min(4, N // 2))          # >=2 grid steps whenever N >= 2 (v7x megacore)
    n_pad = _round_up(N, tb)

    xf = x.reshape(N, 3, IMG * IMG)                      # free (contiguous) reshape
    xf = jnp.pad(xf, ((0, n_pad - N), (0, 0), (0, XW - IMG * IMG)))

    feat = pl.pallas_call(
        functools.partial(convnet_kernel, tb=tb),
        out_shape=jax.ShapeDtypeStruct((n_pad, 16, FEATW), jnp.float32),
        grid=(n_pad // tb,),
        in_specs=[
            pl.BlockSpec((tb, 3, XW), lambda i: (i, 0, 0)),     # image tile (pipelined)
            pl.BlockSpec((6, KPAD), lambda i: (0, 0)),          # resident conv1 weights
            pl.BlockSpec((6, 1), lambda i: (0, 0)),
            pl.BlockSpec((16, KPAD), lambda i: (0, 0)),         # resident conv2 weights
            pl.BlockSpec((16, 1), lambda i: (0, 0)),
            pl.BlockSpec((P2W, FEATW), lambda i: (0, 0)),       # resident selection matrix
        ],
        out_specs=pl.BlockSpec((tb, 16, FEATW), lambda i: (i, 0, 0)),
        scratch_shapes=[pltpu.VMEM((KPAD, A1W), jnp.float32),
                        pltpu.VMEM((KPAD, A2W), jnp.float32)],
        compiler_params=pltpu.CompilerParams(dimension_semantics=("parallel",)),
    )(xf, params["cw1"], params["cb1"], params["cw2"], params["cb2"], params["sel"])

    # tiny glue: (N, 16, 25) -> (N, 400), matches torch x.view(-1, 16*5*5)
    return feat[:N, :, :TAPS].reshape(N, 16 * TAPS)


def fc_stage(params, feats):
    """feats: (N, 400) -> logits (N, 10)."""
    N = feats.shape[0]
    tb = min(128, _round_up(N, 8))
    n_pad = _round_up(N, tb)
    xf = jnp.pad(feats, ((0, n_pad - N), (0, FC_IN - feats.shape[1])))

    out = pl.pallas_call(
        fc_kernel,
        out_shape=jax.ShapeDtypeStruct((n_pad, FC_OUT), jnp.float32),
        grid=(n_pad // tb,),
        in_specs=[
            pl.BlockSpec((tb, FC_IN), lambda i: (i, 0)),
            pl.BlockSpec((FC_IN, FC_H1), lambda i: (0, 0)),
            pl.BlockSpec((1, FC_H1), lambda i: (0, 0)),
            pl.BlockSpec((FC_H1, FC_H2), lambda i: (0, 0)),
            pl.BlockSpec((1, FC_H2), lambda i: (0, 0)),
            pl.BlockSpec((FC_H2, FC_OUT), lambda i: (0, 0)),
            pl.BlockSpec((1, FC_OUT), lambda i: (0, 0)),
        ],
        out_specs=pl.BlockSpec((tb, FC_OUT), lambda i: (i, 0)),
        compiler_params=pltpu.CompilerParams(dimension_semantics=("parallel",)),
    )(xf, params["fw1"], params["fb1"], params["fw2"], params["fb2"],
      params["fw3"], params["fb3"])
    return out[:N, :10]


def net_forward(params, x):
    feats = conv_stage(params, x)
    return fc_stage(params, feats)


# ------------------------------ parameter prep ------------------------------

def init_params(seed=0):
    key = jax.random.PRNGKey(seed)
    ks = jax.random.split(key, 10)

    def u(k, shape, fan_in):
        bound = 1.0 / (fan_in ** 0.5)
        return jax.random.uniform(k, shape, jnp.float32, -bound, bound)

    return {
        "w1": u(ks[0], (6, 3, 5, 5), 3 * 25),
        "b1": u(ks[1], (6,), 3 * 25),
        "w2": u(ks[2], (16, 6, 5, 5), 6 * 25),
        "b2": u(ks[3], (16,), 6 * 25),
        "fw1": u(ks[4], (120, 400), 400),
        "fb1": u(ks[5], (120,), 400),
        "fw2": u(ks[6], (84, 120), 120),
        "fb2": u(ks[7], (84,), 120),
        "fw3": u(ks[8], (10, 84), 84),
        "fb3": u(ks[9], (10,), 84),
    }


def _conv_weight(w):
    """(O, C, 5, 5) torch conv weight -> (O, 25*8): tap-major, channel slot padded
    to 8 sublanes per tap (matches the in-kernel patch scratch layout)."""
    o, c = w.shape[0], w.shape[1]
    wt = jnp.transpose(w, (0, 2, 3, 1)).reshape(o, TAPS, c)     # [o, tap, c]
    return jnp.zeros((o, TAPS, CP), w.dtype).at[:, :, :c].set(wt).reshape(o, KPAD)


def _pad2(a, rows, cols):
    return jnp.zeros((rows, cols), a.dtype).at[:a.shape[0], :a.shape[1]].set(a)


def _make_sel():
    """(P2W, FEATW) one-hot matrix: column k = 5*qy + qx picks dilated lane
    128*qy + 4*qx of the pooled conv2 map; columns >= 25 are all zero."""
    l = jnp.arange(P2W)[:, None]
    k = jnp.arange(FEATW)[None, :]
    src = 4 * IMG * (k // KW) + 4 * (k % KW)
    return jnp.where((k < TAPS) & (l == src), 1.0, 0.0).astype(jnp.float32)


def prepare_params(raw):
    return {
        "cw1": _conv_weight(raw["w1"]),                     # (6, 200)
        "cb1": raw["b1"].reshape(6, 1),
        "cw2": _conv_weight(raw["w2"]),                     # (16, 200)
        "cb2": raw["b2"].reshape(16, 1),
        "sel": _make_sel(),                                 # (574, 128)
        "fw1": _pad2(raw["fw1"].T, FC_IN, FC_H1),           # (512, 128)
        "fb1": _pad2(raw["fb1"].reshape(1, -1), 1, FC_H1),
        "fw2": _pad2(raw["fw2"].T, FC_H1, FC_H2),           # (128, 128)
        "fb2": _pad2(raw["fb2"].reshape(1, -1), 1, FC_H2),
        "fw3": _pad2(raw["fw3"].T, FC_H2, FC_OUT),          # (128, 128)
        "fb3": _pad2(raw["fb3"].reshape(1, -1), 1, FC_OUT),
    }


# ------------------------------ plain-JAX reference -------------------------

def reference_forward(raw, x):
    def conv(x, w, b):
        y = jax.lax.conv_general_dilated(
            x, w, window_strides=(1, 1), padding="VALID",
            dimension_numbers=("NCHW", "OIHW", "NCHW"))
        return jnp.maximum(y + b[None, :, None, None], 0.0)

    def pool(x):
        n, c, h, w = x.shape
        return x.reshape(n, c, h // 2, 2, w // 2, 2).max(axis=(3, 5))

    y = pool(conv(x, raw["w1"], raw["b1"]))
    y = pool(conv(y, raw["w2"], raw["b2"]))
    y = y.reshape(-1, 16 * 5 * 5)
    y = jnp.maximum(y @ raw["fw1"].T + raw["fb1"], 0.0)
    y = jnp.maximum(y @ raw["fw2"].T + raw["fb2"], 0.0)
    return y @ raw["fw3"].T + raw["fb3"]


if __name__ == "__main__":
    raw = init_params(0)
    params = prepare_params(raw)
    x = jax.random.normal(jax.random.PRNGKey(0), (2, 3, 32, 32), jnp.float32)

    fwd = jax.jit(net_forward)
    out = jax.block_until_ready(fwd(params, x))
    assert out.shape == (2, 10) and out.dtype == jnp.float32

    ref = jax.block_until_ready(jax.jit(reference_forward)(raw, x))
    max_err = float(jnp.max(jnp.abs(out - ref)))
    assert max_err < 5e-2, f"mismatch vs reference: {max_err}"

    print("KERNEL_OK")
</pallas_src>

<mosaic_0001>
module attributes {stable_mosaic.version = 11 : i64} {
  func.func @convnet_kernel(%arg0: i32, %arg1: memref<1x3x1152xf32, #tpu.memory_space<vmem>>, %arg2: memref<6x200xf32, #tpu.memory_space<vmem>>, %arg3: memref<6x1xf32, #tpu.memory_space<vmem>>, %arg4: memref<16x200xf32, #tpu.memory_space<vmem>>, %arg5: memref<16x1xf32, #tpu.memory_space<vmem>>, %arg6: memref<574x128xf32, #tpu.memory_space<vmem>>, %arg7: memref<1x16x128xf32, #tpu.memory_space<vmem>>, %arg8: memref<200x960xf32, #tpu.memory_space<vmem>>, %arg9: memref<200x640xf32, #tpu.memory_space<vmem>>) attributes {dimension_semantics = [#tpu.dimension_semantics<parallel>], iteration_bounds = array<i64: 2>, scalar_prefetch = 0 : i64, scratch_operands = 2 : i64, tpu.core_type = #tpu.core_type<tc>, window_params = [{transform_indices = @transform_0, window_bounds = array<i64: 1, 3, 1152>}, {pipeline_mode = #tpu.pipeline_mode<synchronous>, transform_indices = @transform_1, window_bounds = array<i64: 6, 200>}, {pipeline_mode = #tpu.pipeline_mode<synchronous>, transform_indices = @transform_2, window_bounds = array<i64: 6, 1>}, {pipeline_mode = #tpu.pipeline_mode<synchronous>, transform_indices = @transform_3, window_bounds = array<i64: 16, 200>}, {pipeline_mode = #tpu.pipeline_mode<synchronous>, transform_indices = @transform_4, window_bounds = array<i64: 16, 1>}, {pipeline_mode = #tpu.pipeline_mode<synchronous>, transform_indices = @transform_5, window_bounds = array<i64: 574, 128>}, {transform_indices = @transform_6, window_bounds = array<i64: 1, 16, 128>}]} {
    %cst = arith.constant 0.000000e+00 : f32
    %0 = vector.broadcast %cst : f32 to vector<200x960xf32>
    %c0 = arith.constant 0 : index
    %c0_0 = arith.constant 0 : index
    %1 = vector.load %arg8[%c0, %c0_0] : memref<200x960xf32, #tpu.memory_space<vmem>>, vector<200x960xf32>
    tpu.vector_store %arg8[%c0, %c0_0], %0 {strides = array<i32>} : memref<200x960xf32, #tpu.memory_space<vmem>>, vector<200x960xf32>,
    %cst_1 = arith.constant 0.000000e+00 : f32
    %2 = vector.broadcast %cst_1 : f32 to vector<200x640xf32>
    %c0_2 = arith.constant 0 : index
    %c0_3 = arith.constant 0 : index
    %3 = vector.load %arg9[%c0_2, %c0_3] : memref<200x640xf32, #tpu.memory_space<vmem>>, vector<200x640xf32>
    tpu.vector_store %arg9[%c0_2, %c0_3], %2 {strides = array<i32>} : memref<200x640xf32, #tpu.memory_space<vmem>>, vector<200x640xf32>,
    %c0_4 = arith.constant 0 : index
    %c0_5 = arith.constant 0 : index
    %4 = vector.load %arg6[%c0_4, %c0_5] : memref<574x128xf32, #tpu.memory_space<vmem>>, vector<574x128xf32>
    %c0_6 = arith.constant 0 : index
    %c0_7 = arith.constant 0 : index
    %c0_8 = arith.constant 0 : index
    %5 = vector.load %arg1[%c0_6, %c0_7, %c0_8] : memref<1x3x1152xf32, #tpu.memory_space<vmem>>, vector<1x3x1152xf32>
    %6 = vector.shape_cast %5 : vector<1x3x1152xf32> to vector<3x1152xf32>
    %7 = vector.extract_strided_slice %6 {offsets = [0, 0], sizes = [3, 960], strides = [1, 1]} : vector<3x1152xf32> to vector<3x960xf32>
    %c0_9 = arith.constant 0 : index
    %c0_10 = arith.constant 0 : index
    %8 = vector.load %arg8[%c0_9, %c0_10] : memref<200x960xf32, #tpu.memory_space<vmem>>, vector<3x960xf32>
    tpu.vector_store %arg8[%c0_9, %c0_10], %7 {strides = array<i32>} : memref<200x960xf32, #tpu.memory_space<vmem>>, vector<3x960xf32>,
    %9 = vector.extract_strided_slice %6 {offsets = [0, 1], sizes = [3, 960], strides = [1, 1]} : vector<3x1152xf32> to vector<3x960xf32>
    %c8 = arith.constant 8 : index
    %c0_11 = arith.constant 0 : index
    %10 = vector.load %arg8[%c8, %c0_11] : memref<200x960xf32, #tpu.memory_space<vmem>>, vector<3x960xf32>
    tpu.vector_store %arg8[%c8, %c0_11], %9 {strides = array<i32>} : memref<200x960xf32, #tpu.memory_space<vmem>>, vector<3x960xf32>,
    %11 = vector.extract_strided_slice %6 {offsets = [0, 2], sizes = [3, 960], strides = [1, 1]} : vector<3x1152xf32> to vector<3x960xf32>
    %c16 = arith.constant 16 : index
    %c0_12 = arith.constant 0 : index
    %12 = vector.load %arg8[%c16, %c0_12] : memref<200x960xf32, #tpu.memory_space<vmem>>, vector<3x960xf32>
    tpu.vector_store %arg8[%c16, %c0_12], %11 {strides = array<i32>} : memref<200x960xf32, #tpu.memory_space<vmem>>, vector<3x960xf32>,
    %13 = vector.extract_strided_slice %6 {offsets = [0, 3], sizes = [3, 960], strides = [1, 1]} : vector<3x1152xf32> to vector<3x960xf32>
    %c24 = arith.constant 24 : index
    %c0_13 = arith.constant 0 : index
    %14 = vector.load %arg8[%c24, %c0_13] : memref<200x960xf32, #tpu.memory_space<vmem>>, vector<3x960xf32>
    tpu.vector_store %arg8[%c24, %c0_13], %13 {strides = array<i32>} : memref<200x960xf32, #tpu.memory_space<vmem>>, vector<3x960xf32>,
    %15 = vector.extract_strided_slice %6 {offsets = [0, 4], sizes = [3, 960], strides = [1, 1]} : vector<3x1152xf32> to vector<3x960xf32>
    %c32 = arith.constant 32 : index
    %c0_14 = arith.constant 0 : index
    %16 = vector.load %arg8[%c32, %c0_14] : memref<200x960xf32, #tpu.memory_space<vmem>>, vector<3x960xf32>
    tpu.vector_store %arg8[%c32, %c0_14], %15 {strides = array<i32>} : memref<200x960xf32, #tpu.memory_space<vmem>>, vector<3x960xf32>,
    %17 = vector.extract_strided_slice %6 {offsets = [0, 32], sizes = [3, 960], strides = [1, 1]} : vector<3x1152xf32> to vector<3x960xf32>
    %c40 = arith.constant 40 : index
    %c0_15 = arith.constant 0 : index
    %18 = vector.load %arg8[%c40, %c0_15] : memref<200x960xf32, #tpu.memory_space<vmem>>, vector<3x960xf32>
    tpu.vector_store %arg8[%c40, %c0_15], %17 {strides = array<i32>} : memref<200x960xf32, #tpu.memory_space<vmem>>, vector<3x960xf32>,
    %19 = vector.extract_strided_slice %6 {offsets = [0, 33], sizes = [3, 960], strides = [1, 1]} : vector<3x1152xf32> to vector<3x960xf32>
    %c48 = arith.constant 48 : index
    %c0_16 = arith.constant 0 : index
    %20 = vector.load %arg8[%c48, %c0_16] : memref<200x960xf32, #tpu.memory_space<vmem>>, vector<3x960xf32>
    tpu.vector_store %arg8[%c48, %c0_16], %19 {strides = array<i32>} : memref<200x960xf32, #tpu.memory_space<vmem>>, vector<3x960xf32>,
    %21 = vector.extract_strided_slice %6 {offsets = [0, 34], sizes = [3, 960], strides = [1, 1]} : vector<3x1152xf32> to vector<3x960xf32>
    %c56 = arith.constant 56 : index
    %c0_17 = arith.constant 0 : index
    %22 = vector.load %arg8[%c56, %c0_17] : memref<200x960xf32, #tpu.memory_space<vmem>>, vector<3x960xf32>
    tpu.vector_store %arg8[%c56, %c0_17], %21 {strides = array<i32>} : memref<200x960xf32, #tpu.memory_space<vmem>>, vector<3x960xf32>,
    %23 = vector.extract_strided_slice %6 {offsets = [0, 35], sizes = [3, 960], strides = [1, 1]} : vector<3x1152xf32> to vector<3x960xf32>
    %c64 = arith.constant 64 : index
    %c0_18 = arith.constant 0 : index
    %24 = vector.load %arg8[%c64, %c0_18] : memref<200x960xf32, #tpu.memory_space<vmem>>, vector<3x960xf32>
    tpu.vector_store %arg8[%c64, %c0_18], %23 {strides = array<i32>} : memref<200x960xf32, #tpu.memory_space<vmem>>, vector<3x960xf32>,
    %25 = vector.extract_strided_slice %6 {offsets = [0, 36], sizes = [3, 960], strides = [1, 1]} : vector<3x1152xf32> to vector<3x960xf32>
    %c72 = arith.constant 72 : index
    %c0_19 = arith.constant 0 : index
    %26 = vector.load %arg8[%c72, %c0_19] : memref<200x960xf32, #tpu.memory_space<vmem>>, vector<3x960xf32>
    tpu.vector_store %arg8[%c72, %c0_19], %25 {strides = array<i32>} : memref<200x960xf32, #tpu.memory_space<vmem>>, vector<3x960xf32>,
    %27 = vector.extract_strided_slice %6 {offsets = [0, 64], sizes = [3, 960], strides = [1, 1]} : vector<3x1152xf32> to vector<3x960xf32>
    %c80 = arith.constant 80 : index
    %c0_20 = arith.constant 0 : index
    %28 = vector.load %arg8[%c80, %c0_20] : memref<200x960xf32, #tpu.memory_space<vmem>>, vector<3x960xf32>
    tpu.vector_store %arg8[%c80, %c0_20], %27 {strides = array<i32>} : memref<200x960xf32, #tpu.memory_space<vmem>>, vector<3x960xf32>,
    %29 = vector.extract_strided_slice %6 {offsets = [0, 65], sizes = [3, 960], strides = [1, 1]} : vector<3x1152xf32> to vector<3x960xf32>
    %c88 = arith.constant 88 : index
    %c0_21 = arith.constant 0 : index
    %30 = vector.load %arg8[%c88, %c0_21] : memref<200x960xf32, #tpu.memory_space<vmem>>, vector<3x960xf32>
    tpu.vector_store %arg8[%c88, %c0_21], %29 {strides = array<i32>} : memref<200x960xf32, #tpu.memory_space<vmem>>, vector<3x960xf32>,
    %31 = vector.extract_strided_slice %6 {offsets = [0, 66], sizes = [3, 960], strides = [1, 1]} : vector<3x1152xf32> to vector<3x960xf32>
    %c96 = arith.constant 96 : index
    %c0_22 = arith.constant 0 : index
    %32 = vector.load %arg8[%c96, %c0_22] : memref<200x960xf32, #tpu.memory_space<vmem>>, vector<3x960xf32>
    tpu.vector_store %arg8[%c96, %c0_22], %31 {strides = array<i32>} : memref<200x960xf32, #tpu.memory_space<vmem>>, vector<3x960xf32>,
    %33 = vector.extract_strided_slice %6 {offsets = [0, 67], sizes = [3, 960], strides = [1, 1]} : vector<3x1152xf32> to vector<3x960xf32>
    %c104 = arith.constant 104 : index
    %c0_23 = arith.constant 0 : index
    %34 = vector.load %arg8[%c104, %c0_23] : memref<200x960xf32, #tpu.memory_space<vmem>>, vector<3x960xf32>
    tpu.vector_store %arg8[%c104, %c0_23], %33 {strides = array<i32>} : memref<200x960xf32, #tpu.memory_space<vmem>>, vector<3x960xf32>,
    %35 = vector.extract_strided_slice %6 {offsets = [0, 68], sizes = [3, 960], strides = [1, 1]} : vector<3x1152xf32> to vector<3x960xf32>
    %c112 = arith.constant 112 : index
    %c0_24 = arith.constant 0 : index
    %36 = vector.load %arg8[%c112, %c0_24] : memref<200x960xf32, #tpu.memory_space<vmem>>, vector<3x960xf32>
    tpu.vector_store %arg8[%c112, %c0_24], %35 {strides = array<i32>} : memref<200x960xf32, #tpu.memory_space<vmem>>, vector<3x960xf32>,
    %37 = vector.extract_strided_slice %6 {offsets = [0, 96], sizes = [3, 960], strides = [1, 1]} : vector<3x1152xf32> to vector<3x960xf32>
    %c120 = arith.constant 120 : index
    %c0_25 = arith.constant 0 : index
    %38 = vector.load %arg8[%c120, %c0_25] : memref<200x960xf32, #tpu.memory_space<vmem>>, vector<3x960xf32>
    tpu.vector_store %arg8[%c120, %c0_25], %37 {strides = array<i32>} : memref<200x960xf32, #tpu.memory_space<vmem>>, vector<3x960xf32>,
    %39 = vector.extract_strided_slice %6 {offsets = [0, 97], sizes = [3, 960], strides = [1, 1]} : vector<3x1152xf32> to vector<3x960xf32>
    %c128 = arith.constant 128 : index
    %c0_26 = arith.constant 0 : index
    %40 = vector.load %arg8[%c128, %c0_26] : memref<200x960xf32, #tpu.memory_space<vmem>>, vector<3x960xf32>
    tpu.vector_store %arg8[%c128, %c0_26], %39 {strides = array<i32>} : memref<200x960xf32, #tpu.memory_space<vmem>>, vector<3x960xf32>,
    %41 = vector.extract_strided_slice %6 {offsets = [0, 98], sizes = [3, 960], strides = [1, 1]} : vector<3x1152xf32> to vector<3x960xf32>
    %c136 = arith.constant 136 : index
    %c0_27 = arith.constant 0 : index
    %42 = vector.load %arg8[%c136, %c0_27] : memref<200x960xf32, #tpu.memory_space<vmem>>, vector<3x960xf32>
    tpu.vector_store %arg8[%c136, %c0_27], %41 {strides = array<i32>} : memref<200x960xf32, #tpu.memory_space<vmem>>, vector<3x960xf32>,
    %43 = vector.extract_strided_slice %6 {offsets = [0, 99], sizes = [3, 960], strides = [1, 1]} : vector<3x1152xf32> to vector<3x960xf32>
    %c144 = arith.constant 144 : index
    %c0_28 = arith.constant 0 : index
    %44 = vector.load %arg8[%c144, %c0_28] : memref<200x960xf32, #tpu.memory_space<vmem>>, vector<3x960xf32>
    tpu.vector_store %arg8[%c144, %c0_28], %43 {strides = array<i32>} : memref<200x960xf32, #tpu.memory_space<vmem>>, vector<3x960xf32>,
    %45 = vector.extract_strided_slice %6 {offsets = [0, 100], sizes = [3, 960], strides = [1, 1]} : vector<3x1152xf32> to vector<3x960xf32>
    %c152 = arith.constant 152 : index
    %c0_29 = arith.constant 0 : index
    %46 = vector.load %arg8[%c152, %c0_29] : memref<200x960xf32, #tpu.memory_space<vmem>>, vector<3x960xf32>
    tpu.vector_store %arg8[%c152, %c0_29], %45 {strides = array<i32>} : memref<200x960xf32, #tpu.memory_space<vmem>>, vector<3x960xf32>,
    %47 = vector.extract_strided_slice %6 {offsets = [0, 128], sizes = [3, 960], strides = [1, 1]} : vector<3x1152xf32> to vector<3x960xf32>
    %c160 = arith.constant 160 : index
    %c0_30 = arith.constant 0 : index
    %48 = vector.load %arg8[%c160, %c0_30] : memref<200x960xf32, #tpu.memory_space<vmem>>, vector<3x960xf32>
    tpu.vector_store %arg8[%c160, %c0_30], %47 {strides = array<i32>} : memref<200x960xf32, #tpu.memory_space<vmem>>, vector<3x960xf32>,
    %49 = vector.extract_strided_slice %6 {offsets = [0, 129], sizes = [3, 960], strides = [1, 1]} : vector<3x1152xf32> to vector<3x960xf32>
    %c168 = arith.constant 168 : index
    %c0_31 = arith.constant 0 : index
    %50 = vector.load %arg8[%c168, %c0_31] : memref<200x960xf32, #tpu.memory_space<vmem>>, vector<3x960xf32>
    tpu.vector_store %arg8[%c168, %c0_31], %49 {strides = array<i32>} : memref<200x960xf32, #tpu.memory_space<vmem>>, vector<3x960xf32>,
    %51 = vector.extract_strided_slice %6 {offsets = [0, 130], sizes = [3, 960], strides = [1, 1]} : vector<3x1152xf32> to vector<3x960xf32>
    %c176 = arith.constant 176 : index
    %c0_32 = arith.constant 0 : index
    %52 = vector.load %arg8[%c176, %c0_32] : memref<200x960xf32, #tpu.memory_space<vmem>>, vector<3x960xf32>
    tpu.vector_store %arg8[%c176, %c0_32], %51 {strides = array<i32>} : memref<200x960xf32, #tpu.memory_space<vmem>>, vector<3x960xf32>,
    %53 = vector.extract_strided_slice %6 {offsets = [0, 131], sizes = [3, 960], strides = [1, 1]} : vector<3x1152xf32> to vector<3x960xf32>
    %c184 = arith.constant 184 : index
    %c0_33 = arith.constant 0 : index
    %54 = vector.load %arg8[%c184, %c0_33] : memref<200x960xf32, #tpu.memory_space<vmem>>, vector<3x960xf32>
    tpu.vector_store %arg8[%c184, %c0_33], %53 {strides = array<i32>} : memref<200x960xf32, #tpu.memory_space<vmem>>, vector<3x960xf32>,
    %55 = vector.extract_strided_slice %6 {offsets = [0, 132], sizes = [3, 960], strides = [1, 1]} : vector<3x1152xf32> to vector<3x960xf32>
    %c192 = arith.constant 192 : index
    %c0_34 = arith.constant 0 : index
    %56 = vector.load %arg8[%c192, %c0_34] : memref<200x960xf32, #tpu.memory_space<vmem>>, vector<3x960xf32>
    tpu.vector_store %arg8[%c192, %c0_34], %55 {strides = array<i32>} : memref<200x960xf32, #tpu.memory_space<vmem>>, vector<3x960xf32>,
    %c0_35 = arith.constant 0 : index
    %c0_36 = arith.constant 0 : index
    %57 = vector.load %arg2[%c0_35, %c0_36] : memref<6x200xf32, #tpu.memory_space<vmem>>, vector<6x200xf32>
    %c0_37 = arith.constant 0 : index
    %c0_38 = arith.constant 0 : index
    %58 = vector.load %arg8[%c0_37, %c0_38] : memref<200x960xf32, #tpu.memory_space<vmem>>, vector<200x960xf32>
    %cst_39 = arith.constant dense<0.000000e+00> : vector<6x960xf32>
    %59 = tpu.matmul %57, %58, %cst_39 {dimension_numbers = #tpu.dot_dimension_numbers<[1], [0], [0], [1], [0, 0, 1, 1], [], []>} : vector<6x200xf32>, vector<200x960xf32>, vector<6x960xf32> -> vector<6x960xf32>
    %c0_40 = arith.constant 0 : index
    %c0_41 = arith.constant 0 : index
    %60 = vector.load %arg3[%c0_40, %c0_41] : memref<6x1xf32, #tpu.memory_space<vmem>>, vector<6x1xf32>
    %61 = vector.broadcast %60 : vector<6x1xf32> to vector<6x960xf32>
    %62 = arith.addf %59, %61 : vector<6x960xf32>
    %cst_42 = arith.constant 0.000000e+00 : f32
    %63 = vector.broadcast %cst_42 : f32 to vector<6x960xf32>
    %64 = arith.maximumf %62, %63 : vector<6x960xf32>
    %65 = vector.extract_strided_slice %64 {offsets = [0, 0], sizes = [6, 959], strides = [1, 1]} : vector<6x960xf32> to vector<6x959xf32>
    %66 = vector.extract_strided_slice %64 {offsets = [0, 1], sizes = [6, 959], strides = [1, 1]} : vector<6x960xf32> to vector<6x959xf32>
    %67 = arith.maximumf %65, %66 : vector<6x959xf32>
    %68 = vector.extract_strided_slice %67 {offsets = [0, 0], sizes = [6, 927], strides = [1, 1]} : vector<6x959xf32> to vector<6x927xf32>
    %69 = vector.extract_strided_slice %67 {offsets = [0, 32], sizes = [6, 927], strides = [1, 1]} : vector<6x959xf32> to vector<6x927xf32>
    %70 = arith.maximumf %68, %69 : vector<6x927xf32>
    %71 = vector.extract_strided_slice %70 {offsets = [0, 0], sizes = [6, 640], strides = [1, 1]} : vector<6x927xf32> to vector<6x640xf32>
    %c0_43 = arith.constant 0 : index
    %c0_44 = arith.constant 0 : index
    %72 = vector.load %arg9[%c0_43, %c0_44] : memref<200x640xf32, #tpu.memory_space<vmem>>, vector<6x640xf32>
    tpu.vector_store %arg9[%c0_43, %c0_44], %71 {strides = array<i32>} : memref<200x640xf32, #tpu.memory_space<vmem>>, vector<6x640xf32>,
    %73 = vector.extract_strided_slice %70 {offsets = [0, 2], sizes = [6, 640], strides = [1, 1]} : vector<6x927xf32> to vector<6x640xf32>
    %c8_45 = arith.constant 8 : index
    %c0_46 = arith.constant 0 : index
    %74 = vector.load %arg9[%c8_45, %c0_46] : memref<200x640xf32, #tpu.memory_space<vmem>>, vector<6x640xf32>
    tpu.vector_store %arg9[%c8_45, %c0_46], %73 {strides = array<i32>} : memref<200x640xf32, #tpu.memory_space<vmem>>, vector<6x640xf32>,
    %75 = vector.extract_strided_slice %70 {offsets = [0, 4], sizes = [6, 640], strides = [1, 1]} : vector<6x927xf32> to vector<6x640xf32>
    %c16_47 = arith.constant 16 : index
    %c0_48 = arith.constant 0 : index
    %76 = vector.load %arg9[%c16_47, %c0_48] : memref<200x640xf32, #tpu.memory_space<vmem>>, vector<6x640xf32>
    tpu.vector_store %arg9[%c16_47, %c0_48], %75 {strides = array<i32>} : memref<200x640xf32, #tpu.memory_space<vmem>>, vector<6x640xf32>,
    %77 = vector.extract_strided_slice %70 {offsets = [0, 6], sizes = [6, 640], strides = [1, 1]} : vector<6x927xf32> to vector<6x640xf32>
    %c24_49 = arith.constant 24 : index
    %c0_50 = arith.constant 0 : index
    %78 = vector.load %arg9[%c24_49, %c0_50] : memref<200x640xf32, #tpu.memory_space<vmem>>, vector<6x640xf32>
    tpu.vector_store %arg9[%c24_49, %c0_50], %77 {strides = array<i32>} : memref<200x640xf32, #tpu.memory_space<vmem>>, vector<6x640xf32>,
    %79 = vector.extract_strided_slice %70 {offsets = [0, 8], sizes = [6, 640], strides = [1, 1]} : vector<6x927xf32> to vector<6x640xf32>
    %c32_51 = arith.constant 32 : index
    %c0_52 = arith.constant 0 : index
    %80 = vector.load %arg9[%c32_51, %c0_52] : memref<200x640xf32, #tpu.memory_space<vmem>>, vector<6x640xf32>
    tpu.vector_store %arg9[%c32_51, %c0_52], %79 {strides = array<i32>} : memref<200x640xf32, #tpu.memory_space<vmem>>, vector<6x640xf32>,
    %81 = vector.extract_strided_slice %70 {offsets = [0, 64], sizes = [6, 640], strides = [1, 1]} : vector<6x927xf32> to vector<6x640xf32>
    %c40_53 = arith.constant 40 : index
    %c0_54 = arith.constant 0 : index
    %82 = vector.load %arg9[%c40_53, %c0_54] : memref<200x640xf32, #tpu.memory_space<vmem>>, vector<6x640xf32>
    tpu.vector_store %arg9[%c40_53, %c0_54], %81 {strides = array<i32>} : memref<200x640xf32, #tpu.memory_space<vmem>>, vector<6x640xf32>,
    %83 = vector.extract_strided_slice %70 {offsets = [0, 66], sizes = [6, 640], strides = [1, 1]} : vector<6x927xf32> to vector<6x640xf32>
    %c48_55 = arith.constant 48 : index
    %c0_56 = arith.constant 0 : index
    %84 = vector.load %arg9[%c48_55, %c0_56] : memref<200x640xf32, #tpu.memory_space<vmem>>, vector<6x640xf32>
    tpu.vector_store %arg9[%c48_55, %c0_56], %83 {strides = array<i32>} : memref<200x640xf32, #tpu.memory_space<vmem>>, vector<6x640xf32>,
    %85 = vector.extract_strided_slice %70 {offsets = [0, 68], sizes = [6, 640], strides = [1, 1]} : vector<6x927xf32> to vector<6x640xf32>
    %c56_57 = arith.constant 56 : index
    %c0_58 = arith.constant 0 : index
    %86 = vector.load %arg9[%c56_57, %c0_58] : memref<200x640xf32, #tpu.memory_space<vmem>>, vector<6x640xf32>
    tpu.vector_store %arg9[%c56_57, %c0_58], %85 {strides = array<i32>} : memref<200x640xf32, #tpu.memory_space<vmem>>, vector<6x640xf32>,
    %87 = vector.extract_strided_slice %70 {offsets = [0, 70], sizes = [6, 640], strides = [1, 1]} : vector<6x927xf32> to vector<6x640xf32>
    %c64_59 = arith.constant 64 : index
    %c0_60 = arith.constant 0 : index
    %88 = vector.load %arg9[%c64_59, %c0_60] : memref<200x640xf32, #tpu.memory_space<vmem>>, vector<6x640xf32>
    tpu.vector_store %arg9[%c64_59, %c0_60], %87 {strides = array<i32>} : memref<200x640xf32, #tpu.memory_space<vmem>>, vector<6x640xf32>,
    %89 = vector.extract_strided_slice %70 {offsets = [0, 72], sizes = [6, 640], strides = [1, 1]} : vector<6x927xf32> to vector<6x640xf32>
    %c72_61 = arith.constant 72 : index
    %c0_62 = arith.constant 0 : index
    %90 = vector.load %arg9[%c72_61, %c0_62] : memref<200x640xf32, #tpu.memory_space<vmem>>, vector<6x640xf32>
    tpu.vector_store %arg9[%c72_61, %c0_62], %89 {strides = array<i32>} : memref<200x640xf32, #tpu.memory_space<vmem>>, vector<6x640xf32>,
    %91 = vector.extract_strided_slice %70 {offsets = [0, 128], sizes = [6, 640], strides = [1, 1]} : vector<6x927xf32> to vector<6x640xf32>
    %c80_63 = arith.constant 80 : index
    %c0_64 = arith.constant 0 : index
    %92 = vector.load %arg9[%c80_63, %c0_64] : memref<200x640xf32, #tpu.memory_space<vmem>>, vector<6x640xf32>
    tpu.vector_store %arg9[%c80_63, %c0_64], %91 {strides = array<i32>} : memref<200x640xf32, #tpu.memory_space<vmem>>, vector<6x640xf32>,
    %93 = vector.extract_strided_slice %70 {offsets = [0, 130], sizes = [6, 640], strides = [1, 1]} : vector<6x927xf32> to vector<6x640xf32>
    %c88_65 = arith.constant 88 : index
    %c0_66 = arith.constant 0 : index
    %94 = vector.load %arg9[%c88_65, %c0_66] : memref<200x640xf32, #tpu.memory_space<vmem>>, vector<6x640xf32>
    tpu.vector_store %arg9[%c88_65, %c0_66], %93 {strides = array<i32>} : memref<200x640xf32, #tpu.memory_space<vmem>>, vector<6x640xf32>,
    %95 = vector.extract_strided_slice %70 {offsets = [0, 132], sizes = [6, 640], strides = [1, 1]} : vector<6x927xf32> to vector<6x640xf32>
    %c96_67 = arith.constant 96 : index
    %c0_68 = arith.constant 0 : index
    %96 = vector.load %arg9[%c96_67, %c0_68] : memref<200x640xf32, #tpu.memory_space<vmem>>, vector<6x640xf32>
    tpu.vector_store %arg9[%c96_67, %c0_68], %95 {strides = array<i32>} : memref<200x640xf32, #tpu.memory_space<vmem>>, vector<6x640xf32>,
    %97 = vector.extract_strided_slice %70 {offsets = [0, 134], sizes = [6, 640], strides = [1, 1]} : vector<6x927xf32> to vector<6x640xf32>
    %c104_69 = arith.constant 104 : index
    %c0_70 = arith.constant 0 : index
    %98 = vector.load %arg9[%c104_69, %c0_70] : memref<200x640xf32, #tpu.memory_space<vmem>>, vector<6x640xf32>
    tpu.vector_store %arg9[%c104_69, %c0_70], %97 {strides = array<i32>} : memref<200x640xf32, #tpu.memory_space<vmem>>, vector<6x640xf32>,
    %99 = vector.extract_strided_slice %70 {offsets = [0, 136], sizes = [6, 640], strides = [1, 1]} : vector<6x927xf32> to vector<6x640xf32>
    %c112_71 = arith.constant 112 : index
    %c0_72 = arith.constant 0 : index
    %100 = vector.load %arg9[%c112_71, %c0_72] : memref<200x640xf32, #tpu.memory_space<vmem>>, vector<6x640xf32>
    tpu.vector_store %arg9[%c112_71, %c0_72], %99 {strides = array<i32>} : memref<200x640xf32, #tpu.memory_space<vmem>>, vector<6x640xf32>,
    %101 = vector.extract_strided_slice %70 {offsets = [0, 192], sizes = [6, 640], strides = [1, 1]} : vector<6x927xf32> to vector<6x640xf32>
    %c120_73 = arith.constant 120 : index
    %c0_74 = arith.constant 0 : index
    %102 = vector.load %arg9[%c120_73, %c0_74] : memref<200x640xf32, #tpu.memory_space<vmem>>, vector<6x640xf32>
    tpu.vector_store %arg9[%c120_73, %c0_74], %101 {strides = array<i32>} : memref<200x640xf32, #tpu.memory_space<vmem>>, vector<6x640xf32>,
    %103 = vector.extract_strided_slice %70 {offsets = [0, 194], sizes = [6, 640], strides = [1, 1]} : vector<6x927xf32> to vector<6x640xf32>
    %c128_75 = arith.constant 128 : index
    %c0_76 = arith.constant 0 : index
    %104 = vector.load %arg9[%c128_75, %c0_76] : memref<200x640xf32, #tpu.memory_space<vmem>>, vector<6x640xf32>
    tpu.vector_store %arg9[%c128_75, %c0_76], %103 {strides = array<i32>} : memref<200x640xf32, #tpu.memory_space<vmem>>, vector<6x640xf32>,
    %105 = vector.extract_strided_slice %70 {offsets = [0, 196], sizes = [6, 640], strides = [1, 1]} : vector<6x927xf32> to vector<6x640xf32>
    %c136_77 = arith.constant 136 : index
    %c0_78 = arith.constant 0 : index
    %106 = vector.load %arg9[%c136_77, %c0_78] : memref<200x640xf32, #tpu.memory_space<vmem>>, vector<6x640xf32>
    tpu.vector_store %arg9[%c136_77, %c0_78], %105 {strides = array<i32>} : memref<200x640xf32, #tpu.memory_space<vmem>>, vector<6x640xf32>,
    %107 = vector.extract_strided_slice %70 {offsets = [0, 198], sizes = [6, 640], strides = [1, 1]} : vector<6x927xf32> to vector<6x640xf32>
    %c144_79 = arith.constant 144 : index
    %c0_80 = arith.constant 0 : index
    %108 = vector.load %arg9[%c144_79, %c0_80] : memref<200x640xf32, #tpu.memory_space<vmem>>, vector<6x640xf32>
    tpu.vector_store %arg9[%c144_79, %c0_80], %107 {strides = array<i32>} : memref<200x640xf32, #tpu.memory_space<vmem>>, vector<6x640xf32>,
    %109 = vector.extract_strided_slice %70 {offsets = [0, 200], sizes = [6, 640], strides = [1, 1]} : vector<6x927xf32> to vector<6x640xf32>
    %c152_81 = arith.constant 152 : index
    %c0_82 = arith.constant 0 : index
    %110 = vector.load %arg9[%c152_81, %c0_82] : memref<200x640xf32, #tpu.memory_space<vmem>>, vector<6x640xf32>
    tpu.vector_store %arg9[%c152_81, %c0_82], %109 {strides = array<i32>} : memref<200x640xf32, #tpu.memory_space<vmem>>, vector<6x640xf32>,
    %111 = vector.extract_strided_slice %70 {offsets = [0, 256], sizes = [6, 640], strides = [1, 1]} : vector<6x927xf32> to vector<6x640xf32>
    %c160_83 = arith.constant 160 : index
    %c0_84 = arith.constant 0 : index
    %112 = vector.load %arg9[%c160_83, %c0_84] : memref<200x640xf32, #tpu.memory_space<vmem>>, vector<6x640xf32>
    tpu.vector_store %arg9[%c160_83, %c0_84], %111 {strides = array<i32>} : memref<200x640xf32, #tpu.memory_space<vmem>>, vector<6x640xf32>,
    %113 = vector.extract_strided_slice %70 {offsets = [0, 258], sizes = [6, 640], strides = [1, 1]} : vector<6x927xf32> to vector<6x640xf32>
    %c168_85 = arith.constant 168 : index
    %c0_86 = arith.constant 0 : index
    %114 = vector.load %arg9[%c168_85, %c0_86] : memref<200x640xf32, #tpu.memory_space<vmem>>, vector<6x640xf32>
    tpu.vector_store %arg9[%c168_85, %c0_86], %113 {strides = array<i32>} : memref<200x640xf32, #tpu.memory_space<vmem>>, vector<6x640xf32>,
    %115 = vector.extract_strided_slice %70 {offsets = [0, 260], sizes = [6, 640], strides = [1, 1]} : vector<6x927xf32> to vector<6x640xf32>
    %c176_87 = arith.constant 176 : index
    %c0_88 = arith.constant 0 : index
    %116 = vector.load %arg9[%c176_87, %c0_88] : memref<200x640xf32, #tpu.memory_space<vmem>>, vector<6x640xf32>
    tpu.vector_store %arg9[%c176_87, %c0_88], %115 {strides = array<i32>} : memref<200x640xf32, #tpu.memory_space<vmem>>, vector<6x640xf32>,
    %117 = vector.extract_strided_slice %70 {offsets = [0, 262], sizes = [6, 640], strides = [1, 1]} : vector<6x927xf32> to vector<6x640xf32>
    %c184_89 = arith.constant 184 : index
    %c0_90 = arith.constant 0 : index
    %118 = vector.load %arg9[%c184_89, %c0_90] : memref<200x640xf32, #tpu.memory_space<vmem>>, vector<6x640xf32>
    tpu.vector_store %arg9[%c184_89, %c0_90], %117 {strides = array<i32>} : memref<200x640xf32, #tpu.memory_space<vmem>>, vector<6x640xf32>,
    %119 = vector.extract_strided_slice %70 {offsets = [0, 264], sizes = [6, 640], strides = [1, 1]} : vector<6x927xf32> to vector<6x640xf32>
    %c192_91 = arith.constant 192 : index
    %c0_92 = arith.constant 0 : index
    %120 = vector.load %arg9[%c192_91, %c0_92] : memref<200x640xf32, #tpu.memory_space<vmem>>, vector<6x640xf32>
    tpu.vector_store %arg9[%c192_91, %c0_92], %119 {strides = array<i32>} : memref<200x640xf32, #tpu.memory_space<vmem>>, vector<6x640xf32>,
    %c0_93 = arith.constant 0 : index
    %c0_94 = arith.constant 0 : index
    %121 = vector.load %arg4[%c0_93, %c0_94] : memref<16x200xf32, #tpu.memory_space<vmem>>, vector<16x200xf32>
    %c0_95 = arith.constant 0 : index
    %c0_96 = arith.constant 0 : index
    %122 = vector.load %arg9[%c0_95, %c0_96] : memref<200x640xf32, #tpu.memory_space<vmem>>, vector<200x640xf32>
    %cst_97 = arith.constant dense<0.000000e+00> : vector<16x640xf32>
    %123 = tpu.matmul %121, %122, %cst_97 {dimension_numbers = #tpu.dot_dimension_numbers<[1], [0], [0], [1], [0, 0, 1, 1], [], []>} : vector<16x200xf32>, vector<200x640xf32>, vector<16x640xf32> -> vector<16x640xf32>
    %c0_98 = arith.constant 0 : index
    %c0_99 = arith.constant 0 : index
    %124 = vector.load %arg5[%c0_98, %c0_99] : memref<16x1xf32, #tpu.memory_space<vmem>>, vector<16x1xf32>
    %125 = vector.broadcast %124 : vector<16x1xf32> to vector<16x640xf32>
    %126 = arith.addf %123, %125 : vector<16x640xf32>
    %cst_100 = arith.constant 0.000000e+00 : f32
    %127 = vector.broadcast %cst_100 : f32 to vector<16x640xf32>
    %128 = arith.maximumf %126, %127 : vector<16x640xf32>
    %129 = vector.extract_strided_slice %128 {offsets = [0, 0], sizes = [16, 638], strides = [1, 1]} : vector<16x640xf32> to vector<16x638xf32>
    %130 = vector.extract_strided_slice %128 {offsets = [0, 2], sizes = [16, 638], strides = [1, 1]} : vector<16x640xf32> to vector<16x638xf32>
    %131 = arith.maximumf %129, %130 : vector<16x638xf32>
    %132 = vector.extract_strided_slice %131 {offsets = [0, 0], sizes = [16, 574], strides = [1, 1]} : vector<16x638xf32> to vector<16x574xf32>
    %133 = vector.extract_strided_slice %131 {offsets = [0, 64], sizes = [16, 574], strides = [1, 1]} : vector<16x638xf32> to vector<16x574xf32>
    %134 = arith.maximumf %132, %133 : vector<16x574xf32>
    %cst_101 = arith.constant dense<0.000000e+00> : vector<16x128xf32>
    %135 = tpu.matmul %134, %4, %cst_101 {dimension_numbers = #tpu.dot_dimension_numbers<[1], [0], [0], [1], [0, 0, 1, 1], [], []>} : vector<16x574xf32>, vector<574x128xf32>, vector<16x128xf32> -> vector<16x128xf32>
    %c0_102 = arith.constant 0 : index
    %c0_103 = arith.constant 0 : index
    %c0_104 = arith.constant 0 : index
    %136 = vector.load %arg7[%c0_102, %c0_103, %c0_104] : memref<1x16x128xf32, #tpu.memory_space<vmem>>, vector<1x16x128xf32>
    %137 = vector.shape_cast %136 : vector<1x16x128xf32> to vector<16x128xf32>
    %138 = vector.shape_cast %135 : vector<16x128xf32> to vector<1x16x128xf32>
    tpu.vector_store %arg7[%c0_102, %c0_103, %c0_104], %138 {strides = array<i32>} : memref<1x16x128xf32, #tpu.memory_space<vmem>>, vector<1x16x128xf32>,
    return
  }
  func.func @transform_0(%arg0: i32) -> (i32, i32, i32) {
    %c0_i32 = arith.constant 0 : i32
    %c0_i32_0 = arith.constant 0 : i32
    %c0_i32_1 = arith.constant 0 : i32
    return %arg0, %c0_i32, %c0_i32_0 : i32, i32, i32
  }
  func.func @transform_1(%arg0: i32) -> (i32, i32) {
    %c0_i32 = arith.constant 0 : i32
    %c0_i32_0 = arith.constant 0 : i32
    %c0_i32_1 = arith.constant 0 : i32
    return %c0_i32, %c0_i32_0 : i32, i32
  }
  func.func @transform_2(%arg0: i32) -> (i32, i32) {
    %c0_i32 = arith.constant 0 : i32
    %c0_i32_0 = arith.constant 0 : i32
    %c0_i32_1 = arith.constant 0 : i32
    return %c0_i32, %c0_i32_0 : i32, i32
  }
  func.func @transform_3(%arg0: i32) -> (i32, i32) {
    %c0_i32 = arith.constant 0 : i32
    %c0_i32_0 = arith.constant 0 : i32
    %c0_i32_1 = arith.constant 0 : i32
    return %c0_i32, %c0_i32_0 : i32, i32
  }
  func.func @transform_4(%arg0: i32) -> (i32, i32) {
    %c0_i32 = arith.constant 0 : i32
    %c0_i32_0 = arith.constant 0 : i32
    %c0_i32_1 = arith.constant 0 : i32
    return %c0_i32, %c0_i32_0 : i32, i32
  }
  func.func @transform_5(%arg0: i32) -> (i32, i32) {
    %c0_i32 = arith.constant 0 : i32
    %c0_i32_0 = arith.constant 0 : i32
    %c0_i32_1 = arith.constant 0 : i32
    return %c0_i32, %c0_i32_0 : i32, i32
  }
  func.func @transform_6(%arg0: i32) -> (i32, i32, i32) {
    %c0_i32 = arith.constant 0 : i32
    %c0_i32_0 = arith.constant 0 : i32
    %c0_i32_1 = arith.constant 0 : i32
    return %arg0, %c0_i32, %c0_i32_0 : i32, i32, i32
  }
}

module attributes {stable_mosaic.version = 11 : i64} {
  func.func @fc_kernel(%arg0: i32, %arg1: memref<8x512xf32, #tpu.memory_space<vmem>>, %arg2: memref<512x128xf32, #tpu.memory_space<vmem>>, %arg3: memref<1x128xf32, #tpu.memory_space<vmem>>, %arg4: memref<128x128xf32, #tpu.memory_space<vmem>>, %arg5: memref<1x128xf32, #tpu.memory_space<vmem>>, %arg6: memref<128x128xf32, #tpu.memory_space<vmem>>, %arg7: memref<1x128xf32, #tpu.memory_space<vmem>>, %arg8: memref<8x128xf32, #tpu.memory_space<vmem>>) attributes {dimension_semantics = [#tpu.dimension_semantics<parallel>], iteration_bounds = array<i64: 1>, scalar_prefetch = 0 : i64, scratch_operands = 0 : i64, tpu.core_type = #tpu.core_type<tc>, window_params = [{transform_indices = @transform_0, window_bounds = array<i64: 8, 512>}, {pipeline_mode = #tpu.pipeline_mode<synchronous>, transform_indices = @transform_1, window_bounds = array<i64: 512, 128>}, {pipeline_mode = #tpu.pipeline_mode<synchronous>, transform_indices = @transform_2, window_bounds = array<i64: 1, 128>}, {pipeline_mode = #tpu.pipeline_mode<synchronous>, transform_indices = @transform_3, window_bounds = array<i64: 128, 128>}, {pipeline_mode = #tpu.pipeline_mode<synchronous>, transform_indices = @transform_4, window_bounds = array<i64: 1, 128>}, {pipeline_mode = #tpu.pipeline_mode<synchronous>, transform_indices = @transform_5, window_bounds = array<i64: 128, 128>}, {pipeline_mode = #tpu.pipeline_mode<synchronous>, transform_indices = @transform_6, window_bounds = array<i64: 1, 128>}, {transform_indices = @transform_7, window_bounds = array<i64: 8, 128>}]} {
    %c0 = arith.constant 0 : index
    %c0_0 = arith.constant 0 : index
    %0 = vector.load %arg1[%c0, %c0_0] : memref<8x512xf32, #tpu.memory_space<vmem>>, vector<8x512xf32>
    %c0_1 = arith.constant 0 : index
    %c0_2 = arith.constant 0 : index
    %1 = vector.load %arg2[%c0_1, %c0_2] : memref<512x128xf32, #tpu.memory_space<vmem>>, vector<512x128xf32>
    %cst = arith.constant dense<0.000000e+00> : vector<8x128xf32>
    %2 = tpu.matmul %0, %1, %cst {dimension_numbers = #tpu.dot_dimension_numbers<[1], [0], [0], [1], [0, 0, 1, 1], [], []>} : vector<8x512xf32>, vector<512x128xf32>, vector<8x128xf32> -> vector<8x128xf32>
    %c0_3 = arith.constant 0 : index
    %c0_4 = arith.constant 0 : index
    %3 = vector.load %arg3[%c0_3, %c0_4] : memref<1x128xf32, #tpu.memory_space<vmem>>, vector<1x128xf32>
    %4 = vector.broadcast %3 : vector<1x128xf32> to vector<8x128xf32>
    %5 = arith.addf %2, %4 : vector<8x128xf32>
    %cst_5 = arith.constant 0.000000e+00 : f32
    %6 = vector.broadcast %cst_5 : f32 to vector<8x128xf32>
    %7 = arith.maximumf %5, %6 : vector<8x128xf32>
    %c0_6 = arith.constant 0 : index
    %c0_7 = arith.constant 0 : index
    %8 = vector.load %arg4[%c0_6, %c0_7] : memref<128x128xf32, #tpu.memory_space<vmem>>, vector<128x128xf32>
    %cst_8 = arith.constant dense<0.000000e+00> : vector<8x128xf32>
    %9 = tpu.matmul %7, %8, %cst_8 {dimension_numbers = #tpu.dot_dimension_numbers<[1], [0], [0], [1], [0, 0, 1, 1], [], []>} : vector<8x128xf32>, vector<128x128xf32>, vector<8x128xf32> -> vector<8x128xf32>
    %c0_9 = arith.constant 0 : index
    %c0_10 = arith.constant 0 : index
    %10 = vector.load %arg5[%c0_9, %c0_10] : memref<1x128xf32, #tpu.memory_space<vmem>>, vector<1x128xf32>
    %11 = vector.broadcast %10 : vector<1x128xf32> to vector<8x128xf32>
    %12 = arith.addf %9, %11 : vector<8x128xf32>
    %cst_11 = arith.constant 0.000000e+00 : f32
    %13 = vector.broadcast %cst_11 : f32 to vector<8x128xf32>
    %14 = arith.maximumf %12, %13 : vector<8x128xf32>
    %c0_12 = arith.constant 0 : index
    %c0_13 = arith.constant 0 : index
    %15 = vector.load %arg6[%c0_12, %c0_13] : memref<128x128xf32, #tpu.memory_space<vmem>>, vector<128x128xf32>
    %cst_14 = arith.constant dense<0.000000e+00> : vector<8x128xf32>
    %16 = tpu.matmul %14, %15, %cst_14 {dimension_numbers = #tpu.dot_dimension_numbers<[1], [0], [0], [1], [0, 0, 1, 1], [], []>} : vector<8x128xf32>, vector<128x128xf32>, vector<8x128xf32> -> vector<8x128xf32>
    %c0_15 = arith.constant 0 : index
    %c0_16 = arith.constant 0 : index
    %17 = vector.load %arg7[%c0_15, %c0_16] : memref<1x128xf32, #tpu.memory_space<vmem>>, vector<1x128xf32>
    %18 = vector.broadcast %17 : vector<1x128xf32> to vector<8x128xf32>
    %19 = arith.addf %16, %18 : vector<8x128xf32>
    %c0_17 = arith.constant 0 : index
    %c0_18 = arith.constant 0 : index
    %20 = vector.load %arg8[%c0_17, %c0_18] : memref<8x128xf32, #tpu.memory_space<vmem>>, vector<8x128xf32>
    tpu.vector_store %arg8[%c0_17, %c0_18], %19 {strides = array<i32>} : memref<8x128xf32, #tpu.memory_space<vmem>>, vector<8x128xf32>,
    return
  }
  func.func @transform_0(%arg0: i32) -> (i32, i32) {
    %c0_i32 = arith.constant 0 : i32
    %c0_i32_0 = arith.constant 0 : i32
    return %arg0, %c0_i32 : i32, i32
  }
  func.func @transform_1(%arg0: i32) -> (i32, i32) {
    %c0_i32 = arith.constant 0 : i32
    %c0_i32_0 = arith.constant 0 : i32
    %c0_i32_1 = arith.constant 0 : i32
    return %c0_i32, %c0_i32_0 : i32, i32
  }
  func.func @transform_2(%arg0: i32) -> (i32, i32) {
    %c0_i32 = arith.constant 0 : i32
    %c0_i32_0 = arith.constant 0 : i32
    %c0_i32_1 = arith.constant 0 : i32
    return %c0_i32, %c0_i32_0 : i32, i32
  }
  func.func @transform_3(%arg0: i32) -> (i32, i32) {
    %c0_i32 = arith.constant 0 : i32
    %c0_i32_0 = arith.constant 0 : i32
    %c0_i32_1 = arith.constant 0 : i32
    return %c0_i32, %c0_i32_0 : i32, i32
  }
  func.func @transform_4(%arg0: i32) -> (i32, i32) {
    %c0_i32 = arith.constant 0 : i32
    %c0_i32_0 = arith.constant 0 : i32
    %c0_i32_1 = arith.constant 0 : i32
    return %c0_i32, %c0_i32_0 : i32, i32
  }
  func.func @transform_5(%arg0: i32) -> (i32, i32) {
    %c0_i32 = arith.constant 0 : i32
    %c0_i32_0 = arith.constant 0 : i32
    %c0_i32_1 = arith.constant 0 : i32
    return %c0_i32, %c0_i32_0 : i32, i32
  }
  func.func @transform_6(%arg0: i32) -> (i32, i32) {
    %c0_i32 = arith.constant 0 : i32
    %c0_i32_0 = arith.constant 0 : i32
    %c0_i32_1 = arith.constant 0 : i32
    return %c0_i32, %c0_i32_0 : i32, i32
  }
  func.func @transform_7(%arg0: i32) -> (i32, i32) {
    %c0_i32 = arith.constant 0 : i32
    %c0_i32_0 = arith.constant 0 : i32
    return %arg0, %c0_i32 : i32, i32
  }
}

</mosaic_0001>

<bundles_post_ra>
// kernel: net_forward.3
= control target key start
LH: loop header
LB: loop body
LE: loop exit
PB: predicated region body
PF: predicated region fallthrough
CT: control target
= control target key end

     0   :  { %vm727_vm0 = vmmov 0   ;;  %s1097_s1 = inlined_call_operand.vmem [shape: f32[512,128], index: 1, kind: input, shape index: {}]   ;;  %s1098_s0 = inlined_call_operand.vmem [shape: f32[8,512], index: 0, kind: input, shape index: {}]   ;;  %s1099_s3 = inlined_call_operand.vmem [shape: f32[128,128], index: 3, kind: input, shape index: {}]   ;;  %s1100_s5 = inlined_call_operand.vmem [shape: f32[128,128], index: 5, kind: input, shape index: {}]   ;;  %s1101_s2 = inlined_call_operand.vmem [shape: f32[1,128], index: 2, kind: input, shape index: {}]   ;;  %s1102_s4 = inlined_call_operand.vmem [shape: f32[1,128], index: 4, kind: input, shape index: {}]   ;;  %s1103_s6 = inlined_call_operand.vmem [shape: f32[1,128], index: 6, kind: input, shape index: {}]   ;;  %s1104_s7 = inlined_call_operand.vmem [shape: f32[8,128], index: 7, kind: output, shape index: {}]  }
   0x1   :  { %v46_v0 = vld [vmem:[%s1097_s1 + $0x80] sm:$0xff]  ;;  %v47_v1 = vld [vmem:[%s1097_s1 + $0x88] sm:$0xff]  ;;  %v48_v11 = vld [vmem:[%s1097_s1 + $0x90] sm:$0xff] }
   0x2   :  { %v30_v2 = vld [vmem:[%s1097_s1] sm:$0xff]  ;;  %v611_v3 = vpack.c.bf16 %v47_v1, %v46_v0  ;;  %v31_v4 = vld [vmem:[%s1097_s1 + $0x8] sm:$0xff]  ;;  %v49_v13 = vld [vmem:[%s1097_s1 + $0x98] sm:$0xff] }
   0x3   :  { %v78_v5 = vld [vmem:[%s1097_s1 + $0x180] sm:$0xff]  ;;  %v79_v6 = vld [vmem:[%s1097_s1 + $0x188] sm:$0xff]  ;;  %v613_v7 = vpack.c.bf16 %v31_v4, %v30_v2  ;;  %v32_v14 = vld [vmem:[%s1097_s1 + $0x10] sm:$0xff]  ;;  %v615_v16 = vpack.c.bf16 %v49_v13, %v48_v11 }
   0x4   :  { %v643_v8 = vpack.c.bf16 %v79_v6, %v78_v5  ;;  %v62_v9 = vld [vmem:[%s1097_s1 + $0x100] sm:$0xff]  ;;  %v63_v10 = vld [vmem:[%s1097_s1 + $0x108] sm:$0xff]  ;;  %612 = vmatprep.subr.bf16.mxu0 %v611_v3  ;;  %v33_v15 = vld [vmem:[%s1097_s1 + $0x18] sm:$0xff] }
   0x5   :  { %v645_v12 = vpack.c.bf16 %v63_v10, %v62_v9  ;;  %614 = vmatpush3.bf16.msra.mxu0 %v613_v7  ;;  %v617_v17 = vpack.c.bf16 %v33_v15, %v32_v14  ;;  %v80_v18 = vld [vmem:[%s1097_s1 + $0x190] sm:$0xff]  ;;  %v81_v19 = vld [vmem:[%s1097_s1 + $0x198] sm:$0xff]  ;;  %v50_v23 = vld [vmem:[%s1097_s1 + $0xa0] sm:$0xff] }
   0x6   :  { %644 = vmatprep.subr.bf16.mxu1 %v643_v8  ;;  %v64_v20 = vld [vmem:[%s1097_s1 + $0x110] sm:$0xff]  ;;  %v647_v21 = vpack.c.bf16 %v81_v19, %v80_v18  ;;  %v65_v22 = vld [vmem:[%s1097_s1 + $0x118] sm:$0xff]  ;;  %v51_v24 = vld [vmem:[%s1097_s1 + $0xa8] sm:$0xff]  ;;  %616 = vmatprep.subr.bf16.mxu0 %v615_v16 }
   0x7   :  { %646 = vmatpush3.bf16.msra.mxu1 %v645_v12  ;;  %v649_v25 = vpack.c.bf16 %v65_v22, %v64_v20  ;;  %v619_v26 = vpack.c.bf16 %v51_v24, %v50_v23  ;;  %v34_v27 = vld [vmem:[%s1097_s1 + $0x20] sm:$0xff]  ;;  %v35_v28 = vld [vmem:[%s1097_s1 + $0x28] sm:$0xff]  ;;  %v52_v35 = vld [vmem:[%s1097_s1 + $0xb0] sm:$0xff] }
   0x8   :  { %v82_v29 = vld [vmem:[%s1097_s1 + $0x1a0] sm:$0xff]  ;;  %648 = vmatprep.subr.bf16.mxu1 %v647_v21  ;;  %v83_v30 = vld [vmem:[%s1097_s1 + $0x1a8] sm:$0xff]  ;;  %v621_v33 = vpack.c.bf16 %v35_v28, %v34_v27  ;;  %v53_v36 = vld [vmem:[%s1097_s1 + $0xb8] sm:$0xff] }
   0x9   :  { %v66_v31 = vld [vmem:[%s1097_s1 + $0x120] sm:$0xff]  ;;  %v67_v32 = vld [vmem:[%s1097_s1 + $0x128] sm:$0xff]  ;;  %618 = vmatpush3.bf16.msra.mxu0 %v617_v17  ;;  %v651_v34 = vpack.c.bf16 %v83_v30, %v82_v29  ;;  %v36_v37 = vld [vmem:[%s1097_s1 + $0x30] sm:$0xff]  ;;  %v623_v39 = vpack.c.bf16 %v53_v36, %v52_v35 }
   0xa   :  { %620 = vmatprep.subr.bf16.mxu0 %v619_v26  ;;  %v653_v38 = vpack.c.bf16 %v67_v32, %v66_v31  ;;  %v37_v40 = vld [vmem:[%s1097_s1 + $0x38] sm:$0xff]  ;;  %v84_v41 = vld [vmem:[%s1097_s1 + $0x1b0] sm:$0xff]  ;;  %v54_v46 = vld [vmem:[%s1097_s1 + $0xc0] sm:$0xff] }
   0xb   :  { %650 = vmatpush3.bf16.msra.mxu1 %v649_v25  ;;  %v85_v42 = vld [vmem:[%s1097_s1 + $0x1b8] sm:$0xff]  ;;  %v68_v44 = vld [vmem:[%s1097_s1 + $0x130] sm:$0xff]  ;;  %v55_v47 = vld [vmem:[%s1097_s1 + $0xc8] sm:$0xff]  ;;  %v625_v48 = vpack.c.bf16 %v37_v40, %v36_v37 }
   0xc   :  { %652 = vmatprep.subr.bf16.mxu1 %v651_v34  ;;  %v655_v43 = vpack.c.bf16 %v85_v42, %v84_v41  ;;  %v69_v45 = vld [vmem:[%s1097_s1 + $0x138] sm:$0xff]  ;;  %v86_v49 = vld [vmem:[%s1097_s1 + $0x1c0] sm:$0xff]  ;;  %v87_v50 = vld [vmem:[%s1097_s1 + $0x1c8] sm:$0xff]  ;;  %v627_v52 = vpack.c.bf16 %v55_v47, %v54_v46 }
   0xd   :  { %622 = vmatpush3.bf16.msra.mxu0 %v621_v33  ;;  %v657_v51 = vpack.c.bf16 %v69_v45, %v68_v44  ;;  %v38_v53 = vld [vmem:[%s1097_s1 + $0x40] sm:$0xff]  ;;  %v39_v54 = vld [vmem:[%s1097_s1 + $0x48] sm:$0xff]  ;;  %v659_v56 = vpack.c.bf16 %v87_v50, %v86_v49  ;;  %v56_v58 = vld [vmem:[%s1097_s1 + $0xd0] sm:$0xff] }
   0xe   :  { %624 = vmatprep.subr.bf16.mxu0 %v623_v39  ;;  %v70_v55 = vld [vmem:[%s1097_s1 + $0x140] sm:$0xff]  ;;  %v71_v57 = vld [vmem:[%s1097_s1 + $0x148] sm:$0xff]  ;;  %v57_v59 = vld [vmem:[%s1097_s1 + $0xd8] sm:$0xff]  ;;  %v629_v62 = vpack.c.bf16 %v39_v54, %v38_v53  ;;  %v726_v39 = vmov 0.0|0.0  }
   0xf   :  { %654 = vmatpush3.bf16.msra.mxu1 %v653_v38  ;;  %v88_v60 = vld [vmem:[%s1097_s1 + $0x1d0] sm:$0xff]  ;;  %v89_v61 = vld [vmem:[%s1097_s1 + $0x1d8] sm:$0xff]  ;;  %v661_v63 = vpack.c.bf16 %v71_v57, %v70_v55  ;;  %v631_v0 = vpack.c.bf16 %v57_v59, %v56_v58  ;;  %v58_v6 = vld [vmem:[%s1097_s1 + $0xe0] sm:$0xff] }
  0x10   :  { %656 = vmatprep.subr.bf16.mxu1 %v655_v43  ;;  %v40_v1 = vld [vmem:[%s1097_s1 + $0x50] sm:$0xff]  ;;  %v41_v2 = vld [vmem:[%s1097_s1 + $0x58] sm:$0xff]  ;;  %v663_v4 = vpack.c.bf16 %v89_v61, %v88_v60  ;;  %v59_v7 = vld [vmem:[%s1097_s1 + $0xe8] sm:$0xff]  ;;  %v728_v61 = vmov 0.0  }
  0x11   :  { %626 = vmatpush3.bf16.msra.mxu0 %v625_v48  ;;  %v72_v3 = vld [vmem:[%s1097_s1 + $0x150] sm:$0xff]  ;;  %v73_v5 = vld [vmem:[%s1097_s1 + $0x158] sm:$0xff]  ;;  %v90_v8 = vld [vmem:[%s1097_s1 + $0x1e0] sm:$0xff]  ;;  %v633_v10 = vpack.c.bf16 %v41_v2, %v40_v1  ;;  %v635_v14 = vpack.c.bf16 %v59_v7, %v58_v6 }
  0x12   :  { %628 = vmatprep.subr.bf16.mxu0 %v627_v52  ;;  %v91_v9 = vld [vmem:[%s1097_s1 + $0x1e8] sm:$0xff]  ;;  %v42_v11 = vld [vmem:[%s1097_s1 + $0x60] sm:$0xff]  ;;  %v665_v13 = vpack.c.bf16 %v73_v5, %v72_v3  ;;  %v60_v19 = vld [vmem:[%s1097_s1 + $0xf0] sm:$0xff] }
  0x13   :  { %658 = vmatpush3.bf16.msra.mxu1 %v657_v51  ;;  %v43_v12 = vld [vmem:[%s1097_s1 + $0x68] sm:$0xff]  ;;  %v74_v15 = vld [vmem:[%s1097_s1 + $0x160] sm:$0xff]  ;;  %v667_v18 = vpack.c.bf16 %v91_v9, %v90_v8  ;;  %v61_v20 = vld [vmem:[%s1097_s1 + $0xf8] sm:$0xff] }
  0x14   :  { %660 = vmatprep.subr.bf16.mxu1 %v659_v56  ;;  %v75_v16 = vld [vmem:[%s1097_s1 + $0x168] sm:$0xff]  ;;  %v29_v21 = vld [vmem:[%s1098_s0 + $0x18] sm:$0xff]  ;;  %v92_v22 = vld [vmem:[%s1097_s1 + $0x1f0] sm:$0xff]  ;;  %v637_v24 = vpack.c.bf16 %v43_v12, %v42_v11  ;;  %v639_v26 = vpack.c.bf16 %v61_v20, %v60_v19 }
  0x15   :  { %630 = vmatpush3.bf16.msra.mxu0 %v629_v62  ;;  %v27_v17 = vld [vmem:[%s1098_s0 + $0x8] sm:$0xff]  ;;  %v93_v23 = vld [vmem:[%s1097_s1 + $0x1f8] sm:$0xff]  ;;  %235 = vmatprep.mubr.f32.mxu1 %v29_v21  ;;  %v669_v25 = vpack.c.bf16 %v75_v16, %v74_v15  ;;  %v44_v27 = vld [vmem:[%s1097_s1 + $0x70] sm:$0xff] }
  0x16   :  { %632 = vmatprep.subr.bf16.mxu0 %v631_v0  ;;  %165 = vmatprep.mubr.f32.mxu0 %v27_v17  ;;  %v45_v28 = vld [vmem:[%s1097_s1 + $0x78] sm:$0xff]  ;;  %v671_v29 = vpack.c.bf16 %v93_v23, %v92_v22  ;;  %v76_v30 = vld [vmem:[%s1097_s1 + $0x170] sm:$0xff]  ;;  %v242_v34 = vld [vmem:[%s1099_s3] sm:$0xff] }
  0x17   :  { %662 = vmatpush3.bf16.msra.mxu1 %v661_v63  ;;  %v77_v31 = vld [vmem:[%s1097_s1 + $0x178] sm:$0xff]  ;;  %v641_v32 = vpack.c.bf16 %v45_v28, %v44_v27  ;;  %v243_v35 = vld [vmem:[%s1099_s3 + $0x8] sm:$0xff]  ;;  %v26_v36 = vld [vmem:[%s1098_s0] sm:$0xff] }
  0x18   :  { %664 = vmatprep.subr.bf16.mxu1 %v663_v4  ;;  %v673_v33 = vpack.c.bf16 %v77_v31, %v76_v30  ;;  %v676_v37 = vpack.c.bf16 %v243_v35, %v242_v34  ;;  %v28_v38 = vld [vmem:[%s1098_s0 + $0x10] sm:$0xff]  ;;  %v245_v41 = vld [vmem:[%s1099_s3 + $0x18] sm:$0xff]  ;;  %v246_v43 = vld [vmem:[%s1099_s3 + $0x20] sm:$0xff] }
  0x19   :  { %634 = vmatpush3.bf16.msra.mxu0 %v633_v10  ;;  %v244_v40 = vld [vmem:[%s1099_s3 + $0x10] sm:$0xff]  ;;  %v247_v44 = vld [vmem:[%s1099_s3 + $0x28] sm:$0xff]  ;;  %v249_v47 = vld [vmem:[%s1099_s3 + $0x38] sm:$0xff] }
  0x1a   :  { %636 = vmatprep.subr.bf16.mxu0 %v635_v14  ;;  %v679_v42 = vpack.c.bf16 %v245_v41, %v244_v40  ;;  %v682_v45 = vpack.c.bf16 %v247_v44, %v246_v43  ;;  %v248_v46 = vld [vmem:[%s1099_s3 + $0x30] sm:$0xff]  ;;  %v250_v49 = vld [vmem:[%s1099_s3 + $0x40] sm:$0xff]  ;;  %v251_v50 = vld [vmem:[%s1099_s3 + $0x48] sm:$0xff] }
  0x1b   :  { %666 = vmatpush3.bf16.msra.mxu1 %v665_v13  ;;  %v685_v48 = vpack.c.bf16 %v249_v47, %v248_v46  ;;  %v688_v51 = vpack.c.bf16 %v251_v50, %v250_v49  ;;  %v252_v52 = vld [vmem:[%s1099_s3 + $0x50] sm:$0xff]  ;;  %v253_v53 = vld [vmem:[%s1099_s3 + $0x58] sm:$0xff]  ;;  %v254_v55 = vld [vmem:[%s1099_s3 + $0x60] sm:$0xff] }
  0x1c   :  { %668 = vmatprep.subr.bf16.mxu1 %v667_v18  ;;  %v691_v54 = vpack.c.bf16 %v253_v53, %v252_v52  ;;  %v255_v56 = vld [vmem:[%s1099_s3 + $0x68] sm:$0xff]  ;;  %v256_v58 = vld [vmem:[%s1099_s3 + $0x70] sm:$0xff]  ;;  %v257_v59 = vld [vmem:[%s1099_s3 + $0x78] sm:$0xff] }
  0x1d   :  { %638 = vmatpush3.bf16.msra.mxu0 %v637_v24  ;;  %v694_v57 = vpack.c.bf16 %v255_v56, %v254_v55  ;;  %v697_v60 = vpack.c.bf16 %v257_v59, %v256_v58  ;;  %v336_v62 = vld [vmem:[%s1100_s5] sm:$0xff]  ;;  %v337_v63 = vld [vmem:[%s1100_s5 + $0x8] sm:$0xff]  ;;  %v338_v0 = vld [vmem:[%s1100_s5 + $0x10] sm:$0xff] }
  0x1e   :  { %640 = vmatprep.subr.bf16.mxu0 %v639_v26  ;;  %v700_v1 = vpack.c.bf16 %v337_v63, %v336_v62  ;;  %v339_v2 = vld [vmem:[%s1100_s5 + $0x18] sm:$0xff]  ;;  %v340_v4 = vld [vmem:[%s1100_s5 + $0x20] sm:$0xff]  ;;  %v341_v5 = vld [vmem:[%s1100_s5 + $0x28] sm:$0xff] }
  0x1f   :  { %670 = vmatpush3.bf16.msra.mxu1 %v669_v25  ;;  %v703_v3 = vpack.c.bf16 %v339_v2, %v338_v0  ;;  %v706_v6 = vpack.c.bf16 %v341_v5, %v340_v4  ;;  %v342_v7 = vld [vmem:[%s1100_s5 + $0x30] sm:$0xff]  ;;  %v343_v8 = vld [vmem:[%s1100_s5 + $0x38] sm:$0xff]  ;;  %v344_v10 = vld [vmem:[%s1100_s5 + $0x40] sm:$0xff] }
  0x20   :  { %672 = vmatprep.subr.bf16.mxu1 %v671_v29  ;;  %v709_v9 = vpack.c.bf16 %v343_v8, %v342_v7  ;;  %v345_v11 = vld [vmem:[%s1100_s5 + $0x48] sm:$0xff]  ;;  %v346_v13 = vld [vmem:[%s1100_s5 + $0x50] sm:$0xff]  ;;  %v347_v14 = vld [vmem:[%s1100_s5 + $0x58] sm:$0xff] }
  0x21   :  { %642 = vmatpush3.bf16.msra.mxu0 %v641_v32  ;;  %v712_v12 = vpack.c.bf16 %v345_v11, %v344_v10  ;;  %v715_v15 = vpack.c.bf16 %v347_v14, %v346_v13  ;;  %v348_v16 = vld [vmem:[%s1100_s5 + $0x60] sm:$0xff]  ;;  %v349_v17 = vld [vmem:[%s1100_s5 + $0x68] sm:$0xff]  ;;  %v350_v29 = vld [vmem:[%s1100_s5 + $0x70] sm:$0xff] }
  0x22   :  { %675 = vmatprep.subr.bf16.mxu0 %v726_v39  ;;  %v718_v18 = vpack.c.bf16 %v349_v17, %v348_v16  ;;  %v434_v20 = vld [vmem:[%s1101_s2] ss:$0 sm:$0xff]  ;;  %v351_v30 = vld [vmem:[%s1100_s5 + $0x78] sm:$0xff] }
  0x23   :  { %674 = vmatpush3.bf16.msra.mxu1 %v673_v33  ;;  %v721_v31 = vpack.c.bf16 %v351_v30, %v350_v29  ;;  %v435_v32 = vld [vmem:[%s1102_s4] ss:$0 sm:$0xff] }
  0x24   :  { %699 = vmatprep.subr.bf16.mxu1 %v726_v39  ;;  %166 = vmatmul.mubr.f32.vlgmr.msra.gmra.mrb[0].mxu0 %v26_v36 }
  0x25   :  { %677 = vmatpush3.bf16.msra.mxu0 %v676_v37  ;;  %573 = vmatprep.mubr.msk.f32.mxu0 %vm727_vm0, %v728_v61  ;;  %v436_v37 = vld [vmem:[%s1103_s6] ss:$0 sm:$0xff] }
  0x26   :  { %236 = vmatmul.mubr.f32.vlgmr.msra.gmra.mrb[0].mxu1 %v28_v38  ;;  %678 = vmatprep.subr.bf16.mxu0 %v726_v39 }
  0x27   :  { %608 = vmatprep.mubr.msk.f32.mxu1 %vm727_vm0, %v728_v61  ;;  %701 = vmatpush3.bf16.msra.mxu1 %v700_v1 }
  0x28   :  { %702 = vmatprep.subr.bf16.mxu1 %v726_v39 }
  0x29   :  { %680 = vmatpush3.bf16.msra.mxu0 %v679_v42 }
  0x2a   :  { %681 = vmatprep.subr.bf16.mxu0 %v726_v39 }
  0x2b   :  { %704 = vmatpush3.bf16.msra.mxu1 %v703_v3 }
  0x2c   :  { %705 = vmatprep.subr.bf16.mxu1 %v726_v39 }
  0x2d   :  { %683 = vmatpush3.bf16.msra.mxu0 %v682_v45 }
  0x2e   :  { %684 = vmatprep.subr.bf16.mxu0 %v726_v39 }
  0x2f   :  { %707 = vmatpush3.bf16.msra.mxu1 %v706_v6 }
  0x30   :  { %708 = vmatprep.subr.bf16.mxu1 %v726_v39 }
  0x31   :  { %686 = vmatpush3.bf16.msra.mxu0 %v685_v48 }
  0x32   :  { %687 = vmatprep.subr.bf16.mxu0 %v726_v39 }
  0x33   :  { %710 = vmatpush3.bf16.msra.mxu1 %v709_v9 }
  0x34   :  { %711 = vmatprep.subr.bf16.mxu1 %v726_v39 }
  0x35   :  { %689 = vmatpush3.bf16.msra.mxu0 %v688_v51 }
  0x36   :  { %690 = vmatprep.subr.bf16.mxu0 %v726_v39 }
  0x37   :  { %713 = vmatpush3.bf16.msra.mxu1 %v712_v12 }
  0x38   :  { %714 = vmatprep.subr.bf16.mxu1 %v726_v39 }
  0x39   :  { %692 = vmatpush3.bf16.msra.mxu0 %v691_v54 }
  0x3a   :  { %693 = vmatprep.subr.bf16.mxu0 %v726_v39 }
  0x3b   :  { %716 = vmatpush3.bf16.msra.mxu1 %v715_v15 }
  0x3c   :  { %717 = vmatprep.subr.bf16.mxu1 %v726_v39 }
  0x3d   :  { %695 = vmatpush3.bf16.msra.mxu0 %v694_v57 }
  0x3e   :  { %696 = vmatprep.subr.bf16.mxu0 %v726_v39 }
  0x3f   :  { %719 = vmatpush3.bf16.msra.mxu1 %v718_v18 }
  0x40   :  { %720 = vmatprep.subr.bf16.mxu1 %v726_v39 }
  0x41   :  { %698 = vmatpush3.bf16.msra.mxu0 %v697_v60 }
  0x43   :  { %722 = vmatpush3.bf16.msra.mxu1 %v721_v31 }
  0xf7   :  { %v469_v19 = vpop.f32.mrb[0].mxu0 }
  0xf8   :  { %v470_v21 = vpop.f32.mrb[1].mxu0 }
  0xf9   :  { %v504_v22 = vpop.f32.mrb[0].mxu1  ;;  %v471_v23 = vadd.f32 %v470_v21, %v469_v19 }
  0xfa   :  { %v505_v24 = vpop.f32.mrb[1].mxu1 }
  0xfb   :  { %v506_v25 = vadd.f32 %v505_v24, %v504_v22  ;;  %v168_v26 = vadd.f32 %v471_v23, %v434_v20 }
  0xfd   :  { %v238_v27 = vadd.f32 %v506_v25, %v168_v26 }
  0xff   :  { %v241_v28 = vmax.f32 %v238_v27, 0.0 }
 0x101   :  { %574 = vmatmul.mubr.f32.vlgmr.msra.gmra.mrb[2].mxu0 %v241_v28 }
 0x1d4   :  { %v331_v33 = vpop.f32.mrb[2].mxu0 }
 0x1d5   :  { %v332_v34 = vadd.f32 %v435_v32, %v331_v33  ;;  %v575_v35 = vpop.f32.mrb[3].mxu0 }
 0x1d7   :  { %v335_v36 = vmax.f32 %v332_v34, 0.0 }
 0x1d9   :  { %609 = vmatmul.mubr.f32.vlgmr.msra.gmra.mrb[2].mxu1 %v335_v36 }
 0x2ac   :  { %v425_v38 = vpop.f32.mrb[2].mxu1 }
 0x2ad   :  { %v426_v39 = vadd.f32 %v436_v37, %v425_v38  ;;  %v610_v40 = vpop.f32.mrb[3].mxu1 }
 0x2af   :  { %429 = vst [vmem:[%s1104_s7] sm:$0xff] %v426_v39 }

// kernel: net_forward.2
= control target key start
LH: loop header
LB: loop body
LE: loop exit
PB: predicated region body
PF: predicated region fallthrough
CT: control target
= control target key end

     0   :  { %11 = vsyncpa [#allocation5], 0  ;;  %s4063_s21 = smov 0   ;;  %s5816_s0 = inlined_call_operand.vmem [shape: f32[2,3,1152], index: 0, kind: input, shape index: {}]   ;;  %s5817_s1 = inlined_call_operand.vmem [shape: f32[6,200], index: 1, kind: input, shape index: {}]   ;;  %s5818_s2 = inlined_call_operand.vmem [shape: f32[6,1], index: 2, kind: input, shape index: {}]   ;;  %s5819_s3 = inlined_call_operand.vmem [shape: f32[16,200], index: 3, kind: input, shape index: {}]   ;;  %s5820_s4 = inlined_call_operand.vmem [shape: f32[16,1], index: 4, kind: input, shape index: {}]   ;;  %s5821_s5 = inlined_call_operand.hbm [shape: f32[574,128], index: 5, kind: input, shape index: {}]   ;;  %s5822_s6 = inlined_call_operand.vmem [shape: f32[2,16,128], index: 6, kind: output, shape index: {}]  }
   0x1 LB: > { %s4069_s22 = sadd.s32 4294967295, %s3996_s21   ;;  %p3331_p0 = scmp.ge.s32.totalorder %s3996_s21, 1  ;;  %s3996_s21 = sphi %s4063_s21, %s17_s21  }
   0x2   : > { %p179_p1 = scmp.lt.s32.totalorder %s3996_s21, 3  ;;  %s3998_s23 = smov [#allocation4]  }
   0x3   : > { %s203_s24 = sshll.u32 %s3998_s23, 4  ;;  %p5823_p3 = scmp.eq.s32.totalorder %s4069_s22, 0  ;;  %s204_s24 = int_to_ptr.vmem [resolvable:$true] %s203_s24 }
   0x4   : > { %p4073_p2 = pnand %p3331_p0, %p179_p1  ;;  %s3958_s29 = scalar_lea.hbm %s5821_s5, 9216 }
   0x5   : > { %p3959_p6 = scmp.ne.s32.totalorder %s5821_s5, %s3958_s29  ;;  %p3965_p10 = scmp.lt.u32.totalorder %s3958_s29, %s5821_s5 }
   0x6   : > { %s5836_s25 = scalar_select %p4073_p2, 1, 0 }
   0x7   : > { %p3871_p4 = pneg %p4073_p2 }
   0x9   : > { %p4082_p5 = pnand %p5823_p3, %p3871_p4 }
   0xb   : > { %p3960_p7 = pneg %p4082_p5 }
   0xd   : > { %p3961_p8 = pnand %p3960_p7, %p3959_p6 }
   0xf   : > { %p3962_p9 = pneg %p3961_p8 }
  0x11   : > { %p3967_p11 = pnand %p3965_p10, %p3962_p9 }
  0x13   : > { %3970 = shalt.err (!%p3967_p11)
}
  0x14   : > { %s3971_s10 = scalar_lea.vmem %s204_s24, 9216  ;;  %p3979_p1 = scmp.lt.s32.totalorder %s204_s24, %s204_s24 }
  0x15   : > { %p3972_p12 = scmp.ne.s32.totalorder %s204_s24, %s3971_s10  ;;  %p3980_p4 = scmp.lt.s32.totalorder %s3971_s10, %s3971_s10 }
  0x17   : > { %p3974_p13 = pnand %p3972_p12, %p3960_p7  ;;  %p3981_p3 = por %p3980_p4, %p3979_p1 }
  0x19   : > { %p3975_p0 = pneg %p3974_p13 }
  0x1b   : > { %p3982_p2 = pnand %p3981_p3, %p3975_p0 }
  0x1d   : > { %3985 = shalt.err (!%p3982_p2)
}
  0x1e   : > { %s3999_s11 = smov 128   ;;  %s4000_s12 = smov 8  }
  0x1f   : > { %3874 = dma.hbm_to_vmem [thread:$0]  (!%p4082_p5), %s5821_s5, 9216, %s204_s24, [#allocation5], %s3999_s11, %s3999_s11, %s4000_s12  }
  0x20   : > { %p5838_p6 = scmp.ne.s32.totalorder %s5836_s25, 0 }
  0x21   : > { %p5839_p8 = scmp.eq.s32.totalorder (!%p5838_p6), %s4069_s22, 0 }
  0x22   : > { %227 = sbr.rel (%p5838_p6) target bundleno = 1885 (0x75d), region = 44 }
  0x29   : > { %3991 = dma.done.wait (%p5839_p8), [#allocation5], 9216   ;;  %p5840_p7 = pmov %p5839_p8 }
  0x2a   : > { %p257_p3 = scmp.lt.s32.totalorder %s4069_s22, 1  ;;  %v4001_v0 = vmov 0.0   ;;  %s4002_s19 = smov 127   ;;  %vm274_vm0 = vcmask 523264   ;;  %vm5835_vm1 = vcmask 1031168   ;;  %vm707_vm2 = vcmask 1039360  }
  0x2b   : > { %3993 = vsyncadd (%p5840_p7), [#allocation5], 4294958080  ;;  %285 = vst [vmem:[#allocation2 + $0x88] sm:$0xff] %v4001_v0  ;;  %s4003_s20 = smov 126   ;;  %s4004_s23 = smov 125   ;;  %vm787_vm3 = vcmask 1022976  }
  0x2c   : > { %444 = vst [vmem:[#allocation2 + $0x580] sm:$0xff] %v4001_v0  ;;  %267 = vst [vmem:[#allocation2] sm:$0xff] %v4001_v0  ;;  %s5915_s22 = smov (!%p257_p3, %s4069_s22), 1  ;;  %s4005_s24 = smov 124   ;;  %vm5834_vm4 = vcmask 1014784   ;;  %vm5833_vm5 = vcmask 785408  }
  0x2d   : > { %268 = vst [vmem:[#allocation2 + $0x8] sm:$0xff] %v4001_v0  ;;  %269 = vst [vmem:[#allocation2 + $0x10] sm:$0xff] %v4001_v0  ;;  %s3866_s15 = smul.u32 36, %s5915_s22  ;;  %s4006_s25 = smov 96   ;;  %vm5826_vm6 = vcmask 777216   ;;  %vm5827_vm7 = vcmask 769024  }
  0x2e   : > { %270 = vst [vmem:[#allocation2 + $0x18] sm:$0xff] %v4001_v0  ;;  %271 = vst [vmem:[#allocation2 + $0x20] sm:$0xff] %v4001_v0  ;;  %s4007_s26 = smov 95   ;;  %s4008_s27 = smov 94   ;;  %vm5828_vm8 = vcmask 760832   ;;  %vm5829_vm9 = vcmask 752640  }
  0x2f   : > { %272 = vst [vmem:[#allocation2 + $0x28] sm:$0xff] %v4001_v0  ;;  %273 = vst [vmem:[#allocation2 + $0x30] sm:$0xff] %v4001_v0  ;;  %s4418_s18 = scalar_lea.vmem %s5816_s0, %s3866_s15  ;;  %s4009_s28 = smov 93   ;;  %vm5832_vm10 = vcmask 588800   ;;  %vm1109_vm11 = vcmask 515072   ;;  %vm1152_vm12 = vcmask 506880  }
  0x30   : > { %276 = vst [vmem:[#allocation2 + $0x40] sm:$0xff] %v4001_v0  ;;  %277 = vst [vmem:[#allocation2 + $0x48] sm:$0xff] %v4001_v0  ;;  %v4421_v1 = vld [vmem:[%s4418_s18 + $0x8] sm:$0x77]  ;;  %v4424_v2 = vld [vmem:[%s4418_s18] sm:$0x77] }
  0x31   : > { %278 = vst [vmem:[#allocation2 + $0x50] sm:$0xff] %v4001_v0  ;;  %279 = vst [vmem:[#allocation2 + $0x58] sm:$0xff] %v4001_v0  ;;  %695 = vrot.lane.b32.xlu0 %v4421_v1, %s4002_s19  ;;  %691 = vrot.lane.b32.xlu1 %v4424_v2, %s4002_s19  ;;  %v4432_v3 = vcombine.high %v4424_v2, %v4424_v2  ;;  %v4436_v4 = vcombine.high %v4421_v1, %v4421_v1  ;;  %v4439_v5 = vld [vmem:[%s4418_s18 + $0x10] sm:$0x77]  ;;  %s4010_s29 = smov 92   ;;  %s4011_s30 = smov 64  }
  0x32   : > { %280 = vst [vmem:[#allocation2 + $0x60] sm:$0xff] %v4001_v0  ;;  %281 = vst [vmem:[#allocation2 + $0x68] sm:$0xff] %v4001_v0  ;;  %v4492_v6 = vcombine.high %v4439_v5, %v4439_v5  ;;  %v4551_v7 = vld [vmem:[%s4418_s18 + $0x18] sm:$0x77]  ;;  %s4012_s7 = smov 63   ;;  %s4013_s8 = smov 62  }
  0x33   : > { %282 = vst [vmem:[#allocation2 + $0x70] sm:$0xff] %v4001_v0  ;;  %284 = vst [vmem:[#allocation2 + $0x80] sm:$0xff] %v4001_v0  ;;  %s4014_s9 = smov 61   ;;  %v4605_v8 = vcombine.high %v4551_v7, %v4551_v7  ;;  %s4015_s10 = smov 60   ;;  %vm1195_vm13 = vcmask 498688   ;;  %vm5825_vm14 = vcmask 518144  }
  0x34   : > { %286 = vst [vmem:[#allocation2 + $0x90] sm:$0xff] %v4001_v0  ;;  %287 = vst [vmem:[#allocation2 + $0x98] sm:$0xff] %v4001_v0  ;;  %s4016_s11 = smov 32   ;;  %s4017_s12 = smov 31   ;;  %vm1238_vm15 = vcmask 490496  }
  0x35   : > { %288 = vst [vmem:[#allocation2 + $0xa0] sm:$0xff] %v4001_v0  ;;  %289 = vst [vmem:[#allocation2 + $0xa8] sm:$0xff] %v4001_v0  ;;  %735 = vrot.lane.b32.xlu0 %v4421_v1, %s4003_s20  ;;  %733 = vrot.lane.b32.xlu1 %v4432_v3, %s4003_s20  ;;  %s4018_s13 = smov 30   ;;  %s4019_s14 = smov 29  }
  0x36   : > { %290 = vst [vmem:[#allocation2 + $0xb0] sm:$0xff] %v4001_v0  ;;  %292 = vst [vmem:[#allocation2 + $0xc0] sm:$0xff] %v4001_v0  ;;  %s4020_s15 = smov 28  }
  0x37   : > { %293 = vst [vmem:[#allocation2 + $0xc8] sm:$0xff] %v4001_v0  ;;  %294 = vst [vmem:[#allocation2 + $0xd0] sm:$0xff] %v4001_v0 }
  0x38   : > { %295 = vst [vmem:[#allocation2 + $0xd8] sm:$0xff] %v4001_v0  ;;  %296 = vst [vmem:[#allocation2 + $0xe0] sm:$0xff] %v4001_v0 }
  0x39   : > { %297 = vst [vmem:[#allocation2 + $0xe8] sm:$0xff] %v4001_v0  ;;  %298 = vst [vmem:[#allocation2 + $0xf0] sm:$0xff] %v4001_v0  ;;  %773 = vrot.lane.b32.xlu1 %v4432_v3, %s4004_s23  ;;  %693 = vrot.lane.b32.xlu0 %v4432_v3, %s4002_s19 }
  0x3a   : > { %300 = vst [vmem:[#allocation2 + $0x100] sm:$0xff] %v4001_v0  ;;  %301 = vst [vmem:[#allocation2 + $0x108] sm:$0xff] %v4001_v0 }
  0x3b   : > { %302 = vst [vmem:[#allocation2 + $0x110] sm:$0xff] %v4001_v0  ;;  %303 = vst [vmem:[#allocation2 + $0x118] sm:$0xff] %v4001_v0 }
  0x3c   : > { %304 = vst [vmem:[#allocation2 + $0x120] sm:$0xff] %v4001_v0  ;;  %305 = vst [vmem:[#allocation2 + $0x128] sm:$0xff] %v4001_v0 }
  0x3d   : > { %306 = vst [vmem:[#allocation2 + $0x130] sm:$0xff] %v4001_v0  ;;  %308 = vst [vmem:[#allocation2 + $0x140] sm:$0xff] %v4001_v0  ;;  %731 = vrot.lane.b32.xlu1 %v4424_v2, %s4003_s20  ;;  %775 = vrot.lane.b32.xlu0 %v4421_v1, %s4004_s23 }
  0x3e   : > { %309 = vst [vmem:[#allocation2 + $0x148] sm:$0xff] %v4001_v0  ;;  %310 = vst [vmem:[#allocation2 + $0x150] sm:$0xff] %v4001_v0 }
  0x3f   : > { %311 = vst [vmem:[#allocation2 + $0x158] sm:$0xff] %v4001_v0  ;;  %312 = vst [vmem:[#allocation2 + $0x160] sm:$0xff] %v4001_v0 }
  0x40   : > { %313 = vst [vmem:[#allocation2 + $0x168] sm:$0xff] %v4001_v0  ;;  %314 = vst [vmem:[#allocation2 + $0x170] sm:$0xff] %v4001_v0 }
  0x41   : > { %316 = vst [vmem:[#allocation2 + $0x180] sm:$0xff] %v4001_v0  ;;  %317 = vst [vmem:[#allocation2 + $0x188] sm:$0xff] %v4001_v0  ;;  %813 = vrot.lane.b32.xlu1 %v4432_v3, %s4005_s24  ;;  %771 = vrot.lane.b32.xlu0 %v4424_v2, %s4004_s23 }
  0x42   : > { %318 = vst [vmem:[#allocation2 + $0x190] sm:$0xff] %v4001_v0  ;;  %319 = vst [vmem:[#allocation2 + $0x198] sm:$0xff] %v4001_v0 }
  0x43   : > { %320 = vst [vmem:[#allocation2 + $0x1a0] sm:$0xff] %v4001_v0  ;;  %321 = vst [vmem:[#allocation2 + $0x1a8] sm:$0xff] %v4001_v0 }
  0x44   : > { %322 = vst [vmem:[#allocation2 + $0x1b0] sm:$0xff] %v4001_v0  ;;  %324 = vst [vmem:[#allocation2 + $0x1c0] sm:$0xff] %v4001_v0 }
  0x45   : > { %325 = vst [vmem:[#allocation2 + $0x1c8] sm:$0xff] %v4001_v0  ;;  %326 = vst [vmem:[#allocation2 + $0x1d0] sm:$0xff] %v4001_v0  ;;  %853 = vrot.lane.b32.xlu1 %v4432_v3, %s4006_s25  ;;  %815 = vrot.lane.b32.xlu0 %v4421_v1, %s4005_s24 }
  0x46   : > { %327 = vst [vmem:[#allocation2 + $0x1d8] sm:$0xff] %v4001_v0  ;;  %328 = vst [vmem:[#allocation2 + $0x1e0] sm:$0xff] %v4001_v0 }
  0x47   : > { %329 = vst [vmem:[#allocation2 + $0x1e8] sm:$0xff] %v4001_v0  ;;  %330 = vst [vmem:[#allocation2 + $0x1f0] sm:$0xff] %v4001_v0 }
  0x48   : > { %332 = vst [vmem:[#allocation2 + $0x200] sm:$0xff] %v4001_v0  ;;  %333 = vst [vmem:[#allocation2 + $0x208] sm:$0xff] %v4001_v0 }
  0x49   : > { %334 = vst [vmem:[#allocation2 + $0x210] sm:$0xff] %v4001_v0  ;;  %335 = vst [vmem:[#allocation2 + $0x218] sm:$0xff] %v4001_v0  ;;  %811 = vrot.lane.b32.xlu1 %v4424_v2, %s4005_s24  ;;  %855 = vrot.lane.b32.xlu0 %v4421_v1, %s4006_s25 }
  0x4a   : > { %336 = vst [vmem:[#allocation2 + $0x220] sm:$0xff] %v4001_v0  ;;  %337 = vst [vmem:[#allocation2 + $0x228] sm:$0xff] %v4001_v0 }
  0x4b   : > { %338 = vst [vmem:[#allocation2 + $0x230] sm:$0xff] %v4001_v0  ;;  %340 = vst [vmem:[#allocation2 + $0x240] sm:$0xff] %v4001_v0 }
  0x4c   : > { %341 = vst [vmem:[#allocation2 + $0x248] sm:$0xff] %v4001_v0  ;;  %342 = vst [vmem:[#allocation2 + $0x250] sm:$0xff] %v4001_v0 }
  0x4d   : > { %343 = vst [vmem:[#allocation2 + $0x258] sm:$0xff] %v4001_v0  ;;  %344 = vst [vmem:[#allocation2 + $0x260] sm:$0xff] %v4001_v0  ;;  %893 = vrot.lane.b32.xlu1 %v4432_v3, %s4007_s26  ;;  %851 = vrot.lane.b32.xlu0 %v4424_v2, %s4006_s25 }
  0x4e   : > { %345 = vst [vmem:[#allocation2 + $0x268] sm:$0xff] %v4001_v0  ;;  %346 = vst [vmem:[#allocation2 + $0x270] sm:$0xff] %v4001_v0 }
  0x4f   : > { %348 = vst [vmem:[#allocation2 + $0x280] sm:$0xff] %v4001_v0  ;;  %349 = vst [vmem:[#allocation2 + $0x288] sm:$0xff] %v4001_v0 }
  0x50   : > { %350 = vst [vmem:[#allocation2 + $0x290] sm:$0xff] %v4001_v0  ;;  %351 = vst [vmem:[#allocation2 + $0x298] sm:$0xff] %v4001_v0 }
  0x51   : > { %352 = vst [vmem:[#allocation2 + $0x2a0] sm:$0xff] %v4001_v0  ;;  %353 = vst [vmem:[#allocation2 + $0x2a8] sm:$0xff] %v4001_v0  ;;  %933 = vrot.lane.b32.xlu1 %v4432_v3, %s4008_s27  ;;  %895 = vrot.lane.b32.xlu0 %v4421_v1, %s4007_s26 }
  0x52   : > { %354 = vst [vmem:[#allocation2 + $0x2b0] sm:$0xff] %v4001_v0  ;;  %356 = vst [vmem:[#allocation2 + $0x2c0] sm:$0xff] %v4001_v0 }
  0x53   : > { %357 = vst [vmem:[#allocation2 + $0x2c8] sm:$0xff] %v4001_v0  ;;  %358 = vst [vmem:[#allocation2 + $0x2d0] sm:$0xff] %v4001_v0 }
  0x54   : > { %359 = vst [vmem:[#allocation2 + $0x2d8] sm:$0xff] %v4001_v0  ;;  %360 = vst [vmem:[#allocation2 + $0x2e0] sm:$0xff] %v4001_v0 }
  0x55   : > { %361 = vst [vmem:[#allocation2 + $0x2e8] sm:$0xff] %v4001_v0  ;;  %362 = vst [vmem:[#allocation2 + $0x2f0] sm:$0xff] %v4001_v0  ;;  %891 = vrot.lane.b32.xlu1 %v4424_v2, %s4007_s26  ;;  %935 = vrot.lane.b32.xlu0 %v4421_v1, %s4008_s27 }
  0x56   : > { %364 = vst [vmem:[#allocation2 + $0x300] sm:$0xff] %v4001_v0  ;;  %365 = vst [vmem:[#allocation2 + $0x308] sm:$0xff] %v4001_v0 }
  0x57   : > { %366 = vst [vmem:[#allocation2 + $0x310] sm:$0xff] %v4001_v0  ;;  %367 = vst [vmem:[#allocation2 + $0x318] sm:$0xff] %v4001_v0 }
  0x58   : > { %368 = vst [vmem:[#allocation2 + $0x320] sm:$0xff] %v4001_v0  ;;  %369 = vst [vmem:[#allocation2 + $0x328] sm:$0xff] %v4001_v0 }
  0x59   : > { %370 = vst [vmem:[#allocation2 + $0x330] sm:$0xff] %v4001_v0  ;;  %372 = vst [vmem:[#allocation2 + $0x340] sm:$0xff] %v4001_v0  ;;  %973 = vrot.lane.b32.xlu1 %v4432_v3, %s4009_s28  ;;  %931 = vrot.lane.b32.xlu0 %v4424_v2, %s4008_s27 }
  0x5a   : > { %373 = vst [vmem:[#allocation2 + $0x348] sm:$0xff] %v4001_v0  ;;  %374 = vst [vmem:[#allocation2 + $0x350] sm:$0xff] %v4001_v0 }
  0x5b   : > { %375 = vst [vmem:[#allocation2 + $0x358] sm:$0xff] %v4001_v0  ;;  %376 = vst [vmem:[#allocation2 + $0x360] sm:$0xff] %v4001_v0 }
  0x5c   : > { %377 = vst [vmem:[#allocation2 + $0x368] sm:$0xff] %v4001_v0  ;;  %378 = vst [vmem:[#allocation2 + $0x370] sm:$0xff] %v4001_v0 }
  0x5d   : > { %380 = vst [vmem:[#allocation2 + $0x380] sm:$0xff] %v4001_v0  ;;  %381 = vst [vmem:[#allocation2 + $0x388] sm:$0xff] %v4001_v0  ;;  %1013 = vrot.lane.b32.xlu1 %v4432_v3, %s4010_s29  ;;  %975 = vrot.lane.b32.xlu0 %v4421_v1, %s4009_s28 }
  0x5e   : > { %382 = vst [vmem:[#allocation2 + $0x390] sm:$0xff] %v4001_v0  ;;  %383 = vst [vmem:[#allocation2 + $0x398] sm:$0xff] %v4001_v0 }
  0x5f   : > { %384 = vst [vmem:[#allocation2 + $0x3a0] sm:$0xff] %v4001_v0  ;;  %385 = vst [vmem:[#allocation2 + $0x3a8] sm:$0xff] %v4001_v0 }
  0x60   : > { %386 = vst [vmem:[#allocation2 + $0x3b0] sm:$0xff] %v4001_v0  ;;  %388 = vst [vmem:[#allocation2 + $0x3c0] sm:$0xff] %v4001_v0 }
  0x61   : > { %389 = vst [vmem:[#allocation2 + $0x3c8] sm:$0xff] %v4001_v0  ;;  %390 = vst [vmem:[#allocation2 + $0x3d0] sm:$0xff] %v4001_v0  ;;  %971 = vrot.lane.b32.xlu1 %v4424_v2, %s4009_s28  ;;  %1015 = vrot.lane.b32.xlu0 %v4421_v1, %s4010_s29 }
  0x62   : > { %391 = vst [vmem:[#allocation2 + $0x3d8] sm:$0xff] %v4001_v0  ;;  %392 = vst [vmem:[#allocation2 + $0x3e0] sm:$0xff] %v4001_v0 }
  0x63   : > { %393 = vst [vmem:[#allocation2 + $0x3e8] sm:$0xff] %v4001_v0  ;;  %394 = vst [vmem:[#allocation2 + $0x3f0] sm:$0xff] %v4001_v0 }
  0x64   : > { %396 = vst [vmem:[#allocation2 + $0x400] sm:$0xff] %v4001_v0  ;;  %397 = vst [vmem:[#allocation2 + $0x408] sm:$0xff] %v4001_v0 }
  0x65   : > { %398 = vst [vmem:[#allocation2 + $0x410] sm:$0xff] %v4001_v0  ;;  %399 = vst [vmem:[#allocation2 + $0x418] sm:$0xff] %v4001_v0  ;;  %697 = vrot.lane.b32.xlu1 %v4436_v4, %s4002_s19  ;;  %1011 = vrot.lane.b32.xlu0 %v4424_v2, %s4010_s29 }
  0x66   : > { %400 = vst [vmem:[#allocation2 + $0x420] sm:$0xff] %v4001_v0  ;;  %401 = vst [vmem:[#allocation2 + $0x428] sm:$0xff] %v4001_v0 }
  0x67   : > { %402 = vst [vmem:[#allocation2 + $0x430] sm:$0xff] %v4001_v0  ;;  %404 = vst [vmem:[#allocation2 + $0x440] sm:$0xff] %v4001_v0 }
  0x68   : > { %405 = vst [vmem:[#allocation2 + $0x448] sm:$0xff] %v4001_v0  ;;  %406 = vst [vmem:[#allocation2 + $0x450] sm:$0xff] %v4001_v0 }
  0x69   : > { %407 = vst [vmem:[#allocation2 + $0x458] sm:$0xff] %v4001_v0  ;;  %408 = vst [vmem:[#allocation2 + $0x460] sm:$0xff] %v4001_v0  ;;  %1053 = vrot.lane.b32.xlu1 %v4432_v3, %s4011_s30  ;;  %699 = vrot.lane.b32.xlu0 %v4439_v5, %s4002_s19 }
  0x6a   : > { %409 = vst [vmem:[#allocation2 + $0x468] sm:$0xff] %v4001_v0  ;;  %410 = vst [vmem:[#allocation2 + $0x470] sm:$0xff] %v4001_v0 }
  0x6b   : > { %412 = vst [vmem:[#allocation2 + $0x480] sm:$0xff] %v4001_v0  ;;  %413 = vst [vmem:[#allocation2 + $0x488] sm:$0xff] %v4001_v0 }
  0x6c   : > { %414 = vst [vmem:[#allocation2 + $0x490] sm:$0xff] %v4001_v0  ;;  %415 = vst [vmem:[#allocation2 + $0x498] sm:$0xff] %v4001_v0 }
  0x6d   : > { %416 = vst [vmem:[#allocation2 + $0x4a0] sm:$0xff] %v4001_v0  ;;  %417 = vst [vmem:[#allocation2 + $0x4a8] sm:$0xff] %v4001_v0  ;;  %1093 = vrot.lane.b32.xlu1 %v4432_v3, %s4012_s7  ;;  %1055 = vrot.lane.b32.xlu0 %v4421_v1, %s4011_s30 }
  0x6e   : > { %418 = vst [vmem:[#allocation2 + $0x4b0] sm:$0xff] %v4001_v0  ;;  %420 = vst [vmem:[#allocation2 + $0x4c0] sm:$0xff] %v4001_v0 }
  0x6f   : > { %421 = vst [vmem:[#allocation2 + $0x4c8] sm:$0xff] %v4001_v0  ;;  %422 = vst [vmem:[#allocation2 + $0x4d0] sm:$0xff] %v4001_v0 }
  0x70   : > { %423 = vst [vmem:[#allocation2 + $0x4d8] sm:$0xff] %v4001_v0  ;;  %424 = vst [vmem:[#allocation2 + $0x4e0] sm:$0xff] %v4001_v0 }
  0x71   : > { %425 = vst [vmem:[#allocation2 + $0x4e8] sm:$0xff] %v4001_v0  ;;  %426 = vst [vmem:[#allocation2 + $0x4f0] sm:$0xff] %v4001_v0  ;;  %1051 = vrot.lane.b32.xlu1 %v4424_v2, %s4011_s30  ;;  %1095 = vrot.lane.b32.xlu0 %v4421_v1, %s4012_s7 }
  0x72   : > { %428 = vst [vmem:[#allocation2 + $0x500] sm:$0xff] %v4001_v0  ;;  %429 = vst [vmem:[#allocation2 + $0x508] sm:$0xff] %v4001_v0 }
  0x73   : > { %430 = vst [vmem:[#allocation2 + $0x510] sm:$0xff] %v4001_v0  ;;  %431 = vst [vmem:[#allocation2 + $0x518] sm:$0xff] %v4001_v0 }
  0x74   : > { %432 = vst [vmem:[#allocation2 + $0x520] sm:$0xff] %v4001_v0  ;;  %433 = vst [vmem:[#allocation2 + $0x528] sm:$0xff] %v4001_v0 }
  0x75   : > { %434 = vst [vmem:[#allocation2 + $0x530] sm:$0xff] %v4001_v0  ;;  %436 = vst [vmem:[#allocation2 + $0x540] sm:$0xff] %v4001_v0  ;;  %737 = vrot.lane.b32.xlu1 %v4436_v4, %s4003_s20  ;;  %1091 = vrot.lane.b32.xlu0 %v4424_v2, %s4012_s7 }
  0x76   : > { %437 = vst [vmem:[#allocation2 + $0x548] sm:$0xff] %v4001_v0  ;;  %438 = vst [vmem:[#allocation2 + $0x550] sm:$0xff] %v4001_v0 }
  0x77   : > { %439 = vst [vmem:[#allocation2 + $0x558] sm:$0xff] %v4001_v0  ;;  %440 = vst [vmem:[#allocation2 + $0x560] sm:$0xff] %v4001_v0 }
  0x78   : > { %441 = vst [vmem:[#allocation2 + $0x568] sm:$0xff] %v4001_v0  ;;  %442 = vst [vmem:[#allocation2 + $0x570] sm:$0xff] %v4001_v0 }
  0x79   : > { %445 = vst [vmem:[#allocation2 + $0x588] sm:$0xff] %v4001_v0  ;;  %446 = vst [vmem:[#allocation2 + $0x590] sm:$0xff] %v4001_v0  ;;  %777 = vrot.lane.b32.xlu1 %v4436_v4, %s4004_s23  ;;  %739 = vrot.lane.b32.xlu0 %v4439_v5, %s4003_s20 }
  0x7a   : > { %447 = vst [vmem:[#allocation2 + $0x598] sm:$0xff] %v4001_v0  ;;  %448 = vst [vmem:[#allocation2 + $0x5a0] sm:$0xff] %v4001_v0 }
  0x7b   : > { %449 = vst [vmem:[#allocation2 + $0x5a8] sm:$0xff] %v4001_v0  ;;  %450 = vst [vmem:[#allocation2 + $0x5b0] sm:$0xff] %v4001_v0 }
  0x7c   : > { %452 = vst [vmem:[#allocation2 + $0x5c0] sm:$0xff] %v4001_v0  ;;  %453 = vst [vmem:[#allocation2 + $0x5c8] sm:$0xff] %v4001_v0 }
  0x7d   : > { %454 = vst [vmem:[#allocation2 + $0x5d0] sm:$0xff] %v4001_v0  ;;  %455 = vst [vmem:[#allocation2 + $0x5d8] sm:$0xff] %v4001_v0  ;;  %1136 = vrot.lane.b32.xlu1 %v4432_v3, %s4013_s8  ;;  %779 = vrot.lane.b32.xlu0 %v4439_v5, %s4004_s23 }
  0x7e   : > { %456 = vst [vmem:[#allocation2 + $0x5e0] sm:$0xff] %v4001_v0  ;;  %457 = vst [vmem:[#allocation2 + $0x5e8] sm:$0xff] %v4001_v0 }
  0x7f   : > { %458 = vst [vmem:[#allocation2 + $0x5f0] sm:$0xff] %v4001_v0  ;;  %460 = vst [vmem:[#allocation2 + $0x600] sm:$0xff] %v4001_v0 }
  0x80   : > { %461 = vst [vmem:[#allocation2 + $0x608] sm:$0xff] %v4001_v0  ;;  %462 = vst [vmem:[#allocation2 + $0x610] sm:$0xff] %v4001_v0 }
  0x81   : > { %463 = vst [vmem:[#allocation2 + $0x618] sm:$0xff] %v4001_v0  ;;  %464 = vst [vmem:[#allocation2 + $0x620] sm:$0xff] %v4001_v0  ;;  %1179 = vrot.lane.b32.xlu1 %v4432_v3, %s4014_s9  ;;  %1138 = vrot.lane.b32.xlu0 %v4421_v1, %s4013_s8 }
  0x82   : > { %465 = vst [vmem:[#allocation2 + $0x628] sm:$0xff] %v4001_v0  ;;  %466 = vst [vmem:[#allocation2 + $0x630] sm:$0xff] %v4001_v0 }
  0x83   : > { %468 = vst [vmem:[#allocation3] sm:$0xff] %v4001_v0  ;;  %469 = vst [vmem:[#allocation3 + $0x8] sm:$0xff] %v4001_v0 }
  0x84   : > { %470 = vst [vmem:[#allocation3 + $0x10] sm:$0xff] %v4001_v0  ;;  %471 = vst [vmem:[#allocation3 + $0x18] sm:$0xff] %v4001_v0 }
  0x85   : > { %472 = vst [vmem:[#allocation3 + $0x20] sm:$0xff] %v4001_v0  ;;  %473 = vst [vmem:[#allocation3 + $0x28] sm:$0xff] %v4001_v0  ;;  %1134 = vrot.lane.b32.xlu1 %v4424_v2, %s4013_s8  ;;  %1181 = vrot.lane.b32.xlu0 %v4421_v1, %s4014_s9 }
  0x86   : > { %474 = vst [vmem:[#allocation3 + $0x30] sm:$0xff] %v4001_v0  ;;  %475 = vst [vmem:[#allocation3 + $0x38] sm:$0xff] %v4001_v0 }
  0x87   : > { %476 = vst [vmem:[#allocation3 + $0x40] sm:$0xff] %v4001_v0  ;;  %477 = vst [vmem:[#allocation3 + $0x48] sm:$0xff] %v4001_v0 }
  0x88   : > { %478 = vst [vmem:[#allocation3 + $0x50] sm:$0xff] %v4001_v0  ;;  %479 = vst [vmem:[#allocation3 + $0x58] sm:$0xff] %v4001_v0 }
  0x89   : > { %480 = vst [vmem:[#allocation3 + $0x60] sm:$0xff] %v4001_v0  ;;  %481 = vst [vmem:[#allocation3 + $0x68] sm:$0xff] %v4001_v0  ;;  %817 = vrot.lane.b32.xlu1 %v4436_v4, %s4005_s24  ;;  %1177 = vrot.lane.b32.xlu0 %v4424_v2, %s4014_s9 }
  0x8a   : > { %482 = vst [vmem:[#allocation3 + $0x70] sm:$0xff] %v4001_v0  ;;  %483 = vst [vmem:[#allocation3 + $0x78] sm:$0xff] %v4001_v0 }
  0x8b   : > { %484 = vst [vmem:[#allocation3 + $0x80] sm:$0xff] %v4001_v0  ;;  %485 = vst [vmem:[#allocation3 + $0x88] sm:$0xff] %v4001_v0 }
  0x8c   : > { %486 = vst [vmem:[#allocation3 + $0x90] sm:$0xff] %v4001_v0  ;;  %487 = vst [vmem:[#allocation3 + $0x98] sm:$0xff] %v4001_v0 }
  0x8d   : > { %488 = vst [vmem:[#allocation3 + $0xa0] sm:$0xff] %v4001_v0  ;;  %489 = vst [vmem:[#allocation3 + $0xa8] sm:$0xff] %v4001_v0  ;;  %857 = vrot.lane.b32.xlu1 %v4436_v4, %s4006_s25  ;;  %819 = vrot.lane.b32.xlu0 %v4439_v5, %s4005_s24 }
  0x8e   : > { %490 = vst [vmem:[#allocation3 + $0xb0] sm:$0xff] %v4001_v0  ;;  %491 = vst [vmem:[#allocation3 + $0xb8] sm:$0xff] %v4001_v0 }
  0x8f   : > { %492 = vst [vmem:[#allocation3 + $0xc0] sm:$0xff] %v4001_v0  ;;  %493 = vst [vmem:[#allocation3 + $0xc8] sm:$0xff] %v4001_v0 }
  0x90   : > { %494 = vst [vmem:[#allocation3 + $0xd0] sm:$0xff] %v4001_v0  ;;  %495 = vst [vmem:[#allocation3 + $0xd8] sm:$0xff] %v4001_v0 }
  0x91   : > { %496 = vst [vmem:[#allocation3 + $0xe0] sm:$0xff] %v4001_v0  ;;  %497 = vst [vmem:[#allocation3 + $0xe8] sm:$0xff] %v4001_v0  ;;  %1222 = vrot.lane.b32.xlu1 %v4432_v3, %s4015_s10  ;;  %859 = vrot.lane.b32.xlu0 %v4439_v5, %s4006_s25 }
  0x92   : > { %498 = vst [vmem:[#allocation3 + $0xf0] sm:$0xff] %v4001_v0  ;;  %499 = vst [vmem:[#allocation3 + $0xf8] sm:$0xff] %v4001_v0 }
  0x93   : > { %500 = vst [vmem:[#allocation3 + $0x100] sm:$0xff] %v4001_v0  ;;  %501 = vst [vmem:[#allocation3 + $0x108] sm:$0xff] %v4001_v0 }
  0x94   : > { %502 = vst [vmem:[#allocation3 + $0x110] sm:$0xff] %v4001_v0  ;;  %503 = vst [vmem:[#allocation3 + $0x118] sm:$0xff] %v4001_v0 }
  0x95   : > { %504 = vst [vmem:[#allocation3 + $0x120] sm:$0xff] %v4001_v0  ;;  %505 = vst [vmem:[#allocation3 + $0x128] sm:$0xff] %v4001_v0  ;;  %1265 = vrot.lane.b32.xlu1 %v4432_v3, %s4016_s11  ;;  %1224 = vrot.lane.b32.xlu0 %v4421_v1, %s4015_s10 }
  0x96   : > { %506 = vst [vmem:[#allocation3 + $0x130] sm:$0xff] %v4001_v0  ;;  %507 = vst [vmem:[#allocation3 + $0x138] sm:$0xff] %v4001_v0 }
  0x97   : > { %508 = vst [vmem:[#allocation3 + $0x140] sm:$0xff] %v4001_v0  ;;  %509 = vst [vmem:[#allocation3 + $0x148] sm:$0xff] %v4001_v0 }
  0x98   : > { %510 = vst [vmem:[#allocation3 + $0x150] sm:$0xff] %v4001_v0  ;;  %511 = vst [vmem:[#allocation3 + $0x158] sm:$0xff] %v4001_v0 }
  0x99   : > { %512 = vst [vmem:[#allocation3 + $0x160] sm:$0xff] %v4001_v0  ;;  %513 = vst [vmem:[#allocation3 + $0x168] sm:$0xff] %v4001_v0  ;;  %1220 = vrot.lane.b32.xlu1 %v4424_v2, %s4015_s10  ;;  %1267 = vrot.lane.b32.xlu0 %v4421_v1, %s4016_s11 }
  0x9a   : > { %514 = vst [vmem:[#allocation3 + $0x170] sm:$0xff] %v4001_v0  ;;  %515 = vst [vmem:[#allocation3 + $0x178] sm:$0xff] %v4001_v0 }
  0x9b   : > { %516 = vst [vmem:[#allocation3 + $0x180] sm:$0xff] %v4001_v0  ;;  %517 = vst [vmem:[#allocation3 + $0x188] sm:$0xff] %v4001_v0 }
  0x9c   : > { %518 = vst [vmem:[#allocation3 + $0x190] sm:$0xff] %v4001_v0  ;;  %519 = vst [vmem:[#allocation3 + $0x198] sm:$0xff] %v4001_v0 }
  0x9d   : > { %520 = vst [vmem:[#allocation3 + $0x1a0] sm:$0xff] %v4001_v0  ;;  %521 = vst [vmem:[#allocation3 + $0x1a8] sm:$0xff] %v4001_v0  ;;  %897 = vrot.lane.b32.xlu1 %v4436_v4, %s4007_s26  ;;  %1263 = vrot.lane.b32.xlu0 %v4424_v2, %s4016_s11 }
  0x9e   : > { %522 = vst [vmem:[#allocation3 + $0x1b0] sm:$0xff] %v4001_v0  ;;  %523 = vst [vmem:[#allocation3 + $0x1b8] sm:$0xff] %v4001_v0 }
  0x9f   : > { %524 = vst [vmem:[#allocation3 + $0x1c0] sm:$0xff] %v4001_v0  ;;  %525 = vst [vmem:[#allocation3 + $0x1c8] sm:$0xff] %v4001_v0 }
  0xa0   : > { %526 = vst [vmem:[#allocation3 + $0x1d0] sm:$0xff] %v4001_v0  ;;  %527 = vst [vmem:[#allocation3 + $0x1d8] sm:$0xff] %v4001_v0 }
  0xa1   : > { %528 = vst [vmem:[#allocation3 + $0x1e0] sm:$0xff] %v4001_v0  ;;  %529 = vst [vmem:[#allocation3 + $0x1e8] sm:$0xff] %v4001_v0  ;;  %937 = vrot.lane.b32.xlu1 %v4436_v4, %s4008_s27  ;;  %899 = vrot.lane.b32.xlu0 %v4439_v5, %s4007_s26 }
  0xa2   : > { %530 = vst [vmem:[#allocation3 + $0x1f0] sm:$0xff] %v4001_v0  ;;  %531 = vst [vmem:[#allocation3 + $0x1f8] sm:$0xff] %v4001_v0 }
  0xa3   : > { %532 = vst [vmem:[#allocation3 + $0x200] sm:$0xff] %v4001_v0  ;;  %533 = vst [vmem:[#allocation3 + $0x208] sm:$0xff] %v4001_v0  ;;  %v4628_v9 = vpop.permute.xlu0 %695  ;;  %v692_v10 = vpop.permute.xlu1 %691 }
  0xa4   : > { %534 = vst [vmem:[#allocation3 + $0x210] sm:$0xff] %v4001_v0  ;;  %535 = vst [vmem:[#allocation3 + $0x218] sm:$0xff] %v4001_v0 }
  0xa5   : > { %536 = vst [vmem:[#allocation3 + $0x220] sm:$0xff] %v4001_v0  ;;  %537 = vst [vmem:[#allocation3 + $0x228] sm:$0xff] %v4001_v0  ;;  %1308 = vrot.lane.b32.xlu1 %v4432_v3, %s4017_s12  ;;  %939 = vrot.lane.b32.xlu0 %v4439_v5, %s4008_s27 }
  0xa6   : > { %538 = vst [vmem:[#allocation3 + $0x230] sm:$0xff] %v4001_v0  ;;  %539 = vst [vmem:[#allocation3 + $0x238] sm:$0xff] %v4001_v0 }
  0xa7   : > { %540 = vst [vmem:[#allocation3 + $0x240] sm:$0xff] %v4001_v0  ;;  %541 = vst [vmem:[#allocation3 + $0x248] sm:$0xff] %v4001_v0  ;;  %v4634_v11 = vpop.permute.xlu0 %735  ;;  %v734_v12 = vpop.permute.xlu1 %733 }
  0xa8   : > { %542 = vst [vmem:[#allocation3 + $0x250] sm:$0xff] %v4001_v0  ;;  %543 = vst [vmem:[#allocation3 + $0x258] sm:$0xff] %v4001_v0  ;;  %v749_v13 = vsel %vm5835_vm1, %v734_v12, %v4634_v11 }
  0xa9   : > { %544 = vst [vmem:[#allocation3 + $0x260] sm:$0xff] %v4001_v0  ;;  %545 = vst [vmem:[#allocation3 + $0x268] sm:$0xff] %v4001_v0  ;;  %1351 = vrot.lane.b32.xlu1 %v4432_v3, %s4018_s13  ;;  %1310 = vrot.lane.b32.xlu0 %v4421_v1, %s4017_s12 }
  0xaa   : > { %546 = vst [vmem:[#allocation3 + $0x270] sm:$0xff] %v4001_v0  ;;  %547 = vst [vmem:[#allocation3 + $0x278] sm:$0xff] %v4001_v0 }
  0xab   : > { %548 = vst [vmem:[#allocation3 + $0x280] sm:$0xff] %v4001_v0  ;;  %549 = vst [vmem:[#allocation3 + $0x288] sm:$0xff] %v4001_v0  ;;  %v774_v14 = vpop.permute.xlu1 %773  ;;  %v694_v15 = vpop.permute.xlu0 %693 }
  0xac   : > { %550 = vst [vmem:[#allocation3 + $0x290] sm:$0xff] %v4001_v0  ;;  %551 = vst [vmem:[#allocation3 + $0x298] sm:$0xff] %v4001_v0  ;;  %v708_v16 = vsel %vm707_vm2, %v692_v10, %v694_v15  ;;  %v709_v17 = vsel %vm707_vm2, %v694_v15, %v4628_v9 }
  0xad   : > { %552 = vst [vmem:[#allocation3 + $0x2a0] sm:$0xff] %v4001_v0  ;;  %553 = vst [vmem:[#allocation3 + $0x2a8] sm:$0xff] %v4001_v0  ;;  %1306 = vrot.lane.b32.xlu1 %v4424_v2, %s4017_s12  ;;  %1353 = vrot.lane.b32.xlu0 %v4421_v1, %s4018_s13 }
  0xae   : > { %554 = vst [vmem:[#allocation3 + $0x2b0] sm:$0xff] %v4001_v0  ;;  %555 = vst [vmem:[#allocation3 + $0x2b8] sm:$0xff] %v4001_v0 }
  0xaf   : > { %556 = vst [vmem:[#allocation3 + $0x2c0] sm:$0xff] %v4001_v0  ;;  %557 = vst [vmem:[#allocation3 + $0x2c8] sm:$0xff] %v4001_v0  ;;  %v732_v18 = vpop.permute.xlu1 %731  ;;  %v4649_v19 = vpop.permute.xlu0 %775 }
  0xb0   : > { %558 = vst [vmem:[#allocation3 + $0x2d0] sm:$0xff] %v4001_v0  ;;  %559 = vst [vmem:[#allocation3 + $0x2d8] sm:$0xff] %v4001_v0  ;;  %v748_v20 = vsel %vm5835_vm1, %v732_v18, %v734_v12  ;;  %v789_v21 = vsel %vm787_vm3, %v774_v14, %v4649_v19 }
  0xb1   : > { %560 = vst [vmem:[#allocation3 + $0x2e0] sm:$0xff] %v4001_v0  ;;  %561 = vst [vmem:[#allocation3 + $0x2e8] sm:$0xff] %v4001_v0  ;;  %977 = vrot.lane.b32.xlu1 %v4436_v4, %s4009_s28  ;;  %1349 = vrot.lane.b32.xlu0 %v4424_v2, %s4018_s13 }
  0xb2   : > { %562 = vst [vmem:[#allocation3 + $0x2f0] sm:$0xff] %v4001_v0  ;;  %563 = vst [vmem:[#allocation3 + $0x2f8] sm:$0xff] %v4001_v0 }
  0xb3   : > { %564 = vst [vmem:[#allocation3 + $0x300] sm:$0xff] %v4001_v0  ;;  %565 = vst [vmem:[#allocation3 + $0x308] sm:$0xff] %v4001_v0  ;;  %v814_v24 = vpop.permute.xlu1 %813  ;;  %v772_v25 = vpop.permute.xlu0 %771 }
  0xb4   : > { %566 = vst [vmem:[#allocation3 + $0x310] sm:$0xff] %v4001_v0  ;;  %567 = vst [vmem:[#allocation3 + $0x318] sm:$0xff] %v4001_v0  ;;  %v788_v26 = vsel %vm787_vm3, %v772_v25, %v774_v14 }
  0xb5   : > { %568 = vst [vmem:[#allocation3 + $0x320] sm:$0xff] %v4001_v0  ;;  %569 = vst [vmem:[#allocation3 + $0x328] sm:$0xff] %v4001_v0  ;;  %1017 = vrot.lane.b32.xlu1 %v4436_v4, %s4010_s29  ;;  %979 = vrot.lane.b32.xlu0 %v4439_v5, %s4009_s28 }
  0xb6   : > { %570 = vst [vmem:[#allocation3 + $0x330] sm:$0xff] %v4001_v0  ;;  %571 = vst [vmem:[#allocation3 + $0x338] sm:$0xff] %v4001_v0 }
  0xb7   : > { %572 = vst [vmem:[#allocation3 + $0x340] sm:$0xff] %v4001_v0  ;;  %573 = vst [vmem:[#allocation3 + $0x348] sm:$0xff] %v4001_v0  ;;  %v854_v31 = vpop.permute.xlu1 %853  ;;  %v4663_v32 = vpop.permute.xlu0 %815 }
  0xb8   : > { %574 = vst [vmem:[#allocation3 + $0x350] sm:$0xff] %v4001_v0  ;;  %575 = vst [vmem:[#allocation3 + $0x358] sm:$0xff] %v4001_v0  ;;  %v829_v33 = vsel %vm5834_vm4, %v814_v24, %v4663_v32 }
  0xb9   : > { %576 = vst [vmem:[#allocation3 + $0x360] sm:$0xff] %v4001_v0  ;;  %577 = vst [vmem:[#allocation3 + $0x368] sm:$0xff] %v4001_v0  ;;  %1394 = vrot.lane.b32.xlu1 %v4432_v3, %s4019_s14  ;;  %1019 = vrot.lane.b32.xlu0 %v4439_v5, %s4010_s29 }
  0xba   : > { %578 = vst [vmem:[#allocation3 + $0x370] sm:$0xff] %v4001_v0  ;;  %579 = vst [vmem:[#allocation3 + $0x378] sm:$0xff] %v4001_v0 }
  0xbb   : > { %580 = vst [vmem:[#allocation3 + $0x380] sm:$0xff] %v4001_v0  ;;  %581 = vst [vmem:[#allocation3 + $0x388] sm:$0xff] %v4001_v0  ;;  %v812_v37 = vpop.permute.xlu1 %811  ;;  %v4671_v38 = vpop.permute.xlu0 %855 }
  0xbc   : > { %582 = vst [vmem:[#allocation3 + $0x390] sm:$0xff] %v4001_v0  ;;  %583 = vst [vmem:[#allocation3 + $0x398] sm:$0xff] %v4001_v0  ;;  %v828_v39 = vsel %vm5834_vm4, %v812_v37, %v814_v24  ;;  %v869_v40 = vsel %vm5833_vm5, %v854_v31, %v4671_v38 }
  0xbd   : > { %584 = vst [vmem:[#allocation3 + $0x3a0] sm:$0xff] %v4001_v0  ;;  %585 = vst [vmem:[#allocation3 + $0x3a8] sm:$0xff] %v4001_v0  ;;  %1437 = vrot.lane.b32.xlu1 %v4432_v3, %s4020_s15  ;;  %1396 = vrot.lane.b32.xlu0 %v4421_v1, %s4019_s14 }
  0xbe   : > { %586 = vst [vmem:[#allocation3 + $0x3b0] sm:$0xff] %v4001_v0  ;;  %587 = vst [vmem:[#allocation3 + $0x3b8] sm:$0xff] %v4001_v0 }
  0xbf   : > { %588 = vst [vmem:[#allocation3 + $0x3c0] sm:$0xff] %v4001_v0  ;;  %589 = vst [vmem:[#allocation3 + $0x3c8] sm:$0xff] %v4001_v0  ;;  %v894_v44 = vpop.permute.xlu1 %893  ;;  %v852_v45 = vpop.permute.xlu0 %851 }
  0xc0   : > { %590 = vst [vmem:[#allocation3 + $0x3d0] sm:$0xff] %v4001_v0  ;;  %591 = vst [vmem:[#allocation3 + $0x3d8] sm:$0xff] %v4001_v0  ;;  %v868_v46 = vsel %vm5833_vm5, %v852_v45, %v854_v31 }
  0xc1   : > { %592 = vst [vmem:[#allocation3 + $0x3e0] sm:$0xff] %v4001_v0  ;;  %682 = vst [vmem:[#allocation2] sm:$0x7] %v4424_v2  ;;  %1392 = vrot.lane.b32.xlu1 %v4424_v2, %s4019_s14  ;;  %1439 = vrot.lane.b32.xlu0 %v4421_v1, %s4020_s15 }
  0xc2   : > { %684 = vst [vmem:[#allocation2 + $0x10] sm:$0x7] %v4421_v1  ;;  %1479 = vst [vmem:[#allocation2 + $0x508] sm:$0x7] %v4421_v1 }
  0xc3   : > { %686 = vst [vmem:[#allocation2 + $0x20] sm:$0x7] %v4439_v5  ;;  %1481 = vst [vmem:[#allocation2 + $0x518] sm:$0x7] %v4439_v5  ;;  %v934_v47 = vpop.permute.xlu1 %933  ;;  %v4685_v48 = vpop.permute.xlu0 %895 }
  0xc4   : > { %683 = vst [vmem:[#allocation2 + $0x8] sm:$0x7] %v4432_v3  ;;  %685 = vst [vmem:[#allocation2 + $0x18] sm:$0x7] %v4436_v4  ;;  %v909_v49 = vsel %vm5826_vm6, %v894_v44, %v4685_v48 }
  0xc5   : > { %1478 = vst [vmem:[#allocation2 + $0x500] sm:$0x7] %v4432_v3  ;;  %1480 = vst [vmem:[#allocation2 + $0x510] sm:$0x7] %v4436_v4  ;;  %1057 = vrot.lane.b32.xlu1 %v4436_v4, %s4011_s30  ;;  %1435 = vrot.lane.b32.xlu0 %v4424_v2, %s4020_s15 }
  0xc6   : > { %687 = vst [vmem:[#allocation2 + $0x28] sm:$0x7] %v4492_v6  ;;  %1482 = vst [vmem:[#allocation2 + $0x520] sm:$0x7] %v4492_v6 }
  0xc7   : > { %275 = vst.msk [vmem:[#allocation2 + $0x38] sm:$0xff] %vm274_vm0, %v4001_v0  ;;  %283 = vst.msk [vmem:[#allocation2 + $0x78] sm:$0xff] %vm274_vm0, %v4001_v0  ;;  %v892_v53 = vpop.permute.xlu1 %891  ;;  %v4693_v54 = vpop.permute.xlu0 %935 }
  0xc8   : > { %291 = vst.msk [vmem:[#allocation2 + $0xb8] sm:$0xff] %vm274_vm0, %v4001_v0  ;;  %299 = vst.msk [vmem:[#allocation2 + $0xf8] sm:$0xff] %vm274_vm0, %v4001_v0  ;;  %v1540_v23 = vld [vmem:[#allocation2] sm:$0xff]  ;;  %v908_v55 = vsel %vm5826_vm6, %v892_v53, %v894_v44  ;;  %v949_v56 = vsel %vm5827_vm7, %v934_v47, %v4693_v54 }
  0xc9   : > { %307 = vst.msk [vmem:[#allocation2 + $0x138] sm:$0xff] %vm274_vm0, %v4001_v0  ;;  %315 = vst.msk [vmem:[#allocation2 + $0x178] sm:$0xff] %vm274_vm0, %v4001_v0  ;;  %1097 = vrot.lane.b32.xlu1 %v4436_v4, %s4012_s7  ;;  %1059 = vrot.lane.b32.xlu0 %v4439_v5, %s4011_s30 }
  0xca   : > { %323 = vst.msk [vmem:[#allocation2 + $0x1b8] sm:$0xff] %vm274_vm0, %v4001_v0  ;;  %331 = vst.msk [vmem:[#allocation2 + $0x1f8] sm:$0xff] %vm274_vm0, %v4001_v0 }
  0xcb   : > { %339 = vst.msk [vmem:[#allocation2 + $0x238] sm:$0xff] %vm274_vm0, %v4001_v0  ;;  %347 = vst.msk [vmem:[#allocation2 + $0x278] sm:$0xff] %vm274_vm0, %v4001_v0  ;;  %v1541_v22 = vld [vmem:[#allocation2 + $0x8] sm:$0xff]  ;;  %v974_v60 = vpop.permute.xlu1 %973  ;;  %v932_v61 = vpop.permute.xlu0 %931 }
  0xcc   : > { %355 = vst.msk [vmem:[#allocation2 + $0x2b8] sm:$0xff] %vm274_vm0, %v4001_v0  ;;  %363 = vst.msk [vmem:[#allocation2 + $0x2f8] sm:$0xff] %vm274_vm0, %v4001_v0  ;;  %v948_v62 = vsel %vm5827_vm7, %v932_v61, %v934_v47 }
  0xcd   : > { %371 = vst.msk [vmem:[#allocation2 + $0x338] sm:$0xff] %vm274_vm0, %v4001_v0  ;;  %379 = vst.msk [vmem:[#allocation2 + $0x378] sm:$0xff] %vm274_vm0, %v4001_v0  ;;  %1140 = vrot.lane.b32.xlu1 %v4436_v4, %s4013_s8  ;;  %1099 = vrot.lane.b32.xlu0 %v4439_v5, %s4012_s7 }
  0xce   : > { %387 = vst.msk [vmem:[#allocation2 + $0x3b8] sm:$0xff] %vm274_vm0, %v4001_v0  ;;  %395 = vst.msk [vmem:[#allocation2 + $0x3f8] sm:$0xff] %vm274_vm0, %v4001_v0 }
  0xcf   : > { %403 = vst.msk [vmem:[#allocation2 + $0x438] sm:$0xff] %vm274_vm0, %v4001_v0  ;;  %411 = vst.msk [vmem:[#allocation2 + $0x478] sm:$0xff] %vm274_vm0, %v4001_v0  ;;  %v1014_v63 = vpop.permute.xlu1 %1013  ;;  %v4707_v1 = vpop.permute.xlu0 %975 }
  0xd0   : > { %419 = vst.msk [vmem:[#allocation2 + $0x4b8] sm:$0xff] %vm274_vm0, %v4001_v0  ;;  %427 = vst.msk [vmem:[#allocation2 + $0x4f8] sm:$0xff] %vm274_vm0, %v4001_v0  ;;  %v989_v2 = vsel %vm5828_vm8, %v974_v60, %v4707_v1 }
  0xd1   : > { %435 = vst.msk [vmem:[#allocation2 + $0x538] sm:$0xff] %vm274_vm0, %v4001_v0  ;;  %443 = vst.msk [vmem:[#allocation2 + $0x578] sm:$0xff] %vm274_vm0, %v4001_v0  ;;  %1183 = vrot.lane.b32.xlu1 %v4436_v4, %s4014_s9  ;;  %1142 = vrot.lane.b32.xlu0 %v4439_v5, %s4013_s8 }
  0xd2   : > { %451 = vst.msk [vmem:[#allocation2 + $0x5b8] sm:$0xff] %vm274_vm0, %v4001_v0  ;;  %459 = vst.msk [vmem:[#allocation2 + $0x5f8] sm:$0xff] %vm274_vm0, %v4001_v0 }
  0xd3   : > { %467 = vst.msk [vmem:[#allocation2 + $0x638] sm:$0xff] %vm274_vm0, %v4001_v0  ;;  %688 = vst [vmem:[#allocation2 + $0x30] sm:$0x7] %v4551_v7  ;;  %v4715_v14 = vpop.permute.xlu0 %1015 }
  0xd4   : > { %1483 = vst [vmem:[#allocation2 + $0x528] sm:$0x7] %v4551_v7  ;;  %1484 = vst [vmem:[#allocation2 + $0x530] sm:$0x7] %v4605_v8 }
  0xd5   : > { %764 = vst [vmem:[#allocation2 + $0x88] sm:$0x7] %v749_v13  ;;  %1504 = vst [vmem:[#allocation2 + $0x580] sm:$0x7] %v749_v13  ;;  %v972_v13 = vpop.permute.xlu1 %971  ;;  %1226 = vrot.lane.b32.xlu1 %v4436_v4, %s4015_s10  ;;  %1185 = vrot.lane.b32.xlu0 %v4439_v5, %s4014_s9 }
  0xd6   : > { %723 = vst [vmem:[#allocation2 + $0x40] sm:$0x7] %v708_v16  ;;  %724 = vst [vmem:[#allocation2 + $0x48] sm:$0x7] %v709_v17  ;;  %v988_v15 = vsel %vm5828_vm8, %v972_v13, %v974_v60  ;;  %v1029_v16 = vsel %vm5829_vm9, %v1014_v63, %v4715_v14 }
  0xd7   : > { %1491 = vst [vmem:[#allocation2 + $0x540] sm:$0x7] %v709_v17  ;;  %763 = vst [vmem:[#allocation2 + $0x80] sm:$0x7] %v748_v20 }
  0xd8   : > { %804 = vst [vmem:[#allocation2 + $0xc8] sm:$0x7] %v789_v21  ;;  %1517 = vst [vmem:[#allocation2 + $0x5c0] sm:$0x7] %v789_v21 }
  0xd9   : > { %803 = vst [vmem:[#allocation2 + $0xc0] sm:$0x7] %v788_v26  ;;  %844 = vst [vmem:[#allocation2 + $0x108] sm:$0x7] %v829_v33  ;;  %v698_v21 = vpop.permute.xlu1 %697  ;;  %1269 = vrot.lane.b32.xlu1 %v4436_v4, %s4016_s11  ;;  %1228 = vrot.lane.b32.xlu0 %v4439_v5, %s4015_s10 }
  0xda   : > { %1530 = vst [vmem:[#allocation2 + $0x600] sm:$0x7] %v829_v33  ;;  %843 = vst [vmem:[#allocation2 + $0x100] sm:$0x7] %v828_v39  ;;  %v1543_v39 = vld [vmem:[#allocation2 + $0x18] sm:$0xff] }
  0xdb   : > { %884 = vst [vmem:[#allocation2 + $0x148] sm:$0x7] %v869_v40  ;;  %883 = vst [vmem:[#allocation2 + $0x140] sm:$0x7] %v868_v46 }
  0xdc   : > { %v1557_v34 = vld [vmem:[#allocation2 + $0x88] sm:$0xff]  ;;  %924 = vst [vmem:[#allocation2 + $0x188] sm:$0x7] %v909_v49  ;;  %923 = vst [vmem:[#allocation2 + $0x180] sm:$0x7] %v908_v55 }
  0xdd   : > { %v1549_v27 = vld [vmem:[#allocation2 + $0x48] sm:$0xff]  ;;  %v1548_v28 = vld [vmem:[#allocation2 + $0x40] sm:$0xff]  ;;  %964 = vst [vmem:[#allocation2 + $0x1c8] sm:$0x7] %v949_v56  ;;  %963 = vst [vmem:[#allocation2 + $0x1c0] sm:$0x7] %v948_v62  ;;  %v1054_v25 = vpop.permute.xlu1 %1053  ;;  %701 = vrot.lane.b32.xlu1 %v4492_v6, %s4002_s19  ;;  %1271 = vrot.lane.b32.xlu0 %v4439_v5, %s4016_s11 }
  0xde   : > { %v3460_v29 = vpack.c.bf16 %v1549_v27, %v1541_v22  ;;  %v3462_v30 = vpack.c.bf16 %v1548_v28, %v1540_v23  ;;  %v1556_v41 = vld [vmem:[#allocation2 + $0x80] sm:$0xff]  ;;  %1004 = vst [vmem:[#allocation2 + $0x208] sm:$0x7] %v989_v2  ;;  %1003 = vst [vmem:[#allocation2 + $0x200] sm:$0x7] %v988_v15  ;;  %v1012_v22 = vpop.permute.xlu0 %1011  ;;  %v710_v23 = vsel %vm707_vm2, %v4628_v9, %v698_v21 }
  0xdf   : > { %v1565_v35 = vld [vmem:[#allocation2 + $0xc8] sm:$0xff]  ;;  %1044 = vst [vmem:[#allocation2 + $0x248] sm:$0x7] %v1029_v16  ;;  %v1028_v24 = vsel %vm5829_vm9, %v1012_v22, %v1014_v63  ;;  %725 = vst [vmem:[#allocation2 + $0x50] sm:$0x7] %v710_v23 }
  0xe0   : > { %3461 = vmatprep.subr.bf16.mxu0 %v3460_v29  ;;  %v3464_v36 = vpack.c.bf16 %v1565_v35, %v1557_v34  ;;  %v1564_v42 = vld [vmem:[#allocation2 + $0xc0] sm:$0xff]  ;;  %v1573_v50 = vld [vmem:[#allocation2 + $0x108] sm:$0xff]  ;;  %1492 = vst [vmem:[#allocation2 + $0x548] sm:$0x7] %v710_v23  ;;  %1043 = vst [vmem:[#allocation2 + $0x240] sm:$0x7] %v1028_v24 }
  0xe1   : > { %3463 = vmatpush1.bf16.msra.mxu0 %v3462_v30  ;;  %v3466_v43 = vpack.c.bf16 %v1564_v42, %v1556_v41  ;;  %v1572_v57 = vld [vmem:[#allocation2 + $0x100] sm:$0xff]  ;;  %v4742_v30 = vld [vmem:[%s5817_s1 + $0x8] sm:$0x3f]  ;;  %v1094_v31 = vpop.permute.xlu1 %1093  ;;  %1312 = vrot.lane.b32.xlu1 %v4436_v4, %s4017_s12  ;;  %v1542_v42 = vld [vmem:[#allocation2 + $0x10] sm:$0xff]  ;;  %690 = vst.msk [vmem:[#allocation2 + $0x38] sm:$0x7] %vm5825_vm14, %v4605_v8 }
  0xe2   : > { %3465 = vmatprep.subr.bf16.mxu0 %v3464_v36  ;;  %v1581_v51 = vld [vmem:[#allocation2 + $0x148] sm:$0xff]  ;;  %v1580_v58 = vld [vmem:[#allocation2 + $0x140] sm:$0xff]  ;;  %v4731_v26 = vpop.permute.xlu0 %699  ;;  %3339 = vmatprep.mubr.msk.f32.mxu0 %vm5832_vm10, %v4742_v30 }
  0xe3   : > { %v3468_v52 = vpack.c.bf16 %v1581_v51, %v1573_v50  ;;  %v3470_v59 = vpack.c.bf16 %v1580_v58, %v1572_v57  ;;  %v1589_v3 = vld [vmem:[#allocation2 + $0x188] sm:$0xff]  ;;  %v1588_v17 = vld [vmem:[#allocation2 + $0x180] sm:$0xff]  ;;  %v711_v27 = vsel %vm707_vm2, %v698_v21, %v4731_v26  ;;  %3340 = vmatprep.mubr.msk.f32.mxu1 %vm5832_vm10, %v4742_v30  ;;  %703 = vrot.lane.b32.xlu0 %v4551_v7, %s4002_s19 }
  0xe4   : > { %v1597_v10 = vld [vmem:[#allocation2 + $0x1c8] sm:$0xff]  ;;  %v1596_v18 = vld [vmem:[#allocation2 + $0x1c0] sm:$0xff]  ;;  %726 = vst [vmem:[#allocation2 + $0x58] sm:$0x7] %v711_v27  ;;  %1493 = vst [vmem:[#allocation2 + $0x550] sm:$0x7] %v711_v27 }
  0xe5   : > { %3467 = vmatpush1.bf16.msra.mxu0 %v3466_v43  ;;  %v3472_v12 = vpack.c.bf16 %v1597_v10, %v1589_v3  ;;  %v3474_v20 = vpack.c.bf16 %v1596_v18, %v1588_v17  ;;  %v1605_v28 = vld [vmem:[#allocation2 + $0x208] sm:$0xff]  ;;  %v1604_v35 = vld [vmem:[#allocation2 + $0x200] sm:$0xff]  ;;  %v1052_v40 = vpop.permute.xlu1 %1051  ;;  %1355 = vrot.lane.b32.xlu1 %v4436_v4, %s4018_s13 }
  0xe6   : > { %3469 = vmatprep.subr.bf16.mxu0 %v3468_v52  ;;  %v1613_v29 = vld [vmem:[#allocation2 + $0x248] sm:$0xff]  ;;  %v4748_v33 = vpop.permute.xlu0 %1055  ;;  %v1550_v43 = vld [vmem:[#allocation2 + $0x50] sm:$0xff]  ;;  %v1067_v44 = vsel %vm274_vm0, %v1052_v40, %v1054_v25 }
  0xe7   : > { %v3476_v9 = vpack.c.bf16 %v1613_v29, %v1605_v28  ;;  %v1068_v34 = vsel %vm274_vm0, %v1054_v25, %v4748_v33  ;;  %v1612_v36 = vld [vmem:[#allocation2 + $0x240] sm:$0xff]  ;;  %1082 = vst [vmem:[#allocation2 + $0x280] sm:$0x7] %v1067_v44  ;;  %1314 = vrot.lane.b32.xlu0 %v4439_v5, %s4017_s12  ;;  %v3510_v49 = vpack.c.bf16 %v1550_v43, %v1542_v42 }
  0xe8   : > { %1083 = vst [vmem:[#allocation2 + $0x288] sm:$0x7] %v1068_v34  ;;  %v3478_v37 = vpack.c.bf16 %v1612_v36, %v1604_v35 }
  0xe9   : > { %3471 = vmatpush1.bf16.msra.mxu0 %v3470_v59  ;;  %v738_v50 = vpop.permute.xlu1 %737  ;;  %741 = vrot.lane.b32.xlu1 %v4492_v6, %s4003_s20 }
  0xea   : > { %3473 = vmatprep.subr.bf16.mxu0 %v3472_v12  ;;  %v4756_v41 = vpop.permute.xlu0 %1095  ;;  %v750_v52 = vsel %vm5835_vm1, %v4634_v11, %v738_v50 }
  0xeb   : > { %v1111_v45 = vsel %vm1109_vm11, %v1094_v31, %v4756_v41  ;;  %v1551_v46 = vld [vmem:[#allocation2 + $0x58] sm:$0xff]  ;;  %765 = vst [vmem:[#allocation2 + $0x90] sm:$0x7] %v750_v52  ;;  %1505 = vst [vmem:[#allocation2 + $0x588] sm:$0x7] %v750_v52  ;;  %1357 = vrot.lane.b32.xlu0 %v4439_v5, %s4018_s13 }
  0xec   : > { %1127 = vst [vmem:[#allocation2 + $0x2c8] sm:$0x7] %v1111_v45  ;;  %v3508_v47 = vpack.c.bf16 %v1551_v46, %v1543_v39 }
  0xed   : > { %3475 = vmatpush1.bf16.msra.mxu0 %v3474_v20  ;;  %v778_v55 = vpop.permute.xlu1 %777  ;;  %781 = vrot.lane.b32.xlu1 %v4492_v6, %s4004_s23 }
  0xee   : > { %3477 = vmatprep.subr.bf16.mxu0 %v3476_v9  ;;  %v1092_v51 = vpop.permute.xlu0 %1091  ;;  %3509 = vmatprep.subr.bf16.mxu1 %v3508_v47  ;;  %v790_v57 = vsel %vm787_vm3, %v4649_v19, %v778_v55  ;;  %v1620_v63 = vld [vmem:[#allocation2 + $0x280] sm:$0xff] }
  0xef   : > { %v1110_v53 = vsel %vm1109_vm11, %v1092_v51, %v1094_v31  ;;  %3511 = vmatpush1.bf16.msra.mxu1 %v3510_v49  ;;  %v1621_v58 = vld [vmem:[#allocation2 + $0x288] sm:$0xff]  ;;  %805 = vst [vmem:[#allocation2 + $0xd0] sm:$0x7] %v790_v57  ;;  %1518 = vst [vmem:[#allocation2 + $0x5c8] sm:$0x7] %v790_v57  ;;  %743 = vrot.lane.b32.xlu0 %v4551_v7, %s4003_s20 }
  0xf0   : > { %1126 = vst [vmem:[#allocation2 + $0x2c0] sm:$0x7] %v1110_v53 }
  0xf1   : > { %3479 = vmatpush1.bf16.msra.mxu0 %v3478_v37  ;;  %v1137_v61 = vpop.permute.xlu1 %1136  ;;  %1398 = vrot.lane.b32.xlu1 %v4436_v4, %s4019_s14  ;;  %v4825_v37 = vld [vmem:[%s4418_s18 + $0x20] sm:$0x7] }
  0xf2   : > { %v4772_v56 = vpop.permute.xlu0 %739  ;;  %v1558_v23 = vld [vmem:[#allocation2 + $0x90] sm:$0xff]  ;;  %1485 = vst.msk [vmem:[#allocation2 + $0x538] sm:$0x7] %vm5825_vm14, %v4825_v37  ;;  %vm1281_vm14 = vcmask 261120  }
  0xf3   : > { %v751_v11 = vsel %vm5835_vm1, %v738_v50, %v4772_v56  ;;  %v1629_v59 = vld [vmem:[#allocation2 + $0x2c8] sm:$0xff]  ;;  %783 = vrot.lane.b32.xlu0 %v4551_v7, %s4004_s23 }
  0xf4   : > { %766 = vst [vmem:[#allocation2 + $0x98] sm:$0x7] %v751_v11  ;;  %1506 = vst [vmem:[#allocation2 + $0x590] sm:$0x7] %v751_v11  ;;  %v3480_v60 = vpack.c.bf16 %v1629_v59, %v1621_v58 }
  0xf5   : > { %v1180_v10 = vpop.permute.xlu1 %1179  ;;  %1441 = vrot.lane.b32.xlu1 %v4436_v4, %s4020_s15 }
  0xf6   : > { %v4782_v62 = vpop.permute.xlu0 %779  ;;  %3481 = vmatprep.subr.bf16.mxu0 %v3480_v60  ;;  %v1566_v17 = vld [vmem:[#allocation2 + $0xd0] sm:$0xff] }
  0xf7   : > { %v791_v19 = vsel %vm787_vm3, %v778_v55, %v4782_v62  ;;  %v1628_v2 = vld [vmem:[#allocation2 + $0x2c0] sm:$0xff]  ;;  %1400 = vrot.lane.b32.xlu0 %v4439_v5, %s4019_s14  ;;  %v3514_v24 = vpack.c.bf16 %v1566_v17, %v1558_v23 }
  0xf8   : > { %806 = vst [vmem:[#allocation2 + $0xd8] sm:$0x7] %v791_v19  ;;  %1519 = vst [vmem:[#allocation2 + $0x5d0] sm:$0x7] %v791_v19  ;;  %v3482_v3 = vpack.c.bf16 %v1628_v2, %v1620_v63 }
  0xf9   : > { %v1135_v15 = vpop.permute.xlu1 %1134  ;;  %821 = vrot.lane.b32.xlu1 %v4492_v6, %s4005_s24 }
  0xfa   : > { %v4790_v12 = vpop.permute.xlu0 %1138  ;;  %3483 = vmatpush1.bf16.msra.mxu0 %v3482_v3  ;;  %v1153_v18 = vsel %vm1152_vm12, %v1135_v15, %v1137_v61 }
  0xfb   : > { %v1154_v13 = vsel %vm1152_vm12, %v1137_v61, %v4790_v12  ;;  %v1559_v21 = vld [vmem:[#allocation2 + $0x98] sm:$0xff]  ;;  %1169 = vst [vmem:[#allocation2 + $0x300] sm:$0x7] %v1153_v18  ;;  %1443 = vrot.lane.b32.xlu0 %v4439_v5, %s4020_s15 }
  0xfc   : > { %1170 = vst [vmem:[#allocation2 + $0x308] sm:$0x7] %v1154_v13 }
  0xfd   : > { %v818_v25 = vpop.permute.xlu1 %817  ;;  %861 = vrot.lane.b32.xlu1 %v4492_v6, %s4006_s25 }
  0xfe   : > { %v4798_v16 = vpop.permute.xlu0 %1181  ;;  %v830_v28 = vsel %vm5834_vm4, %v4663_v32, %v818_v25 }
  0xff   : > { %v1197_v20 = vsel %vm1195_vm13, %v1180_v10, %v4798_v16  ;;  %v1567_v22 = vld [vmem:[#allocation2 + $0xd8] sm:$0xff]  ;;  %845 = vst [vmem:[#allocation2 + $0x110] sm:$0x7] %v830_v28  ;;  %1531 = vst [vmem:[#allocation2 + $0x608] sm:$0x7] %v830_v28  ;;  %823 = vrot.lane.b32.xlu0 %v4551_v7, %s4005_s24 }
 0x100   : > { %1213 = vst [vmem:[#allocation2 + $0x348] sm:$0x7] %v1197_v20  ;;  %v3512_v4 = vpack.c.bf16 %v1567_v22, %v1559_v21 }
 0x101   : > { %v858_v5 = vpop.permute.xlu1 %857  ;;  %901 = vrot.lane.b32.xlu1 %v4492_v6, %s4007_s26 }
 0x102   : > { %v1178_v27 = vpop.permute.xlu0 %1177  ;;  %3513 = vmatprep.subr.bf16.mxu1 %v3512_v4  ;;  %v870_v31 = vsel %vm5833_vm5, %v4671_v38, %v858_v5  ;;  %v1636_v42 = vld [vmem:[#allocation2 + $0x300] sm:$0xff] }
 0x103   : > { %v1196_v29 = vsel %vm1195_vm13, %v1178_v27, %v1180_v10  ;;  %3515 = vmatpush1.bf16.msra.mxu1 %v3514_v24  ;;  %v1637_v34 = vld [vmem:[#allocation2 + $0x308] sm:$0xff]  ;;  %885 = vst [vmem:[#allocation2 + $0x150] sm:$0x7] %v870_v31  ;;  %863 = vrot.lane.b32.xlu0 %v4551_v7, %s4006_s25 }
 0x104   : > { %1212 = vst [vmem:[#allocation2 + $0x340] sm:$0x7] %v1196_v29 }
 0x105   : > { %v1223_v38 = vpop.permute.xlu1 %1222  ;;  %941 = vrot.lane.b32.xlu1 %v4492_v6, %s4008_s27 }
 0x106   : > { %v4814_v9 = vpop.permute.xlu0 %819  ;;  %v1574_v58 = vld [vmem:[#allocation2 + $0x110] sm:$0xff] }
 0x107   : > { %v831_v32 = vsel %vm5834_vm4, %v818_v25, %v4814_v9  ;;  %v1645_v35 = vld [vmem:[#allocation2 + $0x348] sm:$0xff]  ;;  %903 = vrot.lane.b32.xlu0 %v4551_v7, %s4007_s26 }
 0x108   : > { %846 = vst [vmem:[#allocation2 + $0x118] sm:$0x7] %v831_v32  ;;  %1532 = vst [vmem:[#allocation2 + $0x610] sm:$0x7] %v831_v32  ;;  %v3484_v36 = vpack.c.bf16 %v1645_v35, %v1637_v34 }
 0x109   : > { %v1266_v45 = vpop.permute.xlu1 %1265  ;;  %981 = vrot.lane.b32.xlu1 %v4492_v6, %s4009_s28 }
 0x10a   : > { %v4831_v39 = vpop.permute.xlu0 %859  ;;  %3485 = vmatprep.subr.bf16.mxu0 %v3484_v36  ;;  %v1582_v51 = vld [vmem:[#allocation2 + $0x150] sm:$0xff] }
 0x10b   : > { %v871_v40 = vsel %vm5833_vm5, %v858_v5, %v4831_v39  ;;  %v1644_v43 = vld [vmem:[#allocation2 + $0x340] sm:$0xff]  ;;  %943 = vrot.lane.b32.xlu0 %v4551_v7, %s4008_s27  ;;  %v3518_v59 = vpack.c.bf16 %v1582_v51, %v1574_v58 }
 0x10c   : > { %886 = vst [vmem:[#allocation2 + $0x158] sm:$0x7] %v871_v40  ;;  %v3486_v44 = vpack.c.bf16 %v1644_v43, %v1636_v42 }
 0x10d   : > { %v1221_v49 = vpop.permute.xlu1 %1220  ;;  %1021 = vrot.lane.b32.xlu1 %v4492_v6, %s4010_s29 }
 0x10e   : > { %v4839_v46 = vpop.permute.xlu0 %1224  ;;  %3487 = vmatpush1.bf16.msra.mxu0 %v3486_v44  ;;  %v1239_v52 = vsel %vm1238_vm15, %v1221_v49, %v1223_v38 }
 0x10f   : > { %v1240_v47 = vsel %vm1238_vm15, %v1223_v38, %v4839_v46  ;;  %v1575_v55 = vld [vmem:[#allocation2 + $0x118] sm:$0xff]  ;;  %1255 = vst [vmem:[#allocation2 + $0x380] sm:$0x7] %v1239_v52  ;;  %983 = vrot.lane.b32.xlu0 %v4551_v7, %s4009_s28 }
 0x110   : > { %1256 = vst [vmem:[#allocation2 + $0x388] sm:$0x7] %v1240_v47 }
 0x111   : > { %v898_v60 = vpop.permute.xlu1 %897  ;;  %705 = vrot.lane.b32.xlu1 %v4605_v8, %s4002_s19 }
 0x112   : > { %v4847_v50 = vpop.permute.xlu0 %1267  ;;  %v910_v19 = vsel %vm5826_vm6, %v4685_v48, %v898_v60 }
 0x113   : > { %v1283_v53 = vsel %vm1281_vm14, %v1266_v45, %v4847_v50  ;;  %v1583_v57 = vld [vmem:[#allocation2 + $0x158] sm:$0xff]  ;;  %925 = vst [vmem:[#allocation2 + $0x190] sm:$0x7] %v910_v19  ;;  %1023 = vrot.lane.b32.xlu0 %v4551_v7, %s4010_s29 }
 0x114   : > { %1299 = vst [vmem:[#allocation2 + $0x3c8] sm:$0x7] %v1283_v53  ;;  %v3516_v11 = vpack.c.bf16 %v1583_v57, %v1575_v55 }
 0x115   : > { %v938_v2 = vpop.permute.xlu1 %937  ;;  %1063 = vrot.lane.b32.xlu1 %v4551_v7, %s4011_s30 }
 0x116   : > { %v1264_v61 = vpop.permute.xlu0 %1263  ;;  %3517 = vmatprep.subr.bf16.mxu1 %v3516_v11  ;;  %v950_v10 = vsel %vm5827_vm7, %v4693_v54, %v938_v2  ;;  %v1652_v21 = vld [vmem:[#allocation2 + $0x380] sm:$0xff] }
 0x117   : > { %v1282_v63 = vsel %vm1281_vm14, %v1264_v61, %v1266_v45  ;;  %3519 = vmatpush1.bf16.msra.mxu1 %v3518_v59  ;;  %v1653_v13 = vld [vmem:[#allocation2 + $0x388] sm:$0xff]  ;;  %965 = vst [vmem:[#allocation2 + $0x1d0] sm:$0x7] %v950_v10  ;;  %1061 = vrot.lane.b32.xlu0 %v4492_v6, %s4011_s30 }
 0x118   : > { %1298 = vst [vmem:[#allocation2 + $0x3c0] sm:$0x7] %v1282_v63 }
 0x119   : > { %v1309_v18 = vpop.permute.xlu1 %1308  ;;  %1103 = vrot.lane.b32.xlu1 %v4551_v7, %s4012_s7 }
 0x11a   : > { %v4863_v3 = vpop.permute.xlu0 %899  ;;  %v1590_v36 = vld [vmem:[#allocation2 + $0x190] sm:$0xff] }
 0x11b   : > { %v911_v48 = vsel %vm5826_vm6, %v898_v60, %v4863_v3  ;;  %v1661_v15 = vld [vmem:[#allocation2 + $0x3c8] sm:$0xff]  ;;  %1101 = vrot.lane.b32.xlu0 %v4492_v6, %s4012_s7  ;;  %vm1324_vm6 = vcmask 252928  }
 0x11c   : > { %926 = vst [vmem:[#allocation2 + $0x198] sm:$0x7] %v911_v48  ;;  %v3488_v17 = vpack.c.bf16 %v1661_v15, %v1653_v13 }
 0x11d   : > { %v1352_v23 = vpop.permute.xlu1 %1351  ;;  %785 = vrot.lane.b32.xlu1 %v4605_v8, %s4004_s23 }
 0x11e   : > { %v4873_v20 = vpop.permute.xlu0 %939  ;;  %3489 = vmatprep.subr.bf16.mxu0 %v3488_v17  ;;  %v1598_v29 = vld [vmem:[#allocation2 + $0x1d0] sm:$0xff] }
 0x11f   : > { %v951_v54 = vsel %vm5827_vm7, %v938_v2, %v4873_v20  ;;  %v1660_v22 = vld [vmem:[#allocation2 + $0x3c0] sm:$0xff]  ;;  %745 = vrot.lane.b32.xlu0 %v4605_v8, %s4003_s20  ;;  %vm1367_vm7 = vcmask 244736   ;;  %v3522_v38 = vpack.c.bf16 %v1598_v29, %v1590_v36 }
 0x120   : > { %966 = vst [vmem:[#allocation2 + $0x1d8] sm:$0x7] %v951_v54  ;;  %v3490_v4 = vpack.c.bf16 %v1660_v22, %v1652_v21 }
 0x121   : > { %v1307_v27 = vpop.permute.xlu1 %1306  ;;  %1146 = vrot.lane.b32.xlu1 %v4551_v7, %s4013_s8 }
 0x122   : > { %v4881_v24 = vpop.permute.xlu0 %1310  ;;  %3491 = vmatpush1.bf16.msra.mxu0 %v3490_v4  ;;  %v1325_v5 = vsel %vm1324_vm6, %v1307_v27, %v1309_v18 }
 0x123   : > { %v1326_v25 = vsel %vm1324_vm6, %v1309_v18, %v4881_v24  ;;  %v1591_v32 = vld [vmem:[#allocation2 + $0x198] sm:$0xff]  ;;  %1341 = vst [vmem:[#allocation2 + $0x400] sm:$0x7] %v1325_v5  ;;  %1144 = vrot.lane.b32.xlu0 %v4492_v6, %s4013_s8 }
 0x124   : > { %1342 = vst [vmem:[#allocation2 + $0x408] sm:$0x7] %v1326_v25 }
 0x125   : > { %v978_v40 = vpop.permute.xlu1 %977  ;;  %1189 = vrot.lane.b32.xlu1 %v4551_v7, %s4014_s9 }
 0x126   : > { %v4889_v28 = vpop.permute.xlu0 %1353  ;;  %v990_v43 = vsel %vm5828_vm8, %v4707_v1, %v978_v40 }
 0x127   : > { %v1369_v31 = vsel %vm1367_vm7, %v1352_v23, %v4889_v28  ;;  %v1599_v34 = vld [vmem:[#allocation2 + $0x1d8] sm:$0xff]  ;;  %1005 = vst [vmem:[#allocation2 + $0x210] sm:$0x7] %v990_v43  ;;  %1187 = vrot.lane.b32.xlu0 %v4492_v6, %s4014_s9 }
 0x128   : > { %1385 = vst [vmem:[#allocation2 + $0x448] sm:$0x7] %v1369_v31  ;;  %v3520_v35 = vpack.c.bf16 %v1599_v34, %v1591_v32 }
 0x129   : > { %v1018_v45 = vpop.permute.xlu1 %1017  ;;  %865 = vrot.lane.b32.xlu1 %v4605_v8, %s4006_s25 }
 0x12a   : > { %v1350_v42 = vpop.permute.xlu0 %1349  ;;  %3521 = vmatprep.subr.bf16.mxu1 %v3520_v35  ;;  %v1030_v49 = vsel %vm5829_vm9, %v4715_v14, %v1018_v45  ;;  %v1668_v11 = vld [vmem:[#allocation2 + $0x400] sm:$0xff] }
 0x12b   : > { %v1368_v44 = vsel %vm1367_vm7, %v1350_v42, %v1352_v23  ;;  %3523 = vmatpush1.bf16.msra.mxu1 %v3522_v38  ;;  %v1669_v51 = vld [vmem:[#allocation2 + $0x408] sm:$0xff]  ;;  %1045 = vst [vmem:[#allocation2 + $0x250] sm:$0x7] %v1030_v49  ;;  %825 = vrot.lane.b32.xlu0 %v4605_v8, %s4005_s24 }
 0x12c   : > { %1384 = vst [vmem:[#allocation2 + $0x440] sm:$0x7] %v1368_v44  ;;  %v1701_v38 = vld [vmem:[#allocation2 + $0x508] sm:$0xff] }
 0x12d   : > { %v1395_v55 = vpop.permute.xlu1 %1394  ;;  %1232 = vrot.lane.b32.xlu1 %v4551_v7, %s4015_s10 }
 0x12e   : > { %v4905_v47 = vpop.permute.xlu0 %979  ;;  %v1606_v54 = vld [vmem:[#allocation2 + $0x210] sm:$0xff] }
 0x12f   : > { %v991_v1 = vsel %vm5828_vm8, %v978_v40, %v4905_v47  ;;  %v1677_v52 = vld [vmem:[#allocation2 + $0x448] sm:$0xff]  ;;  %1230 = vrot.lane.b32.xlu0 %v4492_v6, %s4015_s10  ;;  %vm5831_vm8 = vcmask 236544  }
 0x130   : > { %1006 = vst [vmem:[#allocation2 + $0x218] sm:$0x7] %v991_v1  ;;  %v3492_v53 = vpack.c.bf16 %v1677_v52, %v1669_v51  ;;  %v1700_v1 = vld [vmem:[#allocation2 + $0x500] sm:$0xff] }
 0x131   : > { %v1438_v60 = vpop.permute.xlu1 %1437  ;;  %1275 = vrot.lane.b32.xlu1 %v4551_v7, %s4016_s11  ;;  %v1708_v51 = vld [vmem:[#allocation2 + $0x540] sm:$0xff] }
 0x132   : > { %v4915_v57 = vpop.permute.xlu0 %1019  ;;  %3493 = vmatprep.subr.bf16.mxu0 %v3492_v53  ;;  %v1614_v10 = vld [vmem:[#allocation2 + $0x250] sm:$0xff] }
 0x133   : > { %v1031_v14 = vsel %vm5829_vm9, %v1018_v45, %v4915_v57  ;;  %v1676_v58 = vld [vmem:[#allocation2 + $0x440] sm:$0xff]  ;;  %1273 = vrot.lane.b32.xlu0 %v4492_v6, %s4016_s11  ;;  %vm5830_vm9 = vcmask 228352   ;;  %v3526_v21 = vpack.c.bf16 %v1614_v10, %v1606_v54 }
 0x134   : > { %1046 = vst [vmem:[#allocation2 + $0x258] sm:$0x7] %v1031_v14  ;;  %v3494_v59 = vpack.c.bf16 %v1676_v58, %v1668_v11  ;;  %v3502_v11 = vpack.c.bf16 %v1708_v51, %v1700_v1  ;;  %v1717_v58 = vld [vmem:[#allocation2 + $0x588] sm:$0xff] }
 0x135   : > { %v1393_v63 = vpop.permute.xlu1 %1392  ;;  %945 = vrot.lane.b32.xlu1 %v4605_v8, %s4008_s27 }
 0x136   : > { %v4923_v61 = vpop.permute.xlu0 %1396  ;;  %3495 = vmatpush1.bf16.msra.mxu0 %v3494_v59  ;;  %v1411_v48 = vsel %vm5831_vm8, %v1393_v63, %v1395_v55 }
 0x137   : > { %v1412_v19 = vsel %vm5831_vm8, %v1395_v55, %v4923_v61  ;;  %v1607_v15 = vld [vmem:[#allocation2 + $0x218] sm:$0xff]  ;;  %1427 = vst [vmem:[#allocation2 + $0x480] sm:$0x7] %v1411_v48  ;;  %905 = vrot.lane.b32.xlu0 %v4605_v8, %s4007_s26 }
 0x138   : > { %1428 = vst [vmem:[#allocation2 + $0x488] sm:$0x7] %v1412_v19 }
 0x139   : > { %v1058_v22 = vpop.permute.xlu1 %1057  ;;  %1318 = vrot.lane.b32.xlu1 %v4551_v7, %s4017_s12 }
 0x13a   : > { %v4931_v2 = vpop.permute.xlu0 %1439  ;;  %v1069_v23 = vsel %vm274_vm0, %v4748_v33, %v1058_v22 }
 0x13b   : > { %v1455_v13 = vsel %vm5830_vm9, %v1438_v60, %v4931_v2  ;;  %v1615_v17 = vld [vmem:[#allocation2 + $0x258] sm:$0xff]  ;;  %1084 = vst [vmem:[#allocation2 + $0x290] sm:$0x7] %v1069_v23  ;;  %1316 = vrot.lane.b32.xlu0 %v4492_v6, %s4017_s12  ;;  %v1733_v23 = vld [vmem:[#allocation2 + $0x608] sm:$0xff] }
 0x13c   : > { %1471 = vst [vmem:[#allocation2 + $0x4c8] sm:$0x7] %v1455_v13  ;;  %v3524_v18 = vpack.c.bf16 %v1615_v17, %v1607_v15  ;;  %v1716_v13 = vld [vmem:[#allocation2 + $0x580] sm:$0xff] }
 0x13d   : > { %v1098_v27 = vpop.permute.xlu1 %1097  ;;  %1361 = vrot.lane.b32.xlu1 %v4551_v7, %s4018_s13 }
 0x13e   : > { %v1436_v4 = vpop.permute.xlu0 %1435  ;;  %3525 = vmatprep.subr.bf16.mxu1 %v3524_v18  ;;  %v1112_v5 = vsel %vm1109_vm11, %v4756_v41, %v1098_v27  ;;  %v1709_v41 = vld [vmem:[#allocation2 + $0x548] sm:$0xff]  ;;  %v1684_v43 = vld [vmem:[#allocation2 + $0x480] sm:$0xff] }
 0x13f   : > { %v1454_v25 = vsel %vm5830_vm9, %v1436_v4, %v1438_v60  ;;  %3527 = vmatpush1.bf16.msra.mxu1 %v3526_v21  ;;  %v1685_v31 = vld [vmem:[#allocation2 + $0x488] sm:$0xff]  ;;  %1128 = vst [vmem:[#allocation2 + $0x2d0] sm:$0x7] %v1112_v5  ;;  %1359 = vrot.lane.b32.xlu0 %v4492_v6, %s4018_s13  ;;  %v3500_v49 = vpack.c.bf16 %v1709_v41, %v1701_v38  ;;  %v1724_v60 = vld [vmem:[#allocation2 + $0x5c0] sm:$0xff] }
 0x140   : > { %1470 = vst [vmem:[#allocation2 + $0x4c0] sm:$0x7] %v1454_v25  ;;  %v3506_v18 = vpack.c.bf16 %v1724_v60, %v1716_v13 }
 0x141   : > { %v1141_v35 = vpop.permute.xlu1 %1140  ;;  %1025 = vrot.lane.b32.xlu1 %v4605_v8, %s4010_s29 }
 0x142   : > { %v4947_v29 = vpop.permute.xlu0 %1059  ;;  %v1155_v40 = vsel %vm1152_vm12, %v4790_v12, %v1141_v35  ;;  %v1725_v12 = vld [vmem:[#allocation2 + $0x5c8] sm:$0xff]  ;;  %v1622_v21 = vld [vmem:[#allocation2 + $0x290] sm:$0xff] }
 0x143   : > { %v1070_v33 = vsel %vm274_vm0, %v1058_v22, %v4947_v29  ;;  %v1693_v32 = vld [vmem:[#allocation2 + $0x4c8] sm:$0xff]  ;;  %1171 = vst [vmem:[#allocation2 + $0x310] sm:$0x7] %v1155_v40  ;;  %985 = vrot.lane.b32.xlu0 %v4605_v8, %s4009_s28  ;;  %v3504_v59 = vpack.c.bf16 %v1725_v12, %v1717_v58 }
 0x144   : > { %1085 = vst [vmem:[#allocation2 + $0x298] sm:$0x7] %v1070_v33  ;;  %v3496_v34 = vpack.c.bf16 %v1693_v32, %v1685_v31  ;;  %v1545_v58 = vld [vmem:[#allocation2 + $0x28] sm:$0xff] }
 0x145   : > { %v1184_v52 = vpop.permute.xlu1 %1183  ;;  %1404 = vrot.lane.b32.xlu1 %v4551_v7, %s4019_s14 }
 0x146   : > { %v4957_v36 = vpop.permute.xlu0 %1099  ;;  %3497 = vmatprep.subr.bf16.mxu0 %v3496_v34  ;;  %v1198_v55 = vsel %vm1195_vm13, %v4798_v16, %v1184_v52  ;;  %v1630_v16 = vld [vmem:[#allocation2 + $0x2d0] sm:$0xff] }
 0x147   : > { %v1113_v42 = vsel %vm1109_vm11, %v1098_v27, %v4957_v36  ;;  %v1692_v44 = vld [vmem:[#allocation2 + $0x4c0] sm:$0xff]  ;;  %1214 = vst [vmem:[#allocation2 + $0x350] sm:$0x7] %v1198_v55  ;;  %1402 = vrot.lane.b32.xlu0 %v4492_v6, %s4019_s14  ;;  %v3530_v22 = vpack.c.bf16 %v1630_v16, %v1622_v21 }
 0x148   : > { %1129 = vst [vmem:[#allocation2 + $0x2d8] sm:$0x7] %v1113_v42  ;;  %v3498_v45 = vpack.c.bf16 %v1692_v44, %v1684_v43 }
 0x149   : > { %v1227_v19 = vpop.permute.xlu1 %1226  ;;  %1447 = vrot.lane.b32.xlu1 %v4551_v7, %s4020_s15  ;;  %v1732_v7 = vld [vmem:[#allocation2 + $0x600] sm:$0xff] }
 0x14a   : > { %v4967_v53 = vpop.permute.xlu0 %1142  ;;  %3499 = vmatpush1.bf16.msra.mxu0 %v3498_v45  ;;  %v1241_v10 = vsel %vm1238_vm15, %v4839_v46, %v1227_v19  ;;  %v1638_v41 = vld [vmem:[#allocation2 + $0x310] sm:$0xff] }
 0x14b   : > { %v1156_v14 = vsel %vm1152_vm12, %v1141_v35, %v4967_v53  ;;  %3501 = vmatprep.subr.bf16.mxu0 %v3500_v49  ;;  %v1623_v15 = vld [vmem:[#allocation2 + $0x298] sm:$0xff]  ;;  %1257 = vst [vmem:[#allocation2 + $0x390] sm:$0x7] %v1241_v10  ;;  %1445 = vrot.lane.b32.xlu0 %v4492_v6, %s4020_s15  ;;  %v5000_v6 = vld [vmem:[%s5817_s1] sm:$0x3f] }
 0x14c   : > { %1172 = vst [vmem:[#allocation2 + $0x318] sm:$0x7] %v1156_v14 }
 0x14d   : > { %v1270_v46 = vpop.permute.xlu1 %1269  ;;  %1107 = vrot.lane.b32.xlu1 %v4825_v37, %s4012_s7 }
 0x14e   : > { %v4977_v63 = vpop.permute.xlu0 %1185  ;;  %3503 = vmatpush1.bf16.msra.mxu0 %v3502_v11  ;;  %v1284_v25 = vsel %vm1281_vm14, %v4847_v50, %v1270_v46  ;;  %v1646_v33 = vld [vmem:[#allocation2 + $0x350] sm:$0xff] }
 0x14f   : > { %v1199_v48 = vsel %vm1195_vm13, %v1184_v52, %v4977_v63  ;;  %3505 = vmatprep.subr.bf16.mxu0 %v3504_v59  ;;  %v1631_v17 = vld [vmem:[#allocation2 + $0x2d8] sm:$0xff]  ;;  %1300 = vst [vmem:[#allocation2 + $0x3d0] sm:$0x7] %v1284_v25  ;;  %1105 = vrot.lane.b32.xlu0 %v4605_v8, %s4012_s7  ;;  %v3534_v40 = vpack.c.bf16 %v1646_v33, %v1638_v41 }
 0x150   : > { %1215 = vst [vmem:[#allocation2 + $0x358] sm:$0x7] %v1199_v48  ;;  %v3528_v54 = vpack.c.bf16 %v1631_v17, %v1623_v15 }
 0x151   : > { %v702_v50 = vpop.permute.xlu1 %701  ;;  %1148 = vrot.lane.b32.xlu1 %v4605_v8, %s4013_s8 }
 0x152   : > { %v4987_v4 = vpop.permute.xlu0 %1228  ;;  %3507 = vmatpush1.bf16.msra.mxu0 %v3506_v18  ;;  %3529 = vmatprep.subr.bf16.mxu1 %v3528_v54  ;;  %v712_v31 = vsel %vm707_vm2, %v4731_v26, %v702_v50  ;;  %v1654_v14 = vld [vmem:[#allocation2 + $0x390] sm:$0xff] }
 0x153   : > { %v1242_v27 = vsel %vm1238_vm15, %v1227_v19, %v4987_v4  ;;  %1798 = vmatprep.subr.mxu0 %v1733_v23  ;;  %3531 = vmatpush1.bf16.msra.mxu1 %v3530_v22  ;;  %v1639_v34 = vld [vmem:[#allocation2 + $0x318] sm:$0xff]  ;;  %727 = vst [vmem:[#allocation2 + $0x60] sm:$0x7] %v712_v31  ;;  %1494 = vst [vmem:[#allocation2 + $0x558] sm:$0x7] %v712_v31 }
 0x154   : > { %1258 = vst [vmem:[#allocation2 + $0x398] sm:$0x7] %v1242_v27  ;;  %1065 = vrot.lane.b32.xlu0 %v4605_v8, %s4011_s30 }
 0x155   : > { %v1313_v26 = vpop.permute.xlu1 %1312  ;;  %1191 = vrot.lane.b32.xlu1 %v4605_v8, %s4014_s9 }
 0x156   : > { %v5002_v5 = vpop.permute.xlu0 %1271  ;;  %1799 = vmatpush1.msra.mxu0 %v1732_v7  ;;  %v1327_v43 = vsel %vm1324_vm6, %v4881_v24, %v1313_v26  ;;  %v1662_v24 = vld [vmem:[#allocation2 + $0x3d0] sm:$0xff] }
 0x157   : > { %v1285_v32 = vsel %vm1281_vm14, %v1270_v46, %v5002_v5  ;;  %v1647_v35 = vld [vmem:[#allocation2 + $0x358] sm:$0xff]  ;;  %1815 = vmatmul.mubr.f32.vlgmr.msra.gmra.mrb[0].mxu0 %v5000_v6  ;;  %1343 = vst [vmem:[#allocation2 + $0x410] sm:$0x7] %v1327_v43  ;;  %v3538_v11 = vpack.c.bf16 %v1662_v24, %v1654_v14 }
 0x158   : > { %1301 = vst [vmem:[#allocation2 + $0x3d8] sm:$0x7] %v1285_v32  ;;  %v3532_v38 = vpack.c.bf16 %v1647_v35, %v1639_v34  ;;  %3341 = vmatprep.mubr.msk.f32.mxu0 %vm5832_vm10, %v4742_v30  ;;  %1150 = vrot.lane.b32.xlu0 %v4825_v37, %s4013_s8  ;;  %v4021_v30 = vmov 0  }
 0x159   : > { %3915 = vset.pattern.permute.xlu1 %v4021_v30  ;;  %3916 = vset.pattern.permute.xlu0 %v4021_v30  ;;  %v1356_v45 = vpop.permute.xlu1 %1355 }
 0x15a   : > { %v5015_v42 = vpop.permute.xlu0 %703  ;;  %3533 = vmatprep.subr.bf16.mxu1 %v3532_v38  ;;  %v1370_v1 = vsel %vm1367_vm7, %v4889_v28, %v1356_v45  ;;  %1234 = vrot.lane.b32.xlu1 %v4605_v8, %s4015_s10  ;;  %v1544_v28 = vld [vmem:[#allocation2 + $0x20] sm:$0xff] }
 0x15b   : > { %v713_v44 = vsel %vm707_vm2, %v702_v50, %v5015_v42  ;;  %3535 = vmatpush1.bf16.msra.mxu1 %v3534_v40  ;;  %v1655_v52 = vld [vmem:[#allocation2 + $0x398] sm:$0xff]  ;;  %1386 = vst [vmem:[#allocation2 + $0x450] sm:$0x7] %v1370_v1  ;;  %v1552_v19 = vld [vmem:[#allocation2 + $0x60] sm:$0xff] }
 0x15c   : > { %728 = vst [vmem:[#allocation2 + $0x68] sm:$0x7] %v713_v44  ;;  %1495 = vst [vmem:[#allocation2 + $0x560] sm:$0x7] %v713_v44  ;;  %1193 = vrot.lane.b32.xlu0 %v4825_v37, %s4014_s9  ;;  %v3558_v15 = vpack.c.bf16 %v1552_v19, %v1544_v28 }
 0x15d   : > { %v742_v59 = vpop.permute.xlu1 %741 }
 0x15e   : > { %v5025_v49 = vpop.permute.xlu0 %1314  ;;  %v752_v16 = vsel %vm5835_vm1, %v4772_v56, %v742_v59  ;;  %1277 = vrot.lane.b32.xlu1 %v4605_v8, %s4016_s11  ;;  %v1670_v50 = vld [vmem:[#allocation2 + $0x410] sm:$0xff] }
 0x15f   : > { %v1328_v51 = vsel %vm1324_vm6, %v1313_v26, %v5025_v49  ;;  %v1663_v12 = vld [vmem:[#allocation2 + $0x3d8] sm:$0xff]  ;;  %767 = vst [vmem:[#allocation2 + $0xa0] sm:$0x7] %v752_v16  ;;  %1507 = vst [vmem:[#allocation2 + $0x598] sm:$0x7] %v752_v16 }
 0x160   : > { %1344 = vst [vmem:[#allocation2 + $0x418] sm:$0x7] %v1328_v51  ;;  %v3536_v55 = vpack.c.bf16 %v1663_v12, %v1655_v52  ;;  %1236 = vrot.lane.b32.xlu0 %v4825_v37, %s4015_s10 }
 0x161   : > { %v782_v17 = vpop.permute.xlu1 %781 }
 0x162   : > { %v5035_v60 = vpop.permute.xlu0 %1357  ;;  %3537 = vmatprep.subr.bf16.mxu1 %v3536_v55  ;;  %v792_v56 = vsel %vm787_vm3, %v4782_v62, %v782_v17  ;;  %1320 = vrot.lane.b32.xlu1 %v4605_v8, %s4017_s12  ;;  %v1678_v46 = vld [vmem:[#allocation2 + $0x450] sm:$0xff]  ;;  %v1703_v55 = vld [vmem:[#allocation2 + $0x518] sm:$0xff] }
 0x163   : > { %v1371_v10 = vsel %vm1367_vm7, %v1356_v45, %v5035_v60  ;;  %3539 = vmatpush1.bf16.msra.mxu1 %v3538_v11  ;;  %v1553_v48 = vld [vmem:[#allocation2 + $0x68] sm:$0xff]  ;;  %807 = vst [vmem:[#allocation2 + $0xe0] sm:$0x7] %v792_v56  ;;  %1520 = vst [vmem:[#allocation2 + $0x5d8] sm:$0x7] %v792_v56  ;;  %v3542_v33 = vpack.c.bf16 %v1678_v46, %v1670_v50 }
 0x164   : > { %1387 = vst [vmem:[#allocation2 + $0x458] sm:$0x7] %v1371_v10  ;;  %v3556_v13 = vpack.c.bf16 %v1553_v48, %v1545_v58  ;;  %1279 = vrot.lane.b32.xlu0 %v4825_v37, %s4016_s11  ;;  %s4024_s11 = smov 56  }
 0x165   : > { %v1399_v21 = vpop.permute.xlu1 %1398 }
 0x166   : > { %v5045_v18 = vpop.permute.xlu0 %743  ;;  %3557 = vmatprep.subr.bf16.mxu0 %v3556_v13  ;;  %v1413_v62 = vsel %vm5831_vm8, %v4923_v61, %v1399_v21  ;;  %1363 = vrot.lane.b32.xlu1 %v4605_v8, %s4018_s13  ;;  %v1560_v30 = vld [vmem:[#allocation2 + $0xa0] sm:$0xff]  ;;  %v1702_v13 = vld [vmem:[#allocation2 + $0x510] sm:$0xff] }
 0x167   : > { %v753_v54 = vsel %vm5835_vm1, %v742_v59, %v5045_v18  ;;  %3559 = vmatpush1.bf16.msra.mxu0 %v3558_v15  ;;  %v1671_v25 = vld [vmem:[#allocation2 + $0x418] sm:$0xff]  ;;  %1429 = vst [vmem:[#allocation2 + $0x490] sm:$0x7] %v1413_v62  ;;  %v1710_v15 = vld [vmem:[#allocation2 + $0x550] sm:$0xff] }
 0x168   : > { %768 = vst [vmem:[#allocation2 + $0xa8] sm:$0x7] %v753_v54  ;;  %1508 = vst [vmem:[#allocation2 + $0x5a0] sm:$0x7] %v753_v54  ;;  %1322 = vrot.lane.b32.xlu0 %v4825_v37, %s4017_s12  ;;  %v1711_v59 = vld [vmem:[#allocation2 + $0x558] sm:$0xff]  ;;  %v3550_v46 = vpack.c.bf16 %v1710_v15, %v1702_v13  ;;  %s4025_s12 = smov 58  }
 0x169   : > { %v1442_v31 = vpop.permute.xlu1 %1441  ;;  %v1719_v62 = vld [vmem:[#allocation2 + $0x598] sm:$0xff] }
 0x16a   : > { %v5055_v22 = vpop.permute.xlu0 %783  ;;  %v1456_v61 = vsel %vm5830_vm9, %v4931_v2, %v1442_v31  ;;  %1406 = vrot.lane.b32.xlu1 %v4605_v8, %s4019_s14  ;;  %v1568_v41 = vld [vmem:[#allocation2 + $0xe0] sm:$0xff] }
 0x16b   : > { %v793_v23 = vsel %vm787_vm3, %v782_v17, %v5055_v22  ;;  %v1679_v27 = vld [vmem:[#allocation2 + $0x458] sm:$0xff]  ;;  %1472 = vst [vmem:[#allocation2 + $0x4d0] sm:$0x7] %v1456_v61  ;;  %v3562_v45 = vpack.c.bf16 %v1568_v41, %v1560_v30  ;;  %v1740_v17 = vld [vmem:[%s5818_s2] sm:$0x3f] }
 0x16c   : > { %808 = vst [vmem:[#allocation2 + $0xe8] sm:$0x7] %v793_v23  ;;  %1521 = vst [vmem:[#allocation2 + $0x5e0] sm:$0x7] %v793_v23  ;;  %v3540_v7 = vpack.c.bf16 %v1679_v27, %v1671_v25  ;;  %1365 = vrot.lane.b32.xlu0 %v4825_v37, %s4018_s13 }
 0x16d   : > { %v822_v35 = vpop.permute.xlu1 %821 }
 0x16e   : > { %v5065_v32 = vpop.permute.xlu0 %1400  ;;  %3541 = vmatprep.subr.bf16.mxu1 %v3540_v7  ;;  %v832_v40 = vsel %vm5834_vm4, %v4814_v9, %v822_v35  ;;  %1449 = vrot.lane.b32.xlu1 %v4605_v8, %s4020_s15  ;;  %v1686_v19 = vld [vmem:[#allocation2 + $0x490] sm:$0xff] }
 0x16f   : > { %v1414_v34 = vsel %vm5831_vm8, %v1399_v21, %v5065_v32  ;;  %3543 = vmatpush1.bf16.msra.mxu1 %v3542_v33  ;;  %v1561_v26 = vld [vmem:[#allocation2 + $0xa8] sm:$0xff]  ;;  %847 = vst [vmem:[#allocation2 + $0x120] sm:$0x7] %v832_v40  ;;  %1533 = vst [vmem:[#allocation2 + $0x618] sm:$0x7] %v832_v40  ;;  %vm5843_vm8 = vcmask 777216  }
 0x170   : > { %1430 = vst [vmem:[#allocation2 + $0x498] sm:$0x7] %v1414_v34  ;;  %1408 = vrot.lane.b32.xlu0 %v4825_v37, %s4019_s14  ;;  %v1727_v21 = vld [vmem:[#allocation2 + $0x5d8] sm:$0xff]  ;;  %v1726_v7 = vld [vmem:[#allocation2 + $0x5d0] sm:$0xff] }
 0x171   : > { %v862_v24 = vpop.permute.xlu1 %861  ;;  %v3552_v27 = vpack.c.bf16 %v1727_v21, %v1719_v62  ;;  %v1718_v34 = vld [vmem:[#allocation2 + $0x590] sm:$0xff] }
 0x172   : > { %v5075_v38 = vpop.permute.xlu0 %1443  ;;  %v872_v9 = vsel %vm5833_vm5, %v4831_v39, %v862_v24  ;;  %1486 = vrot.lane.b32.xlu1 %v4825_v37, %s4002_s19  ;;  %v1694_v12 = vld [vmem:[#allocation2 + $0x4d0] sm:$0xff]  ;;  %v3554_v41 = vpack.c.bf16 %v1726_v7, %v1718_v34 }
 0x173   : > { %v1457_v2 = vsel %vm5830_vm9, %v1442_v31, %v5075_v38  ;;  %v1569_v43 = vld [vmem:[#allocation2 + $0xe8] sm:$0xff]  ;;  %887 = vst [vmem:[#allocation2 + $0x160] sm:$0x7] %v872_v9  ;;  %vm5841_vm9 = vcmask 777216   ;;  %v3546_v16 = vpack.c.bf16 %v1694_v12, %v1686_v19  ;;  %v1547_v19 = vld [vmem:[#allocation2 + $0x38] sm:$0xff] }
 0x174   : > { %1473 = vst [vmem:[#allocation2 + $0x4d8] sm:$0x7] %v1457_v2  ;;  %v3560_v44 = vpack.c.bf16 %v1569_v43, %v1561_v26  ;;  %1451 = vrot.lane.b32.xlu0 %v4825_v37, %s4020_s15 }
 0x175   : > { %v902_v8 = vpop.permute.xlu1 %901 }
 0x176   : > { %v5085_v1 = vpop.permute.xlu0 %823  ;;  %3561 = vmatprep.subr.bf16.mxu0 %v3560_v44  ;;  %v912_v39 = vsel %vm5841_vm9, %v4863_v3, %v902_v8  ;;  %1512 = vrot.lane.b32.xlu1 %v4825_v37, %s4004_s23  ;;  %v3548_v3 = vpack.c.bf16 %v1711_v59, %v1703_v55  ;;  %vm5842_vm9 = vcmask 769024   ;;  %v1735_v44 = vld [vmem:[#allocation2 + $0x618] sm:$0xff] }
 0x177   : > { %v833_v51 = vsel %vm5834_vm4, %v822_v35, %v5085_v1  ;;  %3563 = vmatpush1.bf16.msra.mxu0 %v3562_v45  ;;  %v1687_v11 = vld [vmem:[#allocation2 + $0x498] sm:$0xff]  ;;  %927 = vst [vmem:[#allocation2 + $0x1a0] sm:$0x7] %v912_v39  ;;  %v1576_v35 = vld [vmem:[#allocation2 + $0x120] sm:$0xff] }
 0x178   : > { %848 = vst [vmem:[#allocation2 + $0x128] sm:$0x7] %v833_v51  ;;  %1534 = vst [vmem:[#allocation2 + $0x620] sm:$0x7] %v833_v51  ;;  %1499 = vrot.lane.b32.xlu0 %v4825_v37, %s4003_s20 }
 0x179   : > { %v942_v10 = vpop.permute.xlu1 %941 }
 0x17a   : > { %v5095_v52 = vpop.permute.xlu0 %863  ;;  %v952_v56 = vsel %vm5842_vm9, %v4873_v20, %v942_v10  ;;  %1743 = vperm.xlu1 %3915, %v1740_v17   ;;  %v1584_v20 = vld [vmem:[#allocation2 + $0x160] sm:$0xff]  ;;  %vm5844_vm9 = vcmask 760832  }
 0x17b   : > { %v873_v14 = vsel %vm5833_vm5, %v862_v24, %v5095_v52  ;;  %v1695_v58 = vld [vmem:[#allocation2 + $0x4d8] sm:$0xff]  ;;  %967 = vst [vmem:[#allocation2 + $0x1e0] sm:$0x7] %v952_v56  ;;  %v3566_v40 = vpack.c.bf16 %v1584_v20, %v1576_v35  ;;  %v1734_v24 = vld [vmem:[#allocation2 + $0x610] sm:$0xff] }
 0x17c   : > { %888 = vst [vmem:[#allocation2 + $0x168] sm:$0x7] %v873_v14  ;;  %v3544_v28 = vpack.c.bf16 %v1695_v58, %v1687_v11  ;;  %1525 = vrot.lane.b32.xlu0 %v4825_v37, %s4005_s24 }
 0x17d   : > { %v982_v23 = vpop.permute.xlu1 %981 }
 0x17e   : > { %v5105_v48 = vpop.permute.xlu0 %903  ;;  %3545 = vmatprep.subr.bf16.mxu1 %v3544_v28  ;;  %v992_v50 = vsel %vm5844_vm9, %v4905_v47, %v982_v23  ;;  %vm5846_vm9 = vcmask 752640   ;;  %v1592_v39 = vld [vmem:[#allocation2 + $0x1a0] sm:$0xff] }
 0x17f   : > { %v913_v54 = vsel %vm5843_vm8, %v902_v8, %v5105_v48  ;;  %3547 = vmatpush1.bf16.msra.mxu1 %v3546_v16  ;;  %vm5845_vm8 = vcmask 769024   ;;  %v1577_v31 = vld [vmem:[#allocation2 + $0x128] sm:$0xff]  ;;  %1007 = vst [vmem:[#allocation2 + $0x220] sm:$0x7] %v992_v50  ;;  %v1546_v16 = vld [vmem:[#allocation2 + $0x30] sm:$0xff] }
 0x180   : > { %928 = vst [vmem:[#allocation2 + $0x1a8] sm:$0x7] %v913_v54  ;;  %3549 = vmatprep.subr.bf16.mxu1 %v3548_v3 }
 0x181   : > { %v1022_v2 = vpop.permute.xlu1 %1021 }
 0x182   : > { %v5116_v25 = vpop.permute.xlu0 %943  ;;  %v1032_v47 = vsel %vm5846_vm9, %v4915_v57, %v1022_v2  ;;  %v1600_v9 = vld [vmem:[#allocation2 + $0x1e0] sm:$0xff]  ;;  %vm5848_vm9 = vcmask 518144  }
 0x183   : > { %v953_v33 = vsel %vm5845_vm8, %v942_v10, %v5116_v25  ;;  %3551 = vmatpush1.bf16.msra.mxu1 %v3550_v46  ;;  %v1585_v61 = vld [vmem:[#allocation2 + $0x168] sm:$0xff]  ;;  %vm5847_vm8 = vcmask 760832   ;;  %1047 = vst [vmem:[#allocation2 + $0x260] sm:$0x7] %v1032_v47  ;;  %v3570_v14 = vpack.c.bf16 %v1600_v9, %v1592_v39 }
 0x184   : > { %968 = vst [vmem:[#allocation2 + $0x1e8] sm:$0x7] %v953_v33  ;;  %3553 = vmatprep.subr.bf16.mxu1 %v3552_v27  ;;  %v3564_v37 = vpack.c.bf16 %v1585_v61, %v1577_v31 }
 0x185   : > { %v5128_v30 = vpop.permute.xlu1 %705 }
 0x186   : > { %v5122_v26 = vpop.permute.xlu0 %983  ;;  %3565 = vmatprep.subr.bf16.mxu0 %v3564_v37  ;;  %v714_v51 = vsel %vm707_vm2, %v5015_v42, %v5128_v30  ;;  %730 = vst.msk [vmem:[#allocation2 + $0x78] sm:$0x7] %vm5848_vm9, %v5128_v30  ;;  %v3956_v42 = vld [vmem:[%s5817_s1 + $0x8] sm:$0x3f]  ;;  %v1608_v27 = vld [vmem:[#allocation2 + $0x220] sm:$0xff] }
 0x187   : > { %v993_v43 = vsel %vm5847_vm8, %v982_v23, %v5122_v26  ;;  %3555 = vmatpush1.bf16.msra.mxu1 %v3554_v41  ;;  %3567 = vmatpush1.bf16.msra.mxu0 %v3566_v40  ;;  %vm5849_vm8 = vcmask 752640   ;;  %v1593_v8 = vld [vmem:[#allocation2 + $0x1a8] sm:$0xff]  ;;  %729 = vst [vmem:[#allocation2 + $0x70] sm:$0x7] %v714_v51  ;;  %1496 = vst [vmem:[#allocation2 + $0x568] sm:$0x7] %v714_v51 }
 0x188   : > { %1008 = vst [vmem:[#allocation2 + $0x228] sm:$0x7] %v993_v43  ;;  %1869 = vmatprep.subr.mxu1 %v1735_v44 }
 0x189   : > { %v5144_v11 = vpop.permute.xlu1 %1063 }
 0x18a   : > { %v5130_v45 = vpop.permute.xlu0 %1023  ;;  %v1616_v15 = vld [vmem:[#allocation2 + $0x260] sm:$0xff] }
 0x18b   : > { %v1033_v57 = vsel %vm5849_vm8, %v1022_v2, %v5130_v45  ;;  %1870 = vmatpush1.msra.mxu1 %v1734_v24  ;;  %v1601_v12 = vld [vmem:[#allocation2 + $0x1e8] sm:$0xff]  ;;  %v3574_v7 = vpack.c.bf16 %v1616_v15, %v1608_v27  ;;  %vm5850_vm8 = vmmov %vm5848_vm9 }
 0x18c   : > { %1048 = vst [vmem:[#allocation2 + $0x268] sm:$0x7] %v1033_v57  ;;  %1886 = vmatmul.mubr.f32.vlgmr.msra.gmra.mrb[0].mxu1 %v5000_v6  ;;  %v3568_v55 = vpack.c.bf16 %v1601_v12, %v1593_v8 }
 0x18d   : > { %3342 = vmatprep.mubr.msk.f32.mxu1 %vm5832_vm10, %v3956_v42  ;;  %v5150_v10 = vpop.permute.xlu1 %1103  ;;  %v1555_v13 = vld [vmem:[#allocation2 + $0x78] sm:$0xff]  ;;  %vm5853_vm10 = vcmask 777216  }
 0x18e   : > { %v1062_v58 = vpop.permute.xlu0 %1061  ;;  %3569 = vmatprep.subr.bf16.mxu0 %v3568_v55  ;;  %v1554_v46 = vld [vmem:[#allocation2 + $0x70] sm:$0xff] }
 0x18f   : > { %v1071_v59 = vsel %vm274_vm0, %v4947_v29, %v1062_v58  ;;  %v1072_v28 = vsel %vm274_vm0, %v1062_v58, %v5144_v11  ;;  %3571 = vmatpush1.bf16.msra.mxu0 %v3570_v14  ;;  %v3604_v29 = vpack.c.bf16 %v1555_v13, %v1547_v19  ;;  %v1609_v54 = vld [vmem:[#allocation2 + $0x228] sm:$0xff]  ;;  %v3606_v23 = vpack.c.bf16 %v1554_v46, %v1546_v16 }
 0x190   : > { %1086 = vst [vmem:[#allocation2 + $0x2a0] sm:$0x7] %v1071_v59  ;;  %1087 = vst [vmem:[#allocation2 + $0x2a8] sm:$0x7] %v1072_v28 }
 0x191   : > { %3605 = vmatprep.subr.bf16.mxu1 %v3604_v29  ;;  %v5156_v20 = vpop.permute.xlu1 %785 }
 0x192   : > { %v1102_v3 = vpop.permute.xlu0 %1101  ;;  %3607 = vmatpush1.bf16.msra.mxu1 %v3606_v23  ;;  %810 = vst.msk [vmem:[#allocation2 + $0xf8] sm:$0x7] %vm5848_vm9, %v5156_v20  ;;  %vm5851_vm9 = vmmov %vm5850_vm8 }
 0x193   : > { %v1114_v17 = vsel %vm1109_vm11, %v4957_v36, %v1102_v3  ;;  %v1115_v56 = vsel %vm1109_vm11, %v1102_v3, %v5150_v10  ;;  %v1617_v21 = vld [vmem:[#allocation2 + $0x268] sm:$0xff]  ;;  %v794_v36 = vsel %vm787_vm3, %v5055_v22, %v5156_v20 }
 0x194   : > { %1130 = vst [vmem:[#allocation2 + $0x2e0] sm:$0x7] %v1114_v17  ;;  %1131 = vst [vmem:[#allocation2 + $0x2e8] sm:$0x7] %v1115_v56  ;;  %v3572_v62 = vpack.c.bf16 %v1617_v21, %v1609_v54 }
 0x195   : > { %809 = vst [vmem:[#allocation2 + $0xf0] sm:$0x7] %v794_v36  ;;  %1522 = vst [vmem:[#allocation2 + $0x5e8] sm:$0x7] %v794_v36  ;;  %v5170_v31 = vpop.permute.xlu1 %1146 }
 0x196   : > { %v5158_v50 = vpop.permute.xlu0 %745  ;;  %3573 = vmatprep.subr.bf16.mxu0 %v3572_v62 }
 0x197   : > { %v754_v33 = vsel %vm5835_vm1, %v5045_v18, %v5158_v50  ;;  %770 = vst.msk [vmem:[#allocation2 + $0xb8] sm:$0x7] %vm5850_vm8, %v5158_v50  ;;  %3575 = vmatpush1.bf16.msra.mxu0 %v3574_v7  ;;  %v1625_v37 = vld [vmem:[#allocation2 + $0x2a8] sm:$0xff]  ;;  %v1624_v18 = vld [vmem:[#allocation2 + $0x2a0] sm:$0xff] }
 0x198   : > { %769 = vst [vmem:[#allocation2 + $0xb0] sm:$0x7] %v754_v33  ;;  %1509 = vst [vmem:[#allocation2 + $0x5a8] sm:$0x7] %v754_v33 }
 0x199   : > { %v5176_v47 = vpop.permute.xlu1 %1189  ;;  %v1571_v24 = vld [vmem:[#allocation2 + $0xf8] sm:$0xff] }
 0x19a   : > { %v1145_v61 = vpop.permute.xlu0 %1144 }
 0x19b   : > { %v1157_v22 = vsel %vm1152_vm12, %v4967_v53, %v1145_v61  ;;  %v1158_v34 = vsel %vm1152_vm12, %v1145_v61, %v5170_v31  ;;  %v1633_v35 = vld [vmem:[#allocation2 + $0x2e8] sm:$0xff]  ;;  %v1632_v41 = vld [vmem:[#allocation2 + $0x2e0] sm:$0xff] }
 0x19c   : > { %1173 = vst [vmem:[#allocation2 + $0x320] sm:$0x7] %v1157_v22  ;;  %1174 = vst [vmem:[#allocation2 + $0x328] sm:$0x7] %v1158_v34  ;;  %v3576_v40 = vpack.c.bf16 %v1633_v35, %v1625_v37  ;;  %v3578_v2 = vpack.c.bf16 %v1632_v41, %v1624_v18  ;;  %v1570_v8 = vld [vmem:[#allocation2 + $0xf0] sm:$0xff] }
 0x19d   : > { %v866_v55 = vpop.permute.xlu1 %865 }
 0x19e   : > { %v1188_v43 = vpop.permute.xlu0 %1187  ;;  %3577 = vmatprep.subr.bf16.mxu0 %v3576_v40  ;;  %v1563_v44 = vld [vmem:[#allocation2 + $0xb8] sm:$0xff]  ;;  %v874_v14 = vsel %vm5833_vm5, %v5095_v52, %v866_v55  ;;  %890 = vst.msk [vmem:[#allocation2 + $0x178] sm:$0x7] %vm5851_vm9, %v866_v55  ;;  %vm5852_vm9 = vcmask 769024   ;;  %vm5854_vm5 = vmmov %vm5850_vm8 }
 0x19f   : > { %v1200_v9 = vsel %vm1195_vm13, %v4977_v63, %v1188_v43  ;;  %v1201_v53 = vsel %vm1195_vm13, %v1188_v43, %v5176_v47  ;;  %3579 = vmatpush1.bf16.msra.mxu0 %v3578_v2  ;;  %v3608_v51 = vpack.c.bf16 %v1571_v24, %v1563_v44  ;;  %v1562_v57 = vld [vmem:[#allocation2 + $0xb0] sm:$0xff]  ;;  %889 = vst [vmem:[#allocation2 + $0x170] sm:$0x7] %v874_v14 }
 0x1a0   : > { %1216 = vst [vmem:[#allocation2 + $0x360] sm:$0x7] %v1200_v9  ;;  %1217 = vst [vmem:[#allocation2 + $0x368] sm:$0x7] %v1201_v53  ;;  %v3610_v12 = vpack.c.bf16 %v1570_v8, %v1562_v57 }
 0x1a1   : > { %3609 = vmatprep.subr.bf16.mxu1 %v3608_v51  ;;  %v5192_v42 = vpop.permute.xlu1 %1232 }
 0x1a2   : > { %v5182_v39 = vpop.permute.xlu0 %825  ;;  %3611 = vmatpush1.bf16.msra.mxu1 %v3610_v12 }
 0x1a3   : > { %v834_v63 = vsel %vm5834_vm4, %v5085_v1, %v5182_v39  ;;  %850 = vst.msk [vmem:[#allocation2 + $0x138] sm:$0x7] %vm5850_vm8, %v5182_v39  ;;  %v1641_v59 = vld [vmem:[#allocation2 + $0x328] sm:$0xff]  ;;  %v1640_v16 = vld [vmem:[#allocation2 + $0x320] sm:$0xff]  ;;  %vm5858_vm4 = vcmask 236544  }
 0x1a4   : > { %849 = vst [vmem:[#allocation2 + $0x130] sm:$0x7] %v834_v63  ;;  %1535 = vst [vmem:[#allocation2 + $0x628] sm:$0x7] %v834_v63 }
 0x1a5   : > { %v5198_v15 = vpop.permute.xlu1 %1275  ;;  %v1587_v29 = vld [vmem:[#allocation2 + $0x178] sm:$0xff]  ;;  %vm5859_vm1 = vmmov %vm5858_vm4 }
 0x1a6   : > { %v1231_v58 = vpop.permute.xlu0 %1230  ;;  %v1586_v62 = vld [vmem:[#allocation2 + $0x170] sm:$0xff] }
 0x1a7   : > { %v1243_v28 = vsel %vm1238_vm15, %v4987_v4, %v1231_v58  ;;  %v1244_v52 = vsel %vm1238_vm15, %v1231_v58, %v5192_v42  ;;  %v1649_v19 = vld [vmem:[#allocation2 + $0x368] sm:$0xff]  ;;  %v1648_v3 = vld [vmem:[#allocation2 + $0x360] sm:$0xff] }
 0x1a8   : > { %1259 = vst [vmem:[#allocation2 + $0x3a0] sm:$0x7] %v1243_v28  ;;  %1260 = vst [vmem:[#allocation2 + $0x3a8] sm:$0x7] %v1244_v52  ;;  %v3580_v1 = vpack.c.bf16 %v1649_v19, %v1641_v59  ;;  %v3582_v13 = vpack.c.bf16 %v1648_v3, %v1640_v16 }
 0x1a9   : > { %v946_v27 = vpop.permute.xlu1 %945 }
 0x1aa   : > { %v1274_v17 = vpop.permute.xlu0 %1273  ;;  %3581 = vmatprep.subr.bf16.mxu0 %v3580_v1  ;;  %v1579_v56 = vld [vmem:[#allocation2 + $0x138] sm:$0xff]  ;;  %v954_v36 = vsel %vm5852_vm9, %v5116_v25, %v946_v27  ;;  %970 = vst.msk [vmem:[#allocation2 + $0x1f8] sm:$0x7] %vm5850_vm8, %v946_v27  ;;  %vm5857_vm9 = vcmask 760832  }
 0x1ab   : > { %v1286_v54 = vsel %vm1281_vm14, %v5002_v5, %v1274_v17  ;;  %v1287_v4 = vsel %vm1281_vm14, %v1274_v17, %v5198_v15  ;;  %3583 = vmatpush1.bf16.msra.mxu0 %v3582_v13  ;;  %v3612_v21 = vpack.c.bf16 %v1587_v29, %v1579_v56  ;;  %v1578_v46 = vld [vmem:[#allocation2 + $0x130] sm:$0xff]  ;;  %969 = vst [vmem:[#allocation2 + $0x1f0] sm:$0x7] %v954_v36 }
 0x1ac   : > { %1302 = vst [vmem:[#allocation2 + $0x3e0] sm:$0x7] %v1286_v54  ;;  %1303 = vst [vmem:[#allocation2 + $0x3e8] sm:$0x7] %v1287_v4  ;;  %v3614_v23 = vpack.c.bf16 %v1586_v62, %v1578_v46 }
 0x1ad   : > { %3613 = vmatprep.subr.bf16.mxu1 %v3612_v21  ;;  %v5210_v33 = vpop.permute.xlu1 %1318 }
 0x1ae   : > { %v906_v7 = vpop.permute.xlu0 %905  ;;  %3615 = vmatpush1.bf16.msra.mxu1 %v3614_v23 }
 0x1af   : > { %v914_v5 = vsel %vm5853_vm10, %v5105_v48, %v906_v7  ;;  %930 = vst.msk [vmem:[#allocation2 + $0x1b8] sm:$0x7] %vm5854_vm5, %v906_v7  ;;  %v1657_v37 = vld [vmem:[#allocation2 + $0x3a8] sm:$0xff]  ;;  %v1656_v35 = vld [vmem:[#allocation2 + $0x3a0] sm:$0xff]  ;;  %vm5855_vm5 = vcmask 752640   ;;  %vm5856_vm10 = vmmov %vm5850_vm8 }
 0x1b0   : > { %929 = vst [vmem:[#allocation2 + $0x1b0] sm:$0x7] %v914_v5  ;;  %v1705_v5 = vld [vmem:[#allocation2 + $0x528] sm:$0xff] }
 0x1b1   : > { %v5216_v40 = vpop.permute.xlu1 %1361  ;;  %v1603_v44 = vld [vmem:[#allocation2 + $0x1f8] sm:$0xff] }
 0x1b2   : > { %v1317_v61 = vpop.permute.xlu0 %1316  ;;  %v1602_v51 = vld [vmem:[#allocation2 + $0x1f0] sm:$0xff] }
 0x1b3   : > { %v1329_v22 = vsel %vm1324_vm6, %v5025_v49, %v1317_v61  ;;  %v1330_v34 = vsel %vm1324_vm6, %v1317_v61, %v5210_v33  ;;  %v1665_v25 = vld [vmem:[#allocation2 + $0x3e8] sm:$0xff]  ;;  %v1664_v18 = vld [vmem:[#allocation2 + $0x3e0] sm:$0xff] }
 0x1b4   : > { %1345 = vst [vmem:[#allocation2 + $0x420] sm:$0x7] %v1329_v22  ;;  %1346 = vst [vmem:[#allocation2 + $0x428] sm:$0x7] %v1330_v34  ;;  %v3584_v48 = vpack.c.bf16 %v1665_v25, %v1657_v37  ;;  %v3586_v41 = vpack.c.bf16 %v1664_v18, %v1656_v35  ;;  %v1713_v61 = vld [vmem:[#allocation2 + $0x568] sm:$0xff] }
 0x1b5   : > { %v1026_v8 = vpop.permute.xlu1 %1025 }
 0x1b6   : > { %v1360_v2 = vpop.permute.xlu0 %1359  ;;  %3585 = vmatprep.subr.bf16.mxu0 %v3584_v48  ;;  %v1595_v43 = vld [vmem:[#allocation2 + $0x1b8] sm:$0xff]  ;;  %v1034_v55 = vsel %vm5855_vm5, %v5130_v45, %v1026_v8  ;;  %1050 = vst.msk [vmem:[#allocation2 + $0x278] sm:$0x7] %vm5856_vm10, %v1026_v8  ;;  %vm5860_vm5 = vcmask 228352  }
 0x1b7   : > { %v1372_v24 = vsel %vm1367_vm7, %v5035_v60, %v1360_v2  ;;  %v1373_v49 = vsel %vm1367_vm7, %v1360_v2, %v5216_v40  ;;  %3587 = vmatpush1.bf16.msra.mxu0 %v3586_v41  ;;  %v3616_v9 = vpack.c.bf16 %v1603_v44, %v1595_v43  ;;  %v1594_v53 = vld [vmem:[#allocation2 + $0x1b0] sm:$0xff]  ;;  %1049 = vst [vmem:[#allocation2 + $0x270] sm:$0x7] %v1034_v55  ;;  %v1704_v43 = vld [vmem:[#allocation2 + $0x520] sm:$0xff] }
 0x1b8   : > { %1388 = vst [vmem:[#allocation2 + $0x460] sm:$0x7] %v1372_v24  ;;  %1389 = vst [vmem:[#allocation2 + $0x468] sm:$0x7] %v1373_v49  ;;  %v3618_v57 = vpack.c.bf16 %v1602_v51, %v1594_v53  ;;  %v3596_v2 = vpack.c.bf16 %v1713_v61, %v1705_v5  ;;  %v1712_v44 = vld [vmem:[#allocation2 + $0x560] sm:$0xff]  ;;  %v1721_v24 = vld [vmem:[#allocation2 + $0x5a8] sm:$0xff] }
 0x1b9   : > { %3617 = vmatprep.subr.bf16.mxu1 %v3616_v9  ;;  %v5228_v14 = vpop.permute.xlu1 %1404  ;;  %v1729_v49 = vld [vmem:[#allocation2 + $0x5e8] sm:$0xff]  ;;  %v3598_v9 = vpack.c.bf16 %v1712_v44, %v1704_v43  ;;  %v1728_v55 = vld [vmem:[#allocation2 + $0x5e0] sm:$0xff] }
 0x1ba   : > { %v986_v12 = vpop.permute.xlu0 %985  ;;  %3619 = vmatpush1.bf16.msra.mxu1 %v3618_v57  ;;  %v3600_v57 = vpack.c.bf16 %v1729_v49, %v1721_v24 }
 0x1bb   : > { %v994_v60 = vsel %vm5857_vm9, %v5122_v26, %v986_v12  ;;  %1010 = vst.msk [vmem:[#allocation2 + $0x238] sm:$0x7] %vm5850_vm8, %v986_v12  ;;  %v1673_v58 = vld [vmem:[#allocation2 + $0x428] sm:$0xff]  ;;  %v1672_v52 = vld [vmem:[#allocation2 + $0x420] sm:$0xff] }
 0x1bc   : > { %1009 = vst [vmem:[#allocation2 + $0x230] sm:$0x7] %v994_v60 }
 0x1bd   : > { %v5234_v3 = vpop.permute.xlu1 %1447  ;;  %v1619_v17 = vld [vmem:[#allocation2 + $0x278] sm:$0xff] }
 0x1be   : > { %v1403_v63 = vpop.permute.xlu0 %1402  ;;  %v1618_v4 = vld [vmem:[#allocation2 + $0x270] sm:$0xff] }
 0x1bf   : > { %v1415_v59 = vsel %vm5858_vm4, %v5065_v32, %v1403_v63  ;;  %v1416_v28 = vsel %vm5859_vm1, %v1403_v63, %v5228_v14  ;;  %v1681_v45 = vld [vmem:[#allocation2 + $0x468] sm:$0xff]  ;;  %v1680_v19 = vld [vmem:[#allocation2 + $0x460] sm:$0xff]  ;;  %vm5861_vm4 = vmmov %vm5860_vm5 }
 0x1c0   : > { %1431 = vst [vmem:[#allocation2 + $0x4a0] sm:$0x7] %v1415_v59  ;;  %1432 = vst [vmem:[#allocation2 + $0x4a8] sm:$0x7] %v1416_v28  ;;  %v3588_v26 = vpack.c.bf16 %v1681_v45, %v1673_v58  ;;  %v3590_v16 = vpack.c.bf16 %v1680_v19, %v1672_v52  ;;  %v1720_v45 = vld [vmem:[#allocation2 + $0x5a0] sm:$0xff] }
 0x1c1   : > { %v1108_v46 = vpop.permute.xlu1 %1107  ;;  %vm5862_vm1 = vmmov %vm5850_vm8  ;;  %v3602_v52 = vpack.c.bf16 %v1728_v55, %v1720_v45 }
 0x1c2   : > { %v1446_v1 = vpop.permute.xlu0 %1445  ;;  %3589 = vmatprep.subr.bf16.mxu0 %v3588_v26  ;;  %v1611_v13 = vld [vmem:[#allocation2 + $0x238] sm:$0xff]  ;;  %vm5863_vm10 = vmmov %vm5862_vm1 }
 0x1c3   : > { %v1458_v56 = vsel %vm5860_vm5, %v5075_v38, %v1446_v1  ;;  %v1459_v32 = vsel %vm5861_vm4, %v1446_v1, %v5234_v3  ;;  %3591 = vmatpush1.bf16.msra.mxu0 %v3590_v16  ;;  %v3620_v29 = vpack.c.bf16 %v1619_v17, %v1611_v13  ;;  %v1610_v54 = vld [vmem:[#allocation2 + $0x230] sm:$0xff]  ;;  %vm5865_vm9 = vmmov %vm5862_vm1  ;;  %v1737_v1 = vld [vmem:[#allocation2 + $0x628] sm:$0xff]  ;;  %vm5869_vm5 = vcmask 236544  }
 0x1c4   : > { %1474 = vst [vmem:[#allocation2 + $0x4e0] sm:$0x7] %v1458_v56  ;;  %1475 = vst [vmem:[#allocation2 + $0x4e8] sm:$0x7] %v1459_v32  ;;  %v3622_v21 = vpack.c.bf16 %v1618_v4, %v1610_v54  ;;  %v1736_v56 = vld [vmem:[#allocation2 + $0x620] sm:$0xff] }
 0x1c5   : > { %3621 = vmatprep.subr.bf16.mxu1 %v3620_v29  ;;  %v1149_v38 = vpop.permute.xlu1 %1148  ;;  %vm5867_vm8 = vmmov %vm5862_vm1 }
 0x1c6   : > { %v1106_v62 = vpop.permute.xlu0 %1105  ;;  %3623 = vmatpush1.bf16.msra.mxu1 %v3622_v21  ;;  %v1159_v37 = vsel %vm1152_vm12, %v5170_v31, %v1149_v38  ;;  %vm5870_vm4 = vmmov %vm5862_vm1 }
 0x1c7   : > { %v1116_v23 = vsel %vm1109_vm11, %v5150_v10, %v1106_v62  ;;  %v1117_v27 = vsel %vm1109_vm11, %v1106_v62, %v1108_v46  ;;  %v1689_v36 = vld [vmem:[#allocation2 + $0x4a8] sm:$0xff]  ;;  %v1688_v10 = vld [vmem:[#allocation2 + $0x4a0] sm:$0xff]  ;;  %1175 = vst [vmem:[#allocation2 + $0x330] sm:$0x7] %v1159_v37  ;;  %vm5864_vm11 = vmmov %vm5862_vm1 }
 0x1c8   : > { %1132 = vst [vmem:[#allocation2 + $0x2f0] sm:$0x7] %v1116_v23  ;;  %1133 = vst.msk [vmem:[#allocation2 + $0x2f8] sm:$0x7] %vm5862_vm1, %v1117_v27 }
 0x1c9   : > { %v1192_v48 = vpop.permute.xlu1 %1191 }
 0x1ca   : > { %v1066_v7 = vpop.permute.xlu0 %1065  ;;  %v1202_v31 = vsel %vm1195_vm13, %v5176_v47, %v1192_v48 }
 0x1cb   : > { %v1073_v22 = vsel %vm274_vm0, %v5144_v11, %v1066_v7  ;;  %1089 = vst.msk [vmem:[#allocation2 + $0x2b8] sm:$0x7] %vm5863_vm10, %v1066_v7  ;;  %v1697_v34 = vld [vmem:[#allocation2 + $0x4e8] sm:$0xff]  ;;  %v1696_v25 = vld [vmem:[#allocation2 + $0x4e0] sm:$0xff]  ;;  %1218 = vst [vmem:[#allocation2 + $0x370] sm:$0x7] %v1202_v31 }
 0x1cc   : > { %1088 = vst [vmem:[#allocation2 + $0x2b0] sm:$0x7] %v1073_v22  ;;  %v3592_v35 = vpack.c.bf16 %v1697_v34, %v1689_v36  ;;  %v3594_v18 = vpack.c.bf16 %v1696_v25, %v1688_v10  ;;  %vm5873_vm10 = vmmov %vm5870_vm4 }
 0x1cd   : > { %v1235_v53 = vpop.permute.xlu1 %1234 }
 0x1ce   : > { %v1151_v41 = vpop.permute.xlu0 %1150  ;;  %3593 = vmatprep.subr.bf16.mxu0 %v3592_v35  ;;  %v1245_v60 = vsel %vm1238_vm15, %v5192_v42, %v1235_v53  ;;  %v1642_v46 = vld [vmem:[#allocation2 + $0x330] sm:$0xff] }
 0x1cf   : > { %v1160_v11 = vsel %vm1152_vm12, %v1149_v38, %v1151_v41  ;;  %3595 = vmatpush1.bf16.msra.mxu0 %v3594_v18  ;;  %v1635_v12 = vld [vmem:[#allocation2 + $0x2f8] sm:$0xff]  ;;  %v1634_v59 = vld [vmem:[#allocation2 + $0x2f0] sm:$0xff]  ;;  %1261 = vst [vmem:[#allocation2 + $0x3b0] sm:$0x7] %v1245_v60 }
 0x1d0   : > { %1176 = vst.msk [vmem:[#allocation2 + $0x338] sm:$0x7] %vm5864_vm11, %v1160_v11  ;;  %3597 = vmatprep.subr.bf16.mxu0 %v3596_v2 }
 0x1d1   : > { %v1278_v19 = vpop.permute.xlu1 %1277 }
 0x1d2   : > { %v1194_v51 = vpop.permute.xlu0 %1193  ;;  %v1627_v8 = vld [vmem:[#allocation2 + $0x2b8] sm:$0xff]  ;;  %v1288_v42 = vsel %vm1281_vm14, %v5198_v15, %v1278_v19  ;;  %v1650_v32 = vld [vmem:[#allocation2 + $0x370] sm:$0xff] }
 0x1d3   : > { %v1203_v47 = vsel %vm1195_vm13, %v1192_v48, %v1194_v51  ;;  %3599 = vmatpush1.bf16.msra.mxu0 %v3598_v9  ;;  %v3624_v63 = vpack.c.bf16 %v1635_v12, %v1627_v8  ;;  %v1626_v58 = vld [vmem:[#allocation2 + $0x2b0] sm:$0xff]  ;;  %1304 = vst [vmem:[#allocation2 + $0x3f0] sm:$0x7] %v1288_v42  ;;  %vm5866_vm13 = vmmov %vm5862_vm1  ;;  %v3630_v62 = vpack.c.bf16 %v1650_v32, %v1642_v46 }
 0x1d4   : > { %1219 = vst.msk [vmem:[#allocation2 + $0x378] sm:$0x7] %vm5865_vm9, %v1203_v47  ;;  %3601 = vmatprep.subr.bf16.mxu0 %v3600_v57  ;;  %v3626_v28 = vpack.c.bf16 %v1634_v59, %v1626_v58  ;;  %vm5876_vm9 = vmmov %vm5870_vm4  ;;  %v1707_v57 = vld [vmem:[#allocation2 + $0x538] sm:$0xff] }
 0x1d5   : > { %3625 = vmatprep.subr.bf16.mxu1 %v3624_v63  ;;  %v1321_v13 = vpop.permute.xlu1 %1320 }
 0x1d6   : > { %v1237_v26 = vpop.permute.xlu0 %1236  ;;  %3627 = vmatpush1.bf16.msra.mxu1 %v3626_v28  ;;  %v1331_v29 = vsel %vm1324_vm6, %v5210_v33, %v1321_v13  ;;  %v1658_v34 = vld [vmem:[#allocation2 + $0x3b0] sm:$0xff] }
 0x1d7   : > { %v1246_v16 = vsel %vm1238_vm15, %v1235_v53, %v1237_v26  ;;  %3603 = vmatpush1.bf16.msra.mxu0 %v3602_v52  ;;  %v1643_v4 = vld [vmem:[#allocation2 + $0x338] sm:$0xff]  ;;  %1347 = vst [vmem:[#allocation2 + $0x430] sm:$0x7] %v1331_v29  ;;  %v1706_v28 = vld [vmem:[#allocation2 + $0x530] sm:$0xff] }
 0x1d8   : > { %1262 = vst.msk [vmem:[#allocation2 + $0x3b8] sm:$0x7] %vm5866_vm13, %v1246_v16  ;;  %1940 = vmatprep.subr.mxu0 %v1737_v1  ;;  %vm5877_vm13 = vmmov %vm5870_vm4 }
 0x1d9   : > { %v1364_v23 = vpop.permute.xlu1 %1363 }
 0x1da   : > { %v1280_v17 = vpop.permute.xlu0 %1279  ;;  %v1374_v38 = vsel %vm1367_vm7, %v5216_v40, %v1364_v23  ;;  %v1666_v5 = vld [vmem:[#allocation2 + $0x3f0] sm:$0xff] }
 0x1db   : > { %v1289_v54 = vsel %vm1281_vm14, %v1278_v19, %v1280_v17  ;;  %1941 = vmatpush1.msra.mxu0 %v1736_v56  ;;  %v1651_v15 = vld [vmem:[#allocation2 + $0x378] sm:$0xff]  ;;  %1390 = vst [vmem:[#allocation2 + $0x470] sm:$0x7] %v1374_v38  ;;  %vm5868_vm14 = vmmov %vm5862_vm1  ;;  %v3634_v10 = vpack.c.bf16 %v1666_v5, %v1658_v34  ;;  %v3957_v56 = vld [vmem:[%s5817_s1] sm:$0x3f] }
 0x1dc   : > { %1305 = vst.msk [vmem:[#allocation2 + $0x3f8] sm:$0x7] %vm5867_vm8, %v1289_v54  ;;  %1957 = vmatmul.mubr.f32.vlgmr.msra.gmra.mrb[2].mxu0 %v5000_v6  ;;  %v3628_v21 = vpack.c.bf16 %v1651_v15, %v1643_v4  ;;  %vm5872_vm1 = vmmov %vm5869_vm5  ;;  %vm5878_vm8 = vcmask 1031168  }
 0x1dd   : > { %v1407_v7 = vpop.permute.xlu1 %1406 }
 0x1de   : > { %v1323_v27 = vpop.permute.xlu0 %1322  ;;  %3629 = vmatprep.subr.bf16.mxu1 %v3628_v21  ;;  %v1417_v6 = vsel %vm5869_vm5, %v5228_v14, %v1407_v7  ;;  %v1674_v24 = vld [vmem:[#allocation2 + $0x430] sm:$0xff]  ;;  %vm5880_vm5 = vcmask 1014784  }
 0x1df   : > { %v1332_v33 = vsel %vm1324_vm6, %v1321_v13, %v1323_v27  ;;  %3631 = vmatpush1.bf16.msra.mxu1 %v3630_v62  ;;  %v1659_v37 = vld [vmem:[#allocation2 + $0x3b8] sm:$0xff]  ;;  %1433 = vst [vmem:[#allocation2 + $0x4b0] sm:$0x7] %v1417_v6  ;;  %vm5871_vm6 = vcmask 228352  }
 0x1e0   : > { %1348 = vst.msk [vmem:[#allocation2 + $0x438] sm:$0x7] %vm5868_vm14, %v1332_v33  ;;  %vm5875_vm11 = vmmov %vm5871_vm6 }
 0x1e1   : > { %v1450_v25 = vpop.permute.xlu1 %1449  ;;  %vm5879_vm14 = vmmov %vm5870_vm4 }
 0x1e2   : > { %v1366_v36 = vpop.permute.xlu0 %1365  ;;  %v1460_v18 = vsel %vm5871_vm6, %v5234_v3, %v1450_v25  ;;  %v1682_v2 = vld [vmem:[#allocation2 + $0x470] sm:$0xff] }
 0x1e3   : > { %v1375_v61 = vsel %vm1367_vm7, %v1364_v23, %v1366_v36  ;;  %v1667_v22 = vld [vmem:[#allocation2 + $0x3f8] sm:$0xff]  ;;  %1476 = vst [vmem:[#allocation2 + $0x4f0] sm:$0x7] %v1460_v18  ;;  %vm5874_vm7 = vmmov %vm5870_vm4  ;;  %v3638_v49 = vpack.c.bf16 %v1682_v2, %v1674_v24 }
 0x1e4   : > { %1391 = vst.msk [vmem:[#allocation2 + $0x478] sm:$0x7] %vm5870_vm4, %v1375_v61  ;;  %v3632_v40 = vpack.c.bf16 %v1667_v22, %v1659_v37 }
 0x1e5   : > { %v1487_v14 = vpop.permute.xlu1 %1486 }
 0x1e6   : > { %v1409_v35 = vpop.permute.xlu0 %1408  ;;  %3633 = vmatprep.subr.bf16.mxu1 %v3632_v40  ;;  %v1488_v43 = vsel %vm707_vm2, %v5128_v30, %v1487_v14  ;;  %1498 = vst.msk [vmem:[#allocation2 + $0x578] sm:$0x7] %vm5874_vm7, %v1487_v14  ;;  %v1690_v58 = vld [vmem:[#allocation2 + $0x4b0] sm:$0xff] }
 0x1e7   : > { %v1418_v48 = vsel %vm5872_vm1, %v1407_v7, %v1409_v35  ;;  %3635 = vmatpush1.bf16.msra.mxu1 %v3634_v10  ;;  %v1675_v31 = vld [vmem:[#allocation2 + $0x438] sm:$0xff]  ;;  %1497 = vst [vmem:[#allocation2 + $0x570] sm:$0x7] %v1488_v43 }
 0x1e8   : > { %1434 = vst.msk [vmem:[#allocation2 + $0x4b8] sm:$0x7] %vm5873_vm10, %v1418_v48 }
 0x1e9   : > { %v1513_v9 = vpop.permute.xlu1 %1512 }
 0x1ea   : > { %v1452_v41 = vpop.permute.xlu0 %1451  ;;  %v1514_v51 = vsel %vm787_vm3, %v5156_v20, %v1513_v9  ;;  %1524 = vst.msk [vmem:[#allocation2 + $0x5f8] sm:$0x7] %vm5877_vm13, %v1513_v9  ;;  %v1698_v12 = vld [vmem:[#allocation2 + $0x4f0] sm:$0xff]  ;;  %vm5881_vm3 = vcmask 785408   ;;  %vm2213_vm13 = vcmask 998400  }
 0x1eb   : > { %v1461_v44 = vsel %vm5875_vm11, %v1450_v25, %v1452_v41  ;;  %v1683_v11 = vld [vmem:[#allocation2 + $0x478] sm:$0xff]  ;;  %1523 = vst [vmem:[#allocation2 + $0x5f0] sm:$0x7] %v1514_v51  ;;  %v3642_v59 = vpack.c.bf16 %v1698_v12, %v1690_v58 }
 0x1ec   : > { %1477 = vst.msk [vmem:[#allocation2 + $0x4f8] sm:$0x7] %vm5876_vm9, %v1461_v44  ;;  %v3636_v3 = vpack.c.bf16 %v1683_v11, %v1675_v31  ;;  %vm5888_vm9 = vmmov %vm5878_vm8 }
 0x1ed   : > { %v1715_v55 = vld [vmem:[#allocation2 + $0x578] sm:$0xff] }
 0x1ee   : > { %v1500_v53 = vpop.permute.xlu0 %1499  ;;  %3637 = vmatprep.subr.bf16.mxu1 %v3636_v3  ;;  %v1714_v45 = vld [vmem:[#allocation2 + $0x570] sm:$0xff] }
 0x1ef   : > { %v1501_v30 = vsel %vm5878_vm8, %v5158_v50, %v1500_v53  ;;  %1511 = vst.msk [vmem:[#allocation2 + $0x5b8] sm:$0x7] %vm5879_vm14, %v1500_v53  ;;  %3639 = vmatpush1.bf16.msra.mxu1 %v3638_v49  ;;  %v1691_v20 = vld [vmem:[#allocation2 + $0x4b8] sm:$0xff]  ;;  %v3644_v50 = vpack.c.bf16 %v1715_v55, %v1707_v57  ;;  %v3646_v42 = vpack.c.bf16 %v1714_v45, %v1706_v28  ;;  %vm5889_vm8 = vmmov %vm5880_vm5  ;;  %vm5890_vm14 = vcmask 588800  }
 0x1f0   : > { %1510 = vst [vmem:[#allocation2 + $0x5b0] sm:$0x7] %v1501_v30 }
 0x1f1   : > { %v1731_v19 = vld [vmem:[#allocation2 + $0x5f8] sm:$0xff] }
 0x1f2   : > { %v1526_v8 = vpop.permute.xlu0 %1525 }
 0x1f3   : > { %v1527_v60 = vsel %vm5880_vm5, %v5182_v39, %v1526_v8  ;;  %1537 = vst.msk [vmem:[#allocation2 + $0x638] sm:$0x7] %vm5870_vm4, %v1526_v8  ;;  %v1699_v47 = vld [vmem:[#allocation2 + $0x4f8] sm:$0xff]  ;;  %v1730_v39 = vld [vmem:[#allocation2 + $0x5f0] sm:$0xff]  ;;  %vm5891_vm5 = vmmov %vm5890_vm14  ;;  %vm2241_vm4 = vcmask 982016  }
 0x1f4   : > { %1536 = vst [vmem:[#allocation2 + $0x630] sm:$0x7] %v1527_v60  ;;  %v3640_v63 = vpack.c.bf16 %v1699_v47, %v1691_v20 }
 0x1f6   : > { %3641 = vmatprep.subr.bf16.mxu1 %v3640_v63  ;;  %v1723_v52 = vld [vmem:[#allocation2 + $0x5b8] sm:$0xff] }
 0x1f7   : > { %3643 = vmatpush1.bf16.msra.mxu1 %v3642_v59  ;;  %v3648_v26 = vpack.c.bf16 %v1731_v19, %v1723_v52  ;;  %v1722_v16 = vld [vmem:[#allocation2 + $0x5b0] sm:$0xff] }
 0x1f8   : > { %3645 = vmatprep.subr.bf16.mxu1 %v3644_v50  ;;  %v3650_v1 = vpack.c.bf16 %v1730_v39, %v1722_v16 }
 0x1f9   : > { %v1744_v32 = vpop.permute.xlu1 %1743 }
 0x1fa   : > { %v1739_v13 = vld [vmem:[#allocation2 + $0x638] sm:$0xff] }
 0x1fb   : > { %3647 = vmatpush1.bf16.msra.mxu1 %v3646_v42  ;;  %v1738_v17 = vld [vmem:[#allocation2 + $0x630] sm:$0xff] }
 0x1fc   : > { %3649 = vmatprep.subr.bf16.mxu1 %v3648_v26 }
 0x1ff   : > { %3651 = vmatpush1.bf16.msra.mxu1 %v3650_v1 }
 0x200   : > { %2011 = vmatprep.subr.mxu1 %v1739_v13 }
 0x203   : > { %2012 = vmatpush1.msra.mxu1 %v1738_v17 }
 0x204   : > { %2028 = vmatmul.mubr.f32.vlgmr.msra.gmra.mrb[2].mxu1 %v3957_v56 }
 0x22a   : > { %v1816_v29 = vpop.f32.mrb[0].mxu0 }
 0x22b   : > { %v1818_v54 = vpop.f32.mrb[1].mxu0  ;;  %v1817_v27 = vadd.f32 %v1816_v29, %v1744_v32 }
 0x22c   : > { %v1819_v4 = vadd.f32 %v1818_v54, %v1744_v32 }
 0x22d   : > { %v2034_v7 = vmax.f32 %v1817_v27, 0.0 }
 0x22e   : > { %v2035_v15 = vmax.f32 %v1819_v4, 0.0 }
 0x230   : > { %2052 = vrot.lane.b32.xlu0 %v2035_v15, %s4002_s19 }
 0x25f   : > { %v1887_v21 = vpop.f32.mrb[0].mxu1 }
 0x260   : > { %v1888_v46 = vadd.f32 %v1887_v21, %v1744_v32  ;;  %v1889_v62 = vpop.f32.mrb[1].mxu1 }
 0x261   : > { %v1890_v23 = vadd.f32 %v1889_v62, %v1744_v32 }
 0x262   : > { %v2036_v38 = vmax.f32 %v1888_v46, 0.0 }
 0x263   : > { %v2037_v33 = vmax.f32 %v1890_v23, 0.0 }
 0x264   : > { %2054 = vrot.lane.b32.xlu1 %v2036_v38, %s4002_s19 }
 0x265   : > { %2056 = vrot.lane.b32.xlu0 %v2037_v33, %s4002_s19 }
 0x269   : > { %2050 = vrot.lane.b32.xlu0 %v2034_v7, %s4002_s19 }
 0x2a2   : > { %v2053_v40 = vpop.permute.xlu0 %2052 }
 0x2af   : > { %v1958_v36 = vpop.f32.mrb[2].mxu0 }
 0x2b0   : > { %v1959_v5 = vadd.f32 %v1958_v36, %v1744_v32  ;;  %v1960_v6 = vpop.f32.mrb[3].mxu0 }
 0x2b1   : > { %v1961_v37 = vadd.f32 %v1960_v6, %v1744_v32 }
 0x2b2   : > { %v2038_v61 = vmax.f32 %v1959_v5, 0.0 }
 0x2b3   : > { %v2039_v22 = vmax.f32 %v1961_v37, 0.0  ;;  %v5415_v37 = vld [vmem:[%s5819_s3 + $0x8] sm:$0xff] }
 0x2b4   : > { %2058 = vrot.lane.b32.xlu1 %v2038_v61, %s4002_s19  ;;  %3343 = vmatprep.mubr.msk.f32.mxu0 %vm5890_vm14, %v5415_v37  ;;  %vm5899_vm14 = vmmov %vm5891_vm5 }
 0x2b5   : > { %3345 = vmatprep.mubr.msk.f32.mxu1 %vm5891_vm5, %v5415_v37 }
 0x2b8   : > { %2060 = vrot.lane.b32.xlu1 %v2039_v22, %s4002_s19 }
 0x2d6   : > { %v2055_v25 = vpop.permute.xlu1 %2054 }
 0x2d7   : > { %v2029_v34 = vpop.f32.mrb[2].mxu1  ;;  %v2057_v10 = vpop.permute.xlu0 %2056  ;;  %v2067_v41 = vsel %vm707_vm2, %v2053_v40, %v2055_v25 }
 0x2d8   : > { %v2030_v35 = vadd.f32 %v2029_v34, %v1744_v32  ;;  %v2031_v18 = vpop.f32.mrb[3].mxu1  ;;  %v2068_v43 = vsel %vm707_vm2, %v2055_v25, %v2057_v10  ;;  %v2082_v31 = vmax.f32 %v2035_v15, %v2067_v41 }
 0x2d9   : > { %v2032_v48 = vadd.f32 %v2031_v18, %v1744_v32  ;;  %v2083_v11 = vmax.f32 %v2036_v38, %v2068_v43 }
 0x2da   : > { %v2040_v14 = vmax.f32 %v2030_v35, 0.0 }
 0x2db   : > { %v2041_v2 = vmax.f32 %v2032_v48, 0.0  ;;  %v2051_v44 = vpop.permute.xlu0 %2050 }
 0x2dc   : > { %2062 = vrot.lane.b32.xlu0 %v2040_v14, %s4002_s19  ;;  %v2066_v3 = vsel %vm707_vm2, %v2051_v44, %v2053_v40 }
 0x2dd   : > { %2064 = vrot.lane.b32.xlu1 %v2041_v2, %s4002_s19  ;;  %v2081_v24 = vmax.f32 %v2034_v7, %v2066_v3  ;;  %s4022_s19 = smov 122  }
 0x2e0   : > { %2099 = vrot.lane.b32.xlu0 %v2082_v31, %s4006_s25 }
 0x2e1   : > { %2101 = vrot.lane.b32.xlu1 %v2083_v11, %s4006_s25 }
 0x2e5   : > { %2097 = vrot.lane.b32.xlu1 %v2081_v24, %s4006_s25 }
 0x326   : > { %v2059_v49 = vpop.permute.xlu1 %2058 }
 0x327   : > { %v2069_v9 = vsel %vm707_vm2, %v2057_v10, %v2059_v49 }
 0x328   : > { %v2084_v53 = vmax.f32 %v2037_v33, %v2069_v9 }
 0x32a   : > { %v2061_v51 = vpop.permute.xlu1 %2060  ;;  %2103 = vrot.lane.b32.xlu0 %v2084_v53, %s4006_s25 }
 0x32b   : > { %v2070_v30 = vsel %vm707_vm2, %v2059_v49, %v2061_v51 }
 0x32c   : > { %v5312_v57 = vmax.f32 %v2038_v61, %v2070_v30 }
 0x32e   : > { %2105 = vrot.lane.b32.xlu0 %v5312_v57, %s4006_s25 }
 0x34e   : > { %v2063_v8 = vpop.permute.xlu0 %2062 }
 0x34f   : > { %v2065_v12 = vpop.permute.xlu1 %2064  ;;  %v2071_v20 = vsel %vm707_vm2, %v2061_v51, %v2063_v8 }
 0x350   : > { %v2072_v55 = vsel %vm707_vm2, %v2063_v8, %v2065_v12  ;;  %v5317_v60 = vmax.f32 %v2041_v2, %v2065_v12  ;;  %v5326_v50 = vmax.f32 %v2039_v22, %v2071_v20  ;;  %vm5882_vm2 = vmmov %vm5881_vm3 }
 0x351   : > { %v5320_v47 = vmax.f32 %v2040_v14, %v2072_v55  ;;  %vm5883_vm6 = vmmov %vm5882_vm2 }
 0x352   : > { %2111 = vrot.lane.b32.xlu1 %v5317_v60, %s4006_s25  ;;  %v2100_v63 = vpop.permute.xlu0 %2099  ;;  %vm5884_vm1 = vmmov %vm5882_vm2 }
 0x353   : > { %v2102_v58 = vpop.permute.xlu1 %2101  ;;  %2109 = vrot.lane.b32.xlu0 %v5320_v47, %s4006_s25  ;;  %vm5885_vm10 = vmmov %vm5884_vm1 }
 0x354   : > { %v2114_v59 = vsel %vm5881_vm3, %v2100_v63, %v2102_v58  ;;  %vm5886_vm7 = vmmov %vm5884_vm1  ;;  %vm2378_vm3 = vcmask 457728  }
 0x355   : > { %v2129_v28 = vmax.f32 %v2082_v31, %v2114_v59  ;;  %vm5887_vm11 = vmmov %vm5884_vm1 }
 0x356   : > { %2107 = vrot.lane.b32.xlu1 %v5326_v50, %s4006_s25  ;;  %s4023_s25 = smov 120  }
 0x357   : > { %2137 = vst [vmem:[#allocation3 + $0x8] sm:$0x3f] %v2129_v28  ;;  %2394 = vst [vmem:[#allocation3 + $0x190] sm:$0x3f] %v2129_v28  ;;  %v2098_v45 = vpop.permute.xlu1 %2097  ;;  %2149 = vrot.lane.b32.xlu0 %v2129_v28, %s4003_s20 }
 0x358   : > { %v2113_v52 = vsel %vm5882_vm2, %v2098_v45, %v2100_v63  ;;  %vm2350_vm2 = vcmask 474112  }
 0x359   : > { %v2128_v19 = vmax.f32 %v2081_v24, %v2113_v52  ;;  %v2652_v24 = vld [vmem:[%s5820_s4] sm:$0xff] }
 0x35a   : > { %2176 = vrot.lane.b32.xlu1 %v2129_v28, %s4005_s24 }
 0x35b   : > { %2136 = vst [vmem:[#allocation3] sm:$0x3f] %v2128_v19  ;;  %2147 = vrot.lane.b32.xlu0 %v2128_v19, %s4003_s20 }
 0x35e   : > { %2203 = vrot.lane.b32.xlu1 %v2129_v28, %s4022_s19  ;;  %v2528_v59 = vld [vmem:[#allocation3 + $0x8] sm:$0xff] }
 0x35f   : > { %2201 = vrot.lane.b32.xlu0 %v2128_v19, %s4022_s19 }
 0x362   : > { %2174 = vrot.lane.b32.xlu1 %v2128_v19, %s4005_s24  ;;  %v2527_v52 = vld [vmem:[#allocation3] sm:$0xff] }
 0x363   : > { %2257 = vrot.lane.b32.xlu0 %v2128_v19, %s4011_s30 }
 0x366   : > { %2231 = vrot.lane.b32.xlu1 %v2129_v28, %s4023_s25 }
 0x367   : > { %2311 = vrot.lane.b32.xlu0 %v2128_v19, %s4015_s10 }
 0x36a   : > { %2259 = vrot.lane.b32.xlu1 %v2129_v28, %s4011_s30 }
 0x36b   : > { %2366 = vrot.lane.b32.xlu0 %v2128_v19, %s4024_s11 }
 0x36e   : > { %2229 = vrot.lane.b32.xlu1 %v2128_v19, %s4023_s25 }
 0x372   : > { %2286 = vrot.lane.b32.xlu1 %v2129_v28, %s4013_s8 }
 0x376   : > { %2313 = vrot.lane.b32.xlu1 %v2129_v28, %s4015_s10 }
 0x37a   : > { %2284 = vrot.lane.b32.xlu1 %v2128_v19, %s4013_s8 }
 0x37e   : > { %2340 = vrot.lane.b32.xlu1 %v2129_v28, %s4025_s12 }
 0x382   : > { %2368 = vrot.lane.b32.xlu1 %v2129_v28, %s4024_s11 }
 0x386   : > { %2338 = vrot.lane.b32.xlu1 %v2128_v19, %s4025_s12 }
 0x39c   : > { %v2104_v26 = vpop.permute.xlu0 %2103 }
 0x39d   : > { %v2115_v42 = vsel %vm5883_vm6, %v2102_v58, %v2104_v26  ;;  %vm5892_vm6 = vmmov %vm5888_vm9 }
 0x39e   : > { %v2130_v16 = vmax.f32 %v2083_v11, %v2115_v42 }
 0x3a0   : > { %2138 = vst [vmem:[#allocation3 + $0x10] sm:$0x3f] %v2130_v16  ;;  %2395 = vst [vmem:[#allocation3 + $0x198] sm:$0x3f] %v2130_v16  ;;  %2178 = vrot.lane.b32.xlu0 %v2130_v16, %s4005_s24  ;;  %2151 = vrot.lane.b32.xlu1 %v2130_v16, %s4003_s20  ;;  %v2106_v39 = vpop.permute.xlu0 %2105 }
 0x3a1   : > { %2481 = vst [vmem:[#allocation3 + $0x320] sm:$0x3f] %v2130_v16  ;;  %v2116_v1 = vsel %vm5884_vm1, %v2104_v26, %v2106_v39  ;;  %vm5893_vm1 = vmmov %vm5889_vm8 }
 0x3a2   : > { %v2131_v13 = vmax.f32 %v2084_v53, %v2116_v1 }
 0x3a4   : > { %2139 = vst [vmem:[#allocation3 + $0x18] sm:$0x3f] %v2131_v13  ;;  %2396 = vst [vmem:[#allocation3 + $0x1a0] sm:$0x3f] %v2131_v13  ;;  %2205 = vrot.lane.b32.xlu0 %v2130_v16, %s4022_s19  ;;  %2153 = vrot.lane.b32.xlu1 %v2131_v13, %s4003_s20 }
 0x3a5   : > { %2482 = vst [vmem:[#allocation3 + $0x328] sm:$0x3f] %v2131_v13 }
 0x3a8   : > { %2233 = vrot.lane.b32.xlu0 %v2130_v16, %s4023_s25  ;;  %2180 = vrot.lane.b32.xlu1 %v2131_v13, %s4005_s24 }
 0x3ac   : > { %2261 = vrot.lane.b32.xlu0 %v2130_v16, %s4011_s30  ;;  %2207 = vrot.lane.b32.xlu1 %v2131_v13, %s4022_s19 }
 0x3b0   : > { %2288 = vrot.lane.b32.xlu0 %v2130_v16, %s4013_s8  ;;  %2235 = vrot.lane.b32.xlu1 %v2131_v13, %s4023_s25 }
 0x3b4   : > { %2315 = vrot.lane.b32.xlu0 %v2130_v16, %s4015_s10  ;;  %2263 = vrot.lane.b32.xlu1 %v2131_v13, %s4011_s30 }
 0x3b8   : > { %2342 = vrot.lane.b32.xlu0 %v2130_v16, %s4025_s12  ;;  %2290 = vrot.lane.b32.xlu1 %v2131_v13, %s4013_s8 }
 0x3bc   : > { %2370 = vrot.lane.b32.xlu0 %v2130_v16, %s4024_s11  ;;  %2317 = vrot.lane.b32.xlu1 %v2131_v13, %s4015_s10 }
 0x3c0   : > { %2344 = vrot.lane.b32.xlu1 %v2131_v13, %s4025_s12 }
 0x3c4   : > { %v5369_v17 = vpop.permute.xlu1 %2111  ;;  %2372 = vrot.lane.b32.xlu1 %v2131_v13, %s4024_s11 }
 0x3c5   : > { %v2110_v56 = vpop.permute.xlu0 %2109  ;;  %v2135_v43 = vmax.f32 %v5317_v60, %v5369_v17 }
 0x3c6   : > { %v2119_v32 = vsel %vm5885_vm10, %v2110_v56, %v5369_v17  ;;  %vm5894_vm10 = vmmov %vm5892_vm6 }
 0x3c7   : > { %v5375_v29 = vmax.f32 %v5320_v47, %v2119_v32 }
 0x3c8   : > { %v2108_v54 = vpop.permute.xlu1 %2107 }
 0x3c9   : > { %2485 = vst [vmem:[#allocation3 + $0x340] sm:$0x3f] %v5375_v29  ;;  %v2117_v4 = vsel %vm5886_vm7, %v2106_v39, %v2108_v54  ;;  %v2118_v15 = vsel %vm5887_vm11, %v2108_v54, %v2110_v56  ;;  %v5380_v21 = vpop.permute.xlu0 %2149  ;;  %vm5895_vm7 = vmmov %vm5893_vm1 }
 0x3ca   : > { %v2132_v46 = vmax.f32 %v5312_v57, %v2117_v4  ;;  %v5384_v62 = vmax.f32 %v5326_v50, %v2118_v15  ;;  %vm5896_vm11 = vmmov %vm5892_vm6 }
 0x3cc   : > { %2140 = vst [vmem:[#allocation3 + $0x20] sm:$0x3f] %v2132_v46  ;;  %2397 = vst [vmem:[#allocation3 + $0x1a8] sm:$0x3f] %v2132_v46  ;;  %v5388_v23 = vpop.permute.xlu1 %2176  ;;  %2155 = vrot.lane.b32.xlu0 %v2132_v46, %s4003_s20  ;;  %2157 = vrot.lane.b32.xlu1 %v5384_v62, %s4003_s20 }
 0x3cd   : > { %2398 = vst [vmem:[#allocation3 + $0x1b0] sm:$0x3f] %v5384_v62  ;;  %2483 = vst [vmem:[#allocation3 + $0x330] sm:$0x3f] %v2132_v46  ;;  %v2148_v27 = vpop.permute.xlu0 %2147 }
 0x3ce   : > { %2484 = vst [vmem:[#allocation3 + $0x338] sm:$0x3f] %v5384_v62  ;;  %v2159_v38 = vsel %vm5888_vm9, %v2148_v27, %v5380_v21  ;;  %vm5897_vm9 = vmmov %vm5892_vm6 }
 0x3cf   : > { %2169 = vst [vmem:[#allocation3 + $0x28] sm:$0x3f] %v2159_v38 }
 0x3d0   : > { %v5395_v33 = vpop.permute.xlu1 %2203  ;;  %2182 = vrot.lane.b32.xlu0 %v2132_v46, %s4005_s24  ;;  %2211 = vrot.lane.b32.xlu1 %v5384_v62, %s4022_s19 }
 0x3d1   : > { %v2202_v7 = vpop.permute.xlu0 %2201 }
 0x3d2   : > { %v2214_v36 = vsel %vm2213_vm13, %v2202_v7, %v5395_v33 }
 0x3d3   : > { %2224 = vst [vmem:[#allocation3 + $0x78] sm:$0x3f] %v2214_v36 }
 0x3d4   : > { %v2175_v5 = vpop.permute.xlu1 %2174  ;;  %2209 = vrot.lane.b32.xlu0 %v2132_v46, %s4022_s19  ;;  %2267 = vrot.lane.b32.xlu1 %v5384_v62, %s4011_s30 }
 0x3d5   : > { %v2186_v6 = vsel %vm5889_vm8, %v2175_v5, %v5388_v23  ;;  %v2258_v22 = vpop.permute.xlu0 %2257  ;;  %vm5898_vm8 = vmmov %vm5893_vm1 }
 0x3d6   : > { %2196 = vst [vmem:[#allocation3 + $0x50] sm:$0x3f] %v2186_v6  ;;  %v2532_v63 = vld [vmem:[#allocation3 + $0x28] sm:$0xff] }
 0x3d7   : > { %v3654_v19 = vpack.c.bf16 %v2532_v63, %v2527_v52 }
 0x3d8   : > { %v5407_v61 = vpop.permute.xlu1 %2231  ;;  %2237 = vrot.lane.b32.xlu0 %v2132_v46, %s4023_s25  ;;  %2321 = vrot.lane.b32.xlu1 %v5384_v62, %s4015_s10 }
 0x3d9   : > { %v2312_v18 = vpop.permute.xlu0 %2311 }
 0x3da   : > { %v2542_v32 = vld [vmem:[#allocation3 + $0x78] sm:$0xff] }
 0x3dc   : > { %v5417_v40 = vpop.permute.xlu1 %2259  ;;  %2265 = vrot.lane.b32.xlu0 %v2132_v46, %s4011_s30  ;;  %2376 = vrot.lane.b32.xlu1 %v5384_v62, %s4024_s11 }
 0x3dd   : > { %v2269_v34 = vsel %vm274_vm0, %v2258_v22, %v5417_v40  ;;  %v2367_v31 = vpop.permute.xlu0 %2366  ;;  %v2537_v16 = vld [vmem:[#allocation3 + $0x50] sm:$0xff] }
 0x3de   : > { %2279 = vst [vmem:[#allocation3 + $0xc8] sm:$0x3f] %v2269_v34  ;;  %v3658_v54 = vpack.c.bf16 %v2542_v32, %v2537_v16 }
 0x3e0   : > { %v2230_v10 = vpop.permute.xlu1 %2229  ;;  %2292 = vrot.lane.b32.xlu0 %v2132_v46, %s4013_s8  ;;  %2409 = vrot.lane.b32.xlu1 %v5375_v29, %s4005_s24 }
 0x3e1   : > { %v2242_v25 = vsel %vm2241_vm4, %v2230_v10, %v5407_v61 }
 0x3e2   : > { %2252 = vst [vmem:[#allocation3 + $0xa0] sm:$0x3f] %v2242_v25 }
 0x3e4   : > { %v5433_v35 = vpop.permute.xlu1 %2286  ;;  %2319 = vrot.lane.b32.xlu0 %v2132_v46, %s4015_s10  ;;  %2427 = vrot.lane.b32.xlu1 %v5375_v29, %s4023_s25 }
 0x3e5   : > { %v2552_v6 = vld [vmem:[#allocation3 + $0xc8] sm:$0xff] }
 0x3e8   : > { %v5438_v48 = vpop.permute.xlu1 %2313  ;;  %2346 = vrot.lane.b32.xlu0 %v2132_v46, %s4025_s12  ;;  %2445 = vrot.lane.b32.xlu1 %v5375_v29, %s4013_s8 }
 0x3e9   : > { %v2323_v14 = vsel %vm1238_vm15, %v2312_v18, %v5438_v48  ;;  %v2547_v27 = vld [vmem:[#allocation3 + $0xa0] sm:$0xff] }
 0x3ea   : > { %2333 = vst [vmem:[#allocation3 + $0x118] sm:$0x3f] %v2323_v14 }
 0x3ec   : > { %v2285_v41 = vpop.permute.xlu1 %2284  ;;  %2374 = vrot.lane.b32.xlu0 %v2132_v46, %s4024_s11  ;;  %2463 = vrot.lane.b32.xlu1 %v5375_v29, %s4025_s12 }
 0x3ed   : > { %v2296_v2 = vsel %vm1152_vm12, %v2285_v41, %v5433_v35 }
 0x3ee   : > { %2306 = vst [vmem:[#allocation3 + $0xf0] sm:$0x3f] %v2296_v2 }
 0x3f0   : > { %v5452_v44 = vpop.permute.xlu1 %2340  ;;  %2184 = vrot.lane.b32.xlu0 %v5384_v62, %s4005_s24  ;;  %2487 = vrot.lane.b32.xlu1 %v2135_v43, %s4003_s20 }
 0x3f4   : > { %v5457_v11 = vpop.permute.xlu1 %2368  ;;  %2239 = vrot.lane.b32.xlu0 %v5384_v62, %s4023_s25  ;;  %2505 = vrot.lane.b32.xlu1 %v2135_v43, %s4022_s19 }
 0x3f5   : > { %v2379_v3 = vsel %vm2378_vm3, %v2367_v31, %v5457_v11  ;;  %v2557_v18 = vld [vmem:[#allocation3 + $0xf0] sm:$0xff] }
 0x3f6   : > { %2389 = vst [vmem:[#allocation3 + $0x168] sm:$0x3f] %v2379_v3 }
 0x3f8   : > { %v2339_v49 = vpop.permute.xlu1 %2338  ;;  %2294 = vrot.lane.b32.xlu0 %v5384_v62, %s4013_s8  ;;  %2656 = vperm.xlu1 %3915, %v2652_v24  }
 0x3f9   : > { %v2351_v9 = vsel %vm2350_vm2, %v2339_v49, %v5452_v44 }
 0x3fa   : > { %2361 = vst [vmem:[#allocation3 + $0x140] sm:$0x3f] %v2351_v9 }
 0x3fc   : > { %2348 = vrot.lane.b32.xlu0 %v5384_v62, %s4025_s12 }
 0x400   : > { %2400 = vrot.lane.b32.xlu0 %v5375_v29, %s4003_s20 }
 0x404   : > { %2418 = vrot.lane.b32.xlu0 %v5375_v29, %s4022_s19 }
 0x408   : > { %2436 = vrot.lane.b32.xlu0 %v5375_v29, %s4011_s30 }
 0x40c   : > { %2454 = vrot.lane.b32.xlu0 %v5375_v29, %s4015_s10 }
 0x410   : > { %2472 = vrot.lane.b32.xlu0 %v5375_v29, %s4024_s11  ;;  %v2653_v29 = vld [vmem:[%s5820_s4 + $0x8] sm:$0xff] }
 0x412   : > { %v2152_v53 = vpop.permute.xlu1 %2151  ;;  %v2179_v51 = vpop.permute.xlu0 %2178 }
 0x413   : > { %v2160_v30 = vsel %vm5892_vm6, %v5380_v21, %v2152_v53  ;;  %v2187_v57 = vsel %vm5893_vm1, %v5388_v23, %v2179_v51  ;;  %vm5900_vm6 = vmmov %vm5893_vm1 }
 0x414   : > { %2170 = vst [vmem:[#allocation3 + $0x30] sm:$0x3f] %v2160_v30  ;;  %2404 = vst [vmem:[#allocation3 + $0x1b8] sm:$0x3f] %v2160_v30  ;;  %2496 = vrot.lane.b32.xlu0 %v2135_v43, %s4005_s24 }
 0x415   : > { %2197 = vst [vmem:[#allocation3 + $0x58] sm:$0x3f] %v2187_v57  ;;  %2413 = vst [vmem:[#allocation3 + $0x1e0] sm:$0x3f] %v2187_v57 }
 0x416   : > { %v5488_v8 = vpop.permute.xlu1 %2153  ;;  %v2206_v12 = vpop.permute.xlu0 %2205 }
 0x417   : > { %v2161_v55 = vsel %vm5894_vm10, %v2152_v53, %v5488_v8  ;;  %v2215_v60 = vsel %vm2213_vm13, %v5395_v33, %v2206_v12 }
 0x418   : > { %2171 = vst [vmem:[#allocation3 + $0x38] sm:$0x3f] %v2161_v55  ;;  %2405 = vst [vmem:[#allocation3 + $0x1c0] sm:$0x3f] %v2161_v55  ;;  %2514 = vrot.lane.b32.xlu0 %v2135_v43, %s4023_s25 }
 0x419   : > { %2491 = vst [vmem:[#allocation3 + $0x348] sm:$0x3f] %v2161_v55  ;;  %2225 = vst [vmem:[#allocation3 + $0x80] sm:$0x3f] %v2215_v60 }
 0x41a   : > { %2422 = vst [vmem:[#allocation3 + $0x208] sm:$0x3f] %v2215_v60  ;;  %v5495_v20 = vpop.permute.xlu1 %2180  ;;  %v2234_v47 = vpop.permute.xlu0 %2233  ;;  %v2578_v60 = vld [vmem:[#allocation3 + $0x198] sm:$0xff] }
 0x41b   : > { %v2188_v58 = vsel %vm5895_vm7, %v2179_v51, %v5495_v20  ;;  %v2243_v50 = vsel %vm2241_vm4, %v5407_v61, %v2234_v47  ;;  %v2533_v28 = vld [vmem:[#allocation3 + $0x30] sm:$0xff]  ;;  %v3662_v61 = vpack.c.bf16 %v2552_v6, %v2547_v27  ;;  %v2582_v63 = vld [vmem:[#allocation3 + $0x1b8] sm:$0xff] }
 0x41c   : > { %2198 = vst [vmem:[#allocation3 + $0x60] sm:$0x3f] %v2188_v58  ;;  %2414 = vst [vmem:[#allocation3 + $0x1e8] sm:$0x3f] %v2188_v58  ;;  %v3652_v45 = vpack.c.bf16 %v2533_v28, %v2528_v59  ;;  %v2538_v13 = vld [vmem:[#allocation3 + $0x58] sm:$0xff]  ;;  %2661 = vperm.xlu0 %3916, %v2653_v29  }
 0x41d   : > { %2500 = vst [vmem:[#allocation3 + $0x370] sm:$0x3f] %v2188_v58  ;;  %2253 = vst [vmem:[#allocation3 + $0xa8] sm:$0x3f] %v2243_v50 }
 0x41e   : > { %2431 = vst [vmem:[#allocation3 + $0x230] sm:$0x3f] %v2243_v50  ;;  %v5501_v26 = vpop.permute.xlu1 %2207  ;;  %3653 = vmatprep.subr.bf16.mxu0 %v3652_v45  ;;  %v2262_v42 = vpop.permute.xlu0 %2261  ;;  %v2577_v50 = vld [vmem:[#allocation3 + $0x190] sm:$0xff] }
 0x41f   : > { %v2216_v39 = vsel %vm2213_vm13, %v2206_v12, %v5501_v26  ;;  %v2270_v1 = vsel %vm274_vm0, %v5417_v40, %v2262_v42  ;;  %3655 = vmatpush1.bf16.msra.mxu0 %v3654_v19  ;;  %v2583_v30 = vld [vmem:[#allocation3 + $0x1c0] sm:$0xff]  ;;  %v2572_v12 = vld [vmem:[#allocation3 + $0x168] sm:$0xff]  ;;  %v3674_v59 = vpack.c.bf16 %v2582_v63, %v2577_v50 }
 0x420   : > { %v2543_v17 = vld [vmem:[#allocation3 + $0x80] sm:$0xff]  ;;  %2226 = vst [vmem:[#allocation3 + $0x88] sm:$0x3f] %v2216_v39  ;;  %2423 = vst [vmem:[#allocation3 + $0x210] sm:$0x3f] %v2216_v39 }
 0x421   : > { %2509 = vst [vmem:[#allocation3 + $0x398] sm:$0x3f] %v2216_v39  ;;  %2280 = vst [vmem:[#allocation3 + $0xd0] sm:$0x3f] %v2270_v1  ;;  %v3656_v56 = vpack.c.bf16 %v2543_v17, %v2538_v13  ;;  %v2587_v13 = vld [vmem:[#allocation3 + $0x1e0] sm:$0xff] }
 0x422   : > { %2440 = vst [vmem:[#allocation3 + $0x258] sm:$0x3f] %v2270_v1  ;;  %v5510_v4 = vpop.permute.xlu1 %2235  ;;  %v2289_v15 = vpop.permute.xlu0 %2288  ;;  %v2627_v50 = vld [vmem:[#allocation3 + $0x320] sm:$0xff] }
 0x423   : > { %3657 = vmatprep.subr.bf16.mxu0 %v3656_v56  ;;  %v2244_v21 = vsel %vm2241_vm4, %v2234_v47, %v5510_v4  ;;  %v2297_v46 = vsel %vm1152_vm12, %v5433_v35, %v2289_v15  ;;  %v3672_v47 = vpack.c.bf16 %v2583_v30, %v2578_v60  ;;  %v2588_v28 = vld [vmem:[#allocation3 + $0x1e8] sm:$0xff] }
 0x424   : > { %3659 = vmatpush1.bf16.msra.mxu0 %v3658_v54  ;;  %2254 = vst [vmem:[#allocation3 + $0xb0] sm:$0x3f] %v2244_v21  ;;  %2432 = vst [vmem:[#allocation3 + $0x238] sm:$0x3f] %v2244_v21  ;;  %v2548_v7 = vld [vmem:[#allocation3 + $0xa8] sm:$0xff] }
 0x425   : > { %2518 = vst [vmem:[#allocation3 + $0x3c0] sm:$0x3f] %v2244_v21  ;;  %2307 = vst [vmem:[#allocation3 + $0xf8] sm:$0x3f] %v2297_v46 }
 0x426   : > { %2449 = vst [vmem:[#allocation3 + $0x280] sm:$0x3f] %v2297_v46  ;;  %v5516_v62 = vpop.permute.xlu1 %2263  ;;  %v2316_v23 = vpop.permute.xlu0 %2315  ;;  %v2597_v46 = vld [vmem:[#allocation3 + $0x230] sm:$0xff] }
 0x427   : > { %v2271_v38 = vsel %vm274_vm0, %v2262_v42, %v5516_v62  ;;  %v2324_v33 = vsel %vm1238_vm15, %v5438_v48, %v2316_v23  ;;  %v2593_v58 = vld [vmem:[#allocation3 + $0x210] sm:$0xff]  ;;  %v2592_v42 = vld [vmem:[#allocation3 + $0x208] sm:$0xff] }
 0x428   : > { %v2553_v36 = vld [vmem:[#allocation3 + $0xd0] sm:$0xff]  ;;  %2281 = vst [vmem:[#allocation3 + $0xd8] sm:$0x3f] %v2271_v38  ;;  %2441 = vst [vmem:[#allocation3 + $0x260] sm:$0x3f] %v2271_v38  ;;  %v3676_v19 = vpack.c.bf16 %v2593_v58, %v2588_v28  ;;  %v3678_v17 = vpack.c.bf16 %v2592_v42, %v2587_v13 }
 0x429   : > { %2334 = vst [vmem:[#allocation3 + $0x120] sm:$0x3f] %v2324_v33  ;;  %2458 = vst [vmem:[#allocation3 + $0x2a8] sm:$0x3f] %v2324_v33  ;;  %v3660_v5 = vpack.c.bf16 %v2553_v36, %v2548_v7  ;;  %v2602_v54 = vld [vmem:[#allocation3 + $0x258] sm:$0xff]  ;;  %v2637_v13 = vld [vmem:[#allocation3 + $0x370] sm:$0xff] }
 0x42a   : > { %v5522_v22 = vpop.permute.xlu1 %2290  ;;  %v2343_v40 = vpop.permute.xlu0 %2342 }
 0x42b   : > { %3661 = vmatprep.subr.bf16.mxu0 %v3660_v5  ;;  %v2298_v34 = vsel %vm1152_vm12, %v2289_v15, %v5522_v22  ;;  %v2352_v10 = vsel %vm2350_vm2, %v5452_v44, %v2343_v40  ;;  %v2562_v44 = vld [vmem:[#allocation3 + $0x118] sm:$0xff] }
 0x42c   : > { %3663 = vmatpush1.bf16.msra.mxu0 %v3662_v61  ;;  %2308 = vst [vmem:[#allocation3 + $0x100] sm:$0x3f] %v2298_v34  ;;  %2450 = vst [vmem:[#allocation3 + $0x288] sm:$0x3f] %v2298_v34  ;;  %v2558_v41 = vld [vmem:[#allocation3 + $0xf8] sm:$0xff]  ;;  %v3666_v31 = vpack.c.bf16 %v2562_v44, %v2557_v18  ;;  %v2529_v18 = vld [vmem:[#allocation3 + $0x10] sm:$0xff] }
 0x42d   : > { %2362 = vst [vmem:[#allocation3 + $0x148] sm:$0x3f] %v2352_v10  ;;  %2467 = vst [vmem:[#allocation3 + $0x2d0] sm:$0x3f] %v2352_v10  ;;  %v2598_v56 = vld [vmem:[#allocation3 + $0x238] sm:$0xff] }
 0x42e   : > { %v5528_v25 = vpop.permute.xlu1 %2317  ;;  %v2371_v35 = vpop.permute.xlu0 %2370  ;;  %v2534_v5 = vld [vmem:[#allocation3 + $0x38] sm:$0xff] }
 0x42f   : > { %v2325_v48 = vsel %vm1238_vm15, %v2316_v23, %v5528_v25  ;;  %v2380_v14 = vsel %vm2378_vm3, %v5457_v11, %v2371_v35  ;;  %v2567_v11 = vld [vmem:[#allocation3 + $0x140] sm:$0xff]  ;;  %v3682_v23 = vpack.c.bf16 %v2602_v54, %v2597_v46  ;;  %v2530_v61 = vld [vmem:[#allocation3 + $0x18] sm:$0xff] }
 0x430   : > { %v2563_v2 = vld [vmem:[#allocation3 + $0x120] sm:$0xff]  ;;  %2335 = vst [vmem:[#allocation3 + $0x128] sm:$0x3f] %v2325_v48  ;;  %2459 = vst [vmem:[#allocation3 + $0x2b0] sm:$0x3f] %v2325_v48  ;;  %v3670_v55 = vpack.c.bf16 %v2572_v12, %v2567_v11  ;;  %v2612_v36 = vld [vmem:[#allocation3 + $0x2a8] sm:$0xff] }
 0x431   : > { %2390 = vst [vmem:[#allocation3 + $0x170] sm:$0x3f] %v2380_v14  ;;  %2476 = vst [vmem:[#allocation3 + $0x2f8] sm:$0x3f] %v2380_v14  ;;  %v3664_v43 = vpack.c.bf16 %v2563_v2, %v2558_v41  ;;  %v2603_v1 = vld [vmem:[#allocation3 + $0x260] sm:$0xff]  ;;  %v3702_v14 = vpack.c.bf16 %v2534_v5, %v2529_v18  ;;  %v2544_v12 = vld [vmem:[#allocation3 + $0x88] sm:$0xff] }
 0x432   : > { %v5534_v3 = vpop.permute.xlu1 %2344 }
 0x433   : > { %3665 = vmatprep.subr.bf16.mxu0 %v3664_v43  ;;  %v2353_v24 = vsel %vm2350_vm2, %v2343_v40, %v5534_v3  ;;  %v2608_v27 = vld [vmem:[#allocation3 + $0x288] sm:$0xff] }
 0x434   : > { %3667 = vmatpush1.bf16.msra.mxu0 %v3666_v31  ;;  %2363 = vst [vmem:[#allocation3 + $0x150] sm:$0x3f] %v2353_v24  ;;  %2468 = vst [vmem:[#allocation3 + $0x2d8] sm:$0x3f] %v2353_v24  ;;  %v2568_v53 = vld [vmem:[#allocation3 + $0x148] sm:$0xff]  ;;  %v2617_v11 = vld [vmem:[#allocation3 + $0x2d0] sm:$0xff] }
 0x436   : > { %v5538_v49 = vpop.permute.xlu1 %2372 }
 0x437   : > { %v2381_v9 = vsel %vm2378_vm3, %v2371_v35, %v5538_v49  ;;  %v2613_v21 = vld [vmem:[#allocation3 + $0x2b0] sm:$0xff]  ;;  %v2607_v35 = vld [vmem:[#allocation3 + $0x280] sm:$0xff] }
 0x438   : > { %v2573_v51 = vld [vmem:[#allocation3 + $0x170] sm:$0xff]  ;;  %2391 = vst [vmem:[#allocation3 + $0x178] sm:$0x3f] %v2381_v9  ;;  %2477 = vst [vmem:[#allocation3 + $0x300] sm:$0x3f] %v2381_v9  ;;  %v3684_v7 = vpack.c.bf16 %v2613_v21, %v2608_v27  ;;  %v3686_v48 = vpack.c.bf16 %v2612_v36, %v2607_v35  ;;  %v2622_v43 = vld [vmem:[#allocation3 + $0x2f8] sm:$0xff] }
 0x439   : > { %v3668_v57 = vpack.c.bf16 %v2573_v51, %v2568_v53  ;;  %v3690_v9 = vpack.c.bf16 %v2622_v43, %v2617_v11  ;;  %v2628_v53 = vld [vmem:[#allocation3 + $0x328] sm:$0xff]  ;;  %v5607_v35 = vld [vmem:[%s5819_s3 + $0x10] sm:$0xff] }
 0x43b   : > { %3669 = vmatprep.subr.bf16.mxu0 %v3668_v57  ;;  %v2632_v57 = vld [vmem:[#allocation3 + $0x348] sm:$0xff] }
 0x43c   : > { %3671 = vmatpush1.bf16.msra.mxu0 %v3670_v55  ;;  %v3694_v28 = vpack.c.bf16 %v2632_v57, %v2627_v50 }
 0x43d   : > { %3673 = vmatprep.subr.bf16.mxu0 %v3672_v47 }
 0x43e   : > { %v5542_v45 = vpop.permute.xlu1 %2157  ;;  %v2156_v52 = vpop.permute.xlu0 %2155 }
 0x43f   : > { %v2162_v16 = vsel %vm5896_vm11, %v5488_v8, %v2156_v52  ;;  %v2163_v39 = vsel %vm5897_vm9, %v2156_v52, %v5542_v45  ;;  %v3680_v8 = vpack.c.bf16 %v2603_v1, %v2598_v56  ;;  %v2623_v34 = vld [vmem:[#allocation3 + $0x300] sm:$0xff]  ;;  %v2574_v57 = vld [vmem:[#allocation3 + $0x178] sm:$0xff] }
 0x440   : > { %3675 = vmatpush1.bf16.msra.mxu0 %v3674_v59  ;;  %2172 = vst [vmem:[#allocation3 + $0x40] sm:$0x3f] %v2162_v16  ;;  %2173 = vst [vmem:[#allocation3 + $0x48] sm:$0x3f] %v2163_v39  ;;  %v2539_v59 = vld [vmem:[#allocation3 + $0x60] sm:$0xff] }
 0x441   : > { %2406 = vst [vmem:[#allocation3 + $0x1c8] sm:$0x3f] %v2162_v16  ;;  %2407 = vst [vmem:[#allocation3 + $0x1d0] sm:$0x3f] %v2163_v39  ;;  %3677 = vmatprep.subr.bf16.mxu0 %v3676_v19  ;;  %v3706_v52 = vpack.c.bf16 %v2544_v12, %v2539_v59 }
 0x442   : > { %2492 = vst [vmem:[#allocation3 + $0x350] sm:$0x3f] %v2162_v16  ;;  %2493 = vst [vmem:[#allocation3 + $0x358] sm:$0x3f] %v2163_v39  ;;  %v5548_v32 = vpop.permute.xlu1 %2211  ;;  %v5550_v29 = vpop.permute.xlu0 %2182  ;;  %v2642_v39 = vld [vmem:[#allocation3 + $0x398] sm:$0xff] }
 0x443   : > { %v2189_v15 = vsel %vm5898_vm8, %v5495_v20, %v5550_v29  ;;  %vm3031_vm8 = vcmask 1045504  }
 0x444   : > { %3679 = vmatpush1.bf16.msra.mxu0 %v3678_v17  ;;  %2199 = vst [vmem:[#allocation3 + $0x68] sm:$0x3f] %v2189_v15  ;;  %2415 = vst [vmem:[#allocation3 + $0x1f0] sm:$0x3f] %v2189_v15  ;;  %v3698_v17 = vpack.c.bf16 %v2642_v39, %v2637_v13 }
 0x445   : > { %2501 = vst [vmem:[#allocation3 + $0x378] sm:$0x3f] %v2189_v15  ;;  %3681 = vmatprep.subr.bf16.mxu0 %v3680_v8  ;;  %v2554_v8 = vld [vmem:[#allocation3 + $0xd8] sm:$0xff] }
 0x446   : > { %v5555_v38 = vpop.permute.xlu1 %2267  ;;  %v2210_v33 = vpop.permute.xlu0 %2209 }
 0x447   : > { %v2217_v6 = vsel %vm2213_vm13, %v5501_v26, %v2210_v33  ;;  %v2218_v20 = vsel %vm2213_vm13, %v2210_v33, %v5548_v32  ;;  %v2535_v40 = vld [vmem:[#allocation3 + $0x40] sm:$0xff]  ;;  %v2618_v26 = vld [vmem:[#allocation3 + $0x2d8] sm:$0xff]  ;;  %v2549_v33 = vld [vmem:[#allocation3 + $0xb0] sm:$0xff] }
 0x448   : > { %3683 = vmatpush1.bf16.msra.mxu0 %v3682_v23  ;;  %2227 = vst [vmem:[#allocation3 + $0x90] sm:$0x3f] %v2217_v6  ;;  %2228 = vst [vmem:[#allocation3 + $0x98] sm:$0x3f] %v2218_v20  ;;  %v3700_v10 = vpack.c.bf16 %v2535_v40, %v2530_v61  ;;  %v3688_v2 = vpack.c.bf16 %v2623_v34, %v2618_v26  ;;  %v3710_v36 = vpack.c.bf16 %v2554_v8, %v2549_v33  ;;  %v5595_v61 = vld [vmem:[%s5819_s3 + $0x18] sm:$0xff] }
 0x449   : > { %2424 = vst [vmem:[#allocation3 + $0x218] sm:$0x3f] %v2217_v6  ;;  %2425 = vst [vmem:[#allocation3 + $0x220] sm:$0x3f] %v2218_v20  ;;  %3685 = vmatprep.subr.bf16.mxu0 %v3684_v7  ;;  %v2633_v31 = vld [vmem:[#allocation3 + $0x350] sm:$0xff]  ;;  %v2536_v7 = vld [vmem:[#allocation3 + $0x48] sm:$0xff] }
 0x44a   : > { %2510 = vst [vmem:[#allocation3 + $0x3a0] sm:$0x3f] %v2217_v6  ;;  %2511 = vst [vmem:[#allocation3 + $0x3a8] sm:$0x3f] %v2218_v20  ;;  %3701 = vmatprep.subr.bf16.mxu1 %v3700_v10  ;;  %v5561_v41 = vpop.permute.xlu0 %2237  ;;  %v5566_v24 = vpop.permute.xlu1 %2321  ;;  %v3692_v30 = vpack.c.bf16 %v2633_v31, %v2628_v53  ;;  %v2647_v6 = vld [vmem:[#allocation3 + $0x3c0] sm:$0xff]  ;;  %v4026_v10 = vmov 0.0|0.0  }
 0x44b   : > { %v2245_v44 = vsel %vm2241_vm4, %v5510_v4, %v5561_v41  ;;  %3703 = vmatpush1.bf16.msra.mxu1 %v3702_v14  ;;  %v2540_v60 = vld [vmem:[#allocation3 + $0x68] sm:$0xff]  ;;  %v2531_v20 = vld [vmem:[#allocation3 + $0x20] sm:$0xff] }
 0x44c   : > { %3687 = vmatpush1.bf16.msra.mxu0 %v3686_v48  ;;  %2255 = vst [vmem:[#allocation3 + $0xb8] sm:$0x3f] %v2245_v44  ;;  %2433 = vst [vmem:[#allocation3 + $0x240] sm:$0x3f] %v2245_v44  ;;  %v2638_v19 = vld [vmem:[#allocation3 + $0x378] sm:$0xff]  ;;  %v3749_v34 = vpack.c.bf16 %v2536_v7, %v2531_v20  ;;  %v2564_v48 = vld [vmem:[#allocation3 + $0x128] sm:$0xff] }
 0x44d   : > { %2519 = vst [vmem:[#allocation3 + $0x3c8] sm:$0x3f] %v2245_v44  ;;  %3689 = vmatprep.subr.bf16.mxu0 %v3688_v2  ;;  %v2559_v31 = vld [vmem:[#allocation3 + $0x100] sm:$0xff] }
 0x44e   : > { %v2266_v51 = vpop.permute.xlu0 %2265  ;;  %v5572_v42 = vpop.permute.xlu1 %2376  ;;  %v3714_v11 = vpack.c.bf16 %v2564_v48, %v2559_v31 }
 0x44f   : > { %v2272_v55 = vsel %vm274_vm0, %v5516_v62, %v2266_v51  ;;  %v2273_v4 = vsel %vm274_vm0, %v2266_v51, %v5555_v38  ;;  %v2545_v47 = vld [vmem:[#allocation3 + $0x90] sm:$0xff]  ;;  %v2546_v39 = vld [vmem:[#allocation3 + $0x98] sm:$0xff] }
 0x450   : > { %3691 = vmatpush1.bf16.msra.mxu0 %v3690_v9  ;;  %2282 = vst [vmem:[#allocation3 + $0xe0] sm:$0x3f] %v2272_v55  ;;  %2283 = vst [vmem:[#allocation3 + $0xe8] sm:$0x3f] %v2273_v4  ;;  %v3704_v58 = vpack.c.bf16 %v2545_v47, %v2540_v60  ;;  %v2569_v47 = vld [vmem:[#allocation3 + $0x150] sm:$0xff]  ;;  %v2595_v8 = vld [vmem:[#allocation3 + $0x220] sm:$0xff] }
 0x451   : > { %v2643_v63 = vld [vmem:[#allocation3 + $0x3a0] sm:$0xff]  ;;  %2442 = vst [vmem:[#allocation3 + $0x268] sm:$0x3f] %v2272_v55  ;;  %2443 = vst [vmem:[#allocation3 + $0x270] sm:$0x3f] %v2273_v4  ;;  %3693 = vmatprep.subr.bf16.mxu0 %v3692_v30  ;;  %v2585_v4 = vld [vmem:[#allocation3 + $0x1d0] sm:$0xff] }
 0x452   : > { %3705 = vmatprep.subr.bf16.mxu1 %v3704_v58  ;;  %v5574_v62 = vpop.permute.xlu0 %2292  ;;  %v3696_v16 = vpack.c.bf16 %v2643_v63, %v2638_v19  ;;  %v3718_v63 = vpack.c.bf16 %v2574_v57, %v2569_v47  ;;  %v2580_v58 = vld [vmem:[#allocation3 + $0x1a8] sm:$0xff] }
 0x453   : > { %v2299_v1 = vsel %vm1152_vm12, %v5522_v22, %v5574_v62  ;;  %3707 = vmatpush1.bf16.msra.mxu1 %v3706_v52  ;;  %v2550_v46 = vld [vmem:[#allocation3 + $0xb8] sm:$0xff]  ;;  %v5583_v22 = vpop.permute.xlu1 %2409  ;;  %v2599_v31 = vld [vmem:[#allocation3 + $0x240] sm:$0xff] }
 0x454   : > { %3695 = vmatpush1.bf16.msra.mxu0 %v3694_v28  ;;  %2309 = vst [vmem:[#allocation3 + $0x108] sm:$0x3f] %v2299_v1  ;;  %2451 = vst [vmem:[#allocation3 + $0x290] sm:$0x3f] %v2299_v1  ;;  %v2648_v21 = vld [vmem:[#allocation3 + $0x3c8] sm:$0xff]  ;;  %v3720_v28 = vpack.c.bf16 %v2585_v4, %v2580_v58 }
 0x455   : > { %3697 = vmatprep.subr.bf16.mxu0 %v3696_v16 }
 0x456   : > { %v2320_v56 = vpop.permute.xlu0 %2319 }
 0x457   : > { %v2326_v54 = vsel %vm1238_vm15, %v5528_v25, %v2320_v56  ;;  %v2327_v15 = vsel %vm1238_vm15, %v2320_v56, %v5566_v24  ;;  %v2555_v23 = vld [vmem:[#allocation3 + $0xe0] sm:$0xff] }
 0x458   : > { %3699 = vmatpush1.bf16.msra.mxu0 %v3698_v17  ;;  %2336 = vst [vmem:[#allocation3 + $0x130] sm:$0x3f] %v2326_v54  ;;  %2337 = vst [vmem:[#allocation3 + $0x138] sm:$0x3f] %v2327_v15  ;;  %v3708_v27 = vpack.c.bf16 %v2555_v23, %v2550_v46  ;;  %v5588_v25 = vld [vmem:[%s5819_s3] sm:$0xff] }
 0x459   : > { %2460 = vst [vmem:[#allocation3 + $0x2b8] sm:$0x3f] %v2326_v54  ;;  %2461 = vst [vmem:[#allocation3 + $0x2c0] sm:$0x3f] %v2327_v15  ;;  %2718 = vmatprep.subr.mxu0 %v2648_v21  ;;  %v2579_v17 = vld [vmem:[#allocation3 + $0x1a0] sm:$0xff]  ;;  %v2594_v21 = vld [vmem:[#allocation3 + $0x218] sm:$0xff] }
 0x45a   : > { %3709 = vmatprep.subr.bf16.mxu1 %v3708_v27  ;;  %v5590_v5 = vpop.permute.xlu0 %2346  ;;  %v2556_v27 = vld [vmem:[#allocation3 + $0xe8] sm:$0xff] }
 0x45b   : > { %v2354_v40 = vsel %vm2350_vm2, %v5534_v3, %v5590_v5  ;;  %3711 = vmatpush1.bf16.msra.mxu1 %v3710_v36  ;;  %v5609_v3 = vpop.permute.xlu1 %2427  ;;  %v2560_v2 = vld [vmem:[#allocation3 + $0x108] sm:$0xff]  ;;  %v2609_v4 = vld [vmem:[#allocation3 + $0x290] sm:$0xff] }
 0x45c   : > { %2719 = vmatpush1.msra.mxu0 %v2647_v6  ;;  %2364 = vst [vmem:[#allocation3 + $0x158] sm:$0x3f] %v2354_v40  ;;  %2469 = vst [vmem:[#allocation3 + $0x2e0] sm:$0x3f] %v2354_v40  ;;  %v2589_v6 = vld [vmem:[#allocation3 + $0x1f0] sm:$0xff] }
 0x45d   : > { %2735 = vmatmul.mubr.f32.vlgmr.msra.gmra.mrb[4].mxu0 %v5588_v25  ;;  %3748 = vmatprep.subr.bf16.mxu0 %v4026_v10  ;;  %v3726_v20 = vpack.c.bf16 %v2594_v21, %v2589_v6  ;;  %v2605_v40 = vld [vmem:[#allocation3 + $0x270] sm:$0xff] }
 0x45e   : > { %3750 = vmatpush1.bf16.msra.mxu0 %v3749_v34  ;;  %3344 = vmatprep.mubr.msk.f32.mxu0 %vm5899_vm14, %v5595_v61  ;;  %v2375_v18 = vpop.permute.xlu0 %2374  ;;  %v2629_v21 = vld [vmem:[#allocation3 + $0x330] sm:$0xff] }
 0x45f   : > { %3751 = vmatprep.subr.bf16.mxu0 %v4026_v10  ;;  %v2382_v14 = vsel %vm2378_vm3, %v5538_v49, %v2375_v18  ;;  %v2383_v26 = vsel %vm2378_vm3, %v2375_v18, %v5572_v42  ;;  %v2565_v43 = vld [vmem:[#allocation3 + $0x130] sm:$0xff]  ;;  %v2446_v51 = vpop.permute.xlu1 %2445  ;;  %v2604_v18 = vld [vmem:[#allocation3 + $0x268] sm:$0xff] }
 0x460   : > { %2392 = vst [vmem:[#allocation3 + $0x180] sm:$0x3f] %v2382_v14  ;;  %2393 = vst [vmem:[#allocation3 + $0x188] sm:$0x3f] %v2383_v26  ;;  %v3712_v44 = vpack.c.bf16 %v2565_v43, %v2560_v2  ;;  %v2566_v2 = vld [vmem:[#allocation3 + $0x138] sm:$0xff] }
 0x461   : > { %2478 = vst [vmem:[#allocation3 + $0x308] sm:$0x3f] %v2382_v14  ;;  %2479 = vst [vmem:[#allocation3 + $0x310] sm:$0x3f] %v2383_v26  ;;  %2741 = vmatmul.mubr.f32.gmra.mrb[6].mxu0 %v5607_v35 }
 0x462   : > { %3347 = vmatprep.mubr.msk.f32.mxu0 %vm5891_vm5, %v5415_v37  ;;  %3713 = vmatprep.subr.bf16.mxu1 %v3712_v44  ;;  %v2185_v9 = vpop.permute.xlu0 %2184 }
 0x463   : > { %v2190_v49 = vsel %vm5900_vm6, %v5550_v29, %v2185_v9  ;;  %v2411_v53 = vsel %vm5893_vm1, %v2185_v9, %v5583_v22  ;;  %3715 = vmatpush1.bf16.msra.mxu1 %v3714_v11  ;;  %v2570_v55 = vld [vmem:[#allocation3 + $0x158] sm:$0xff]  ;;  %v2464_v50 = vpop.permute.xlu1 %2463  ;;  %v3730_v11 = vpack.c.bf16 %v2604_v18, %v2599_v31  ;;  %v2615_v9 = vld [vmem:[#allocation3 + $0x2c0] sm:$0xff] }
 0x464   : > { %2200 = vst [vmem:[#allocation3 + $0x70] sm:$0x3f] %v2190_v49  ;;  %2416 = vst [vmem:[#allocation3 + $0x1f8] sm:$0x3f] %v2190_v49 }
 0x465   : > { %2417 = vst [vmem:[#allocation3 + $0x200] sm:$0x3f] %v2411_v53  ;;  %2502 = vst [vmem:[#allocation3 + $0x380] sm:$0x3f] %v2190_v49 }
 0x466   : > { %2503 = vst [vmem:[#allocation3 + $0x388] sm:$0x3f] %v2411_v53  ;;  %v2240_v30 = vpop.permute.xlu0 %2239 }
 0x467   : > { %v2246_v37 = vsel %vm2241_vm4, %v5561_v41, %v2240_v30  ;;  %v2429_v12 = vsel %vm2241_vm4, %v2240_v30, %v5609_v3  ;;  %v2575_v29 = vld [vmem:[#allocation3 + $0x180] sm:$0xff]  ;;  %v2584_v41 = vld [vmem:[#allocation3 + $0x1c8] sm:$0xff]  ;;  %v2488_v7 = vpop.permute.xlu1 %2487 }
 0x468   : > { %2256 = vst [vmem:[#allocation3 + $0xc0] sm:$0x3f] %v2246_v37  ;;  %2434 = vst [vmem:[#allocation3 + $0x248] sm:$0x3f] %v2246_v37  ;;  %v3716_v60 = vpack.c.bf16 %v2575_v29, %v2570_v55  ;;  %v3722_v56 = vpack.c.bf16 %v2584_v41, %v2579_v17  ;;  %v2625_v47 = vld [vmem:[#allocation3 + $0x310] sm:$0xff]  ;;  %v2634_v17 = vld [vmem:[#allocation3 + $0x358] sm:$0xff] }
 0x469   : > { %2435 = vst [vmem:[#allocation3 + $0x250] sm:$0x3f] %v2429_v12  ;;  %2520 = vst [vmem:[#allocation3 + $0x3d0] sm:$0x3f] %v2246_v37 }
 0x46a   : > { %2521 = vst [vmem:[#allocation3 + $0x3d8] sm:$0x3f] %v2429_v12  ;;  %3717 = vmatprep.subr.bf16.mxu1 %v3716_v60  ;;  %v2295_v59 = vpop.permute.xlu0 %2294  ;;  %v2576_v12 = vld [vmem:[#allocation3 + $0x188] sm:$0xff] }
 0x46b   : > { %v2300_v52 = vsel %vm1152_vm12, %v5574_v62, %v2295_v59  ;;  %v2447_v19 = vsel %vm1152_vm12, %v2295_v59, %v2446_v51  ;;  %3719 = vmatpush1.bf16.msra.mxu1 %v3718_v63  ;;  %v2541_v16 = vld [vmem:[#allocation3 + $0x70] sm:$0xff]  ;;  %v2590_v1 = vld [vmem:[#allocation3 + $0x1f8] sm:$0xff]  ;;  %v2506_v49 = vpop.permute.xlu1 %2505 }
 0x46c   : > { %2310 = vst [vmem:[#allocation3 + $0x110] sm:$0x3f] %v2300_v52  ;;  %2452 = vst [vmem:[#allocation3 + $0x298] sm:$0x3f] %v2300_v52  ;;  %3721 = vmatprep.subr.bf16.mxu1 %v3720_v28  ;;  %v3752_v13 = vpack.c.bf16 %v2546_v39, %v2541_v16  ;;  %v3724_v15 = vpack.c.bf16 %v2595_v8, %v2590_v1  ;;  %v2614_v51 = vld [vmem:[#allocation3 + $0x2b8] sm:$0xff]  ;;  %v2581_v59 = vld [vmem:[#allocation3 + $0x1b0] sm:$0xff] }
 0x46d   : > { %2453 = vst [vmem:[#allocation3 + $0x2a0] sm:$0x3f] %v2447_v19  ;;  %v3734_v60 = vpack.c.bf16 %v2614_v51, %v2609_v4  ;;  %v2619_v19 = vld [vmem:[#allocation3 + $0x2e0] sm:$0xff]  ;;  %v2630_v39 = vld [vmem:[#allocation3 + $0x338] sm:$0xff] }
 0x46e   : > { %3753 = vmatpush1.bf16.msra.mxu0 %v3752_v13  ;;  %v2349_v54 = vpop.permute.xlu0 %2348 }
 0x46f   : > { %v2355_v62 = vsel %vm2350_vm2, %v5590_v5, %v2349_v54  ;;  %v2465_v46 = vsel %vm2350_vm2, %v2349_v54, %v2464_v50  ;;  %3723 = vmatpush1.bf16.msra.mxu1 %v3722_v56  ;;  %3754 = vmatprep.subr.bf16.mxu0 %v4026_v10  ;;  %v2551_v23 = vld [vmem:[#allocation3 + $0xc0] sm:$0xff]  ;;  %v2600_v33 = vld [vmem:[#allocation3 + $0x248] sm:$0xff]  ;;  %vm5901_vm2 = vmmov %vm5897_vm9 }
 0x470   : > { %2365 = vst [vmem:[#allocation3 + $0x160] sm:$0x3f] %v2355_v62  ;;  %2470 = vst [vmem:[#allocation3 + $0x2e8] sm:$0x3f] %v2355_v62  ;;  %3725 = vmatprep.subr.bf16.mxu1 %v3724_v15  ;;  %v3755_v36 = vpack.c.bf16 %v2556_v27, %v2551_v23  ;;  %v3728_v5 = vpack.c.bf16 %v2605_v40, %v2600_v33  ;;  %v3742_v62 = vpack.c.bf16 %v2634_v17, %v2629_v21  ;;  %v2639_v33 = vld [vmem:[#allocation3 + $0x380] sm:$0xff]  ;;  %v609_v21 = vld [vmem:[#allocation4 + $0x80] sm:$0xff] }
 0x471   : > { %2471 = vst [vmem:[#allocation3 + $0x2f0] sm:$0x3f] %v2465_v46  ;;  %vm5902_vm10 = vmmov %vm5901_vm2  ;;  %v2640_v46 = vld [vmem:[#allocation3 + $0x388] sm:$0xff]  ;;  %v2650_v18 = vld [vmem:[#allocation3 + $0x3d8] sm:$0xff] }
 0x472   : > { %3756 = vmatpush1.bf16.msra.mxu0 %v3755_v36  ;;  %v2401_v34 = vpop.permute.xlu0 %2400  ;;  %vm5907_vm7 = vmmov %vm5901_vm2 }
 0x473   : > { %v2402_v48 = vsel %vm5901_vm2, %v5542_v45, %v2401_v34  ;;  %v2489_v14 = vsel %vm5902_vm10, %v2401_v34, %v2488_v7  ;;  %3727 = vmatpush1.bf16.msra.mxu1 %v3726_v20  ;;  %3757 = vmatprep.subr.bf16.mxu0 %v4026_v10  ;;  %v2561_v26 = vld [vmem:[#allocation3 + $0x110] sm:$0xff]  ;;  %v2610_v43 = vld [vmem:[#allocation3 + $0x298] sm:$0xff]  ;;  %v2644_v20 = vld [vmem:[#allocation3 + $0x3a8] sm:$0xff] }
 0x474   : > { %2408 = vst [vmem:[#allocation3 + $0x1d8] sm:$0x3f] %v2402_v48  ;;  %2494 = vst [vmem:[#allocation3 + $0x360] sm:$0x3f] %v2402_v48  ;;  %3729 = vmatprep.subr.bf16.mxu1 %v3728_v5  ;;  %v3758_v44 = vpack.c.bf16 %v2566_v2, %v2561_v26  ;;  %v3732_v45 = vpack.c.bf16 %v2615_v9, %v2610_v43  ;;  %v3746_v40 = vpack.c.bf16 %v2644_v20, %v2639_v33  ;;  %v2649_v2 = vld [vmem:[#allocation3 + $0x3d0] sm:$0xff]  ;;  %v2631_v9 = vld [vmem:[#allocation3 + $0x340] sm:$0xff] }
 0x475   : > { %2495 = vst [vmem:[#allocation3 + $0x368] sm:$0x3f] %v2489_v14  ;;  %v594_v33 = vld [vmem:[#allocation4 + $0x8] sm:$0xff]  ;;  %vm5908_vm11 = vmmov %vm5901_vm2 }
 0x476   : > { %3759 = vmatpush1.bf16.msra.mxu0 %v3758_v44  ;;  %v2419_v53 = vpop.permute.xlu0 %2418  ;;  %vm5909_vm9 = vmmov %vm5901_vm2 }
 0x477   : > { %v2420_v30 = vsel %vm2213_vm13, %v5548_v32, %v2419_v53  ;;  %v2507_v57 = vsel %vm2213_vm13, %v2419_v53, %v2506_v49  ;;  %3731 = vmatpush1.bf16.msra.mxu1 %v3730_v11  ;;  %3760 = vmatprep.subr.bf16.mxu0 %v4026_v10  ;;  %v2571_v37 = vld [vmem:[#allocation3 + $0x160] sm:$0xff]  ;;  %v2620_v55 = vld [vmem:[#allocation3 + $0x2e8] sm:$0xff]  ;;  %vm5904_vm13 = vmmov %vm5891_vm5 }
 0x478   : > { %2426 = vst [vmem:[#allocation3 + $0x228] sm:$0x3f] %v2420_v30  ;;  %2512 = vst [vmem:[#allocation3 + $0x3b0] sm:$0x3f] %v2420_v30  ;;  %3733 = vmatprep.subr.bf16.mxu1 %v3732_v45  ;;  %v3761_v29 = vpack.c.bf16 %v2576_v12, %v2571_v37  ;;  %v3736_v58 = vpack.c.bf16 %v2625_v47, %v2620_v55  ;;  %v2624_v32 = vld [vmem:[#allocation3 + $0x308] sm:$0xff]  ;;  %v2621_v44 = vld [vmem:[#allocation3 + $0x2f0] sm:$0xff]  ;;  %v2657_v55 = vpop.permute.xlu1 %2656 }
 0x479   : > { %2513 = vst [vmem:[#allocation3 + $0x3b8] sm:$0x3f] %v2507_v57  ;;  %v3738_v16 = vpack.c.bf16 %v2624_v32, %v2619_v19  ;;  %vm5910_vm14 = vmmov %vm5901_vm2 }
 0x47a   : > { %3762 = vmatpush1.bf16.msra.mxu0 %v3761_v29  ;;  %v2437_v63 = vpop.permute.xlu0 %2436 }
 0x47b   : > { %v2438_v50 = vsel %vm274_vm0, %v5555_v38, %v2437_v63  ;;  %3735 = vmatpush1.bf16.msra.mxu1 %v3734_v60  ;;  %3763 = vmatprep.subr.bf16.mxu0 %v4026_v10  ;;  %v2586_v28 = vld [vmem:[#allocation3 + $0x1d8] sm:$0xff]  ;;  %v2635_v41 = vld [vmem:[#allocation3 + $0x360] sm:$0xff] }
 0x47c   : > { %2444 = vst [vmem:[#allocation3 + $0x278] sm:$0x3f] %v2438_v50  ;;  %3737 = vmatprep.subr.bf16.mxu1 %v3736_v58  ;;  %v3764_v52 = vpack.c.bf16 %v2586_v28, %v2581_v59  ;;  %v3740_v13 = vpack.c.bf16 %v2635_v41, %v2630_v39  ;;  %v2591_v38 = vld [vmem:[#allocation3 + $0x200] sm:$0xff]  ;;  %v2636_v11 = vld [vmem:[#allocation3 + $0x368] sm:$0xff] }
 0x47e   : > { %3765 = vmatpush1.bf16.msra.mxu0 %v3764_v52  ;;  %v2455_v1 = vpop.permute.xlu0 %2454 }
 0x47f   : > { %v2456_v56 = vsel %vm1238_vm15, %v5566_v24, %v2455_v1  ;;  %3739 = vmatpush1.bf16.msra.mxu1 %v3738_v16  ;;  %3766 = vmatprep.subr.bf16.mxu0 %v4026_v10  ;;  %v2596_v8 = vld [vmem:[#allocation3 + $0x228] sm:$0xff]  ;;  %v2645_v54 = vld [vmem:[#allocation3 + $0x3b0] sm:$0xff]  ;;  %vm5903_vm15 = vmmov %vm5893_vm1 }
 0x480   : > { %2462 = vst [vmem:[#allocation3 + $0x2c8] sm:$0x3f] %v2456_v56  ;;  %3741 = vmatprep.subr.bf16.mxu1 %v3740_v13  ;;  %v3767_v15 = vpack.c.bf16 %v2596_v8, %v2591_v38  ;;  %v3744_v27 = vpack.c.bf16 %v2645_v54, %v2640_v46  ;;  %v2601_v24 = vld [vmem:[#allocation3 + $0x250] sm:$0xff]  ;;  %v2646_v53 = vld [vmem:[#allocation3 + $0x3b8] sm:$0xff]  ;;  %v593_v46 = vld [vmem:[#allocation4] sm:$0xff] }
 0x481   : > { %vm5911_vm1 = vmmov %vm5901_vm2 }
 0x482   : > { %3768 = vmatpush1.bf16.msra.mxu0 %v3767_v15  ;;  %v2473_v23 = vpop.permute.xlu0 %2472  ;;  %vm5913_vm10 = vmmov %vm5911_vm1 }
 0x483   : > { %v2474_v7 = vsel %vm2378_vm3, %v5572_v42, %v2473_v23  ;;  %3743 = vmatpush1.bf16.msra.mxu1 %v3742_v62  ;;  %3769 = vmatprep.subr.bf16.mxu0 %v4026_v10  ;;  %v2606_v36 = vld [vmem:[#allocation3 + $0x278] sm:$0xff]  ;;  %v2611_v42 = vld [vmem:[#allocation3 + $0x2a0] sm:$0xff]  ;;  %v610_v62 = vld [vmem:[#allocation4 + $0x88] sm:$0xff] }
 0x484   : > { %2480 = vst [vmem:[#allocation3 + $0x318] sm:$0x3f] %v2474_v7  ;;  %3745 = vmatprep.subr.bf16.mxu1 %v3744_v27  ;;  %v3770_v6 = vpack.c.bf16 %v2606_v36, %v2601_v24  ;;  %v3784_v27 = vpack.c.bf16 %v610_v62, %v609_v21  ;;  %v611_v7 = vld [vmem:[#allocation4 + $0x90] sm:$0xff]  ;;  %v612_v24 = vld [vmem:[#allocation4 + $0x98] sm:$0xff]  ;;  %v658_v62 = vld [vmem:[#allocation4 + $0x208] sm:$0xff] }
 0x485   : > { %v3788_v20 = vpack.c.bf16 %v612_v24, %v611_v7  ;;  %v607_v24 = vld [vmem:[#allocation4 + $0x70] sm:$0xff]  ;;  %vm5906_vm3 = vmmov %vm5901_vm2 }
 0x486   : > { %3771 = vmatpush1.bf16.msra.mxu0 %v3770_v6  ;;  %v2497_v34 = vpop.permute.xlu0 %2496  ;;  %v3786_v6 = vpack.c.bf16 %v594_v33, %v593_v46  ;;  %v624_v33 = vld [vmem:[#allocation4 + $0xf8] sm:$0xff]  ;;  %vm5912_vm2 = vmmov %vm5911_vm1 }
 0x487   : > { %v2498_v5 = vsel %vm5903_vm15, %v5583_v22, %v2497_v34  ;;  %3747 = vmatpush1.bf16.msra.mxu1 %v3746_v40  ;;  %3772 = vmatprep.subr.bf16.mxu0 %v4026_v10  ;;  %v2616_v48 = vld [vmem:[#allocation3 + $0x2c8] sm:$0xff]  ;;  %v595_v40 = vld [vmem:[#allocation4 + $0x10] sm:$0xff]  ;;  %v596_v34 = vld [vmem:[#allocation4 + $0x18] sm:$0xff] }
 0x488   : > { %2504 = vst [vmem:[#allocation3 + $0x390] sm:$0x3f] %v2498_v5  ;;  %2795 = vmatprep.subr.mxu1 %v2650_v18  ;;  %v3773_v14 = vpack.c.bf16 %v2616_v48, %v2611_v42  ;;  %v613_v5 = vld [vmem:[#allocation4 + $0xa0] sm:$0xff]  ;;  %v614_v48 = vld [vmem:[#allocation4 + $0xa8] sm:$0xff] }
 0x48a   : > { %3774 = vmatpush1.bf16.msra.mxu0 %v3773_v14  ;;  %v2515_v26 = vpop.permute.xlu0 %2514  ;;  %v3790_v14 = vpack.c.bf16 %v596_v34, %v595_v40  ;;  %v660_v34 = vld [vmem:[#allocation4 + $0x218] sm:$0xff] }
 0x48b   : > { %v2516_v43 = vsel %vm2241_vm4, %v5609_v3, %v2515_v26  ;;  %2796 = vmatpush1.msra.mxu1 %v2649_v2  ;;  %3775 = vmatprep.subr.bf16.mxu0 %v4026_v10  ;;  %v2626_v22 = vld [vmem:[#allocation3 + $0x318] sm:$0xff]  ;;  %v3779_v3 = vpack.c.bf16 %v2636_v11, %v2631_v9  ;;  %vm5905_vm4 = vmmov %vm5891_vm5  ;;  %v3792_v2 = vpack.c.bf16 %v614_v48, %v613_v5  ;;  %vm4027_vm5 = vmmov 1  }
 0x48c   : > { %2522 = vst [vmem:[#allocation3 + $0x3e0] sm:$0x3f] %v2516_v43  ;;  %2812 = vmatmul.mubr.f32.vlgmr.msra.gmra.mrb[4].mxu1 %v5588_v25  ;;  %v3776_v31 = vpack.c.bf16 %v2626_v22, %v2621_v44  ;;  %3785 = vmatprep.subr.bf16.mxu1 %v3784_v27  ;;  %v597_v43 = vld [vmem:[#allocation4 + $0x20] sm:$0xff]  ;;  %v598_v44 = vld [vmem:[#allocation4 + $0x28] sm:$0xff]  ;;  %v615_v22 = vld [vmem:[#allocation4 + $0xb0] sm:$0xff] }
 0x48d   : > { %3346 = vmatprep.mubr.msk.f32.mxu1 %vm5904_vm13, %v5595_v61  ;;  %3787 = vmatpush3.bf16.msra.mxu1 %v3786_v6  ;;  %v3794_v11 = vpack.c.bf16 %v598_v44, %v597_v43  ;;  %v623_v27 = vld [vmem:[#allocation4 + $0xf0] sm:$0xff]  ;;  %v661_v44 = vld [vmem:[#allocation4 + $0x220] sm:$0xff]  ;;  %vm3861_vm6 = vmpackc.low %vm3031_vm8, %vm4027_vm5 }
 0x48e   : > { %3777 = vmatpush1.bf16.msra.mxu0 %v3776_v31  ;;  %3789 = vmatprep.subr.bf16.mxu1 %v3788_v20  ;;  %v616_v31 = vld [vmem:[#allocation4 + $0xb8] sm:$0xff]  ;;  %v3812_v7 = vpack.c.bf16 %v624_v33, %v623_v27  ;;  %v659_v6 = vld [vmem:[#allocation4 + $0x210] sm:$0xff] }
 0x48f   : > { %3778 = vmatprep.subr.bf16.mxu0 %v4026_v10  ;;  %v2641_v49 = vld [vmem:[#allocation3 + $0x390] sm:$0xff]  ;;  %v3796_v9 = vpack.c.bf16 %v616_v31, %v615_v22  ;;  %v3852_v48 = vpack.c.bf16 %v660_v34, %v659_v6  ;;  %v645_v34 = vld [vmem:[#allocation4 + $0x1a0] sm:$0xff] }
 0x490   : > { %2818 = vmatmul.mubr.f32.gmra.mrb[6].mxu1 %v5607_v35  ;;  %v3782_v45 = vpack.c.bf16 %v2646_v53, %v2641_v49  ;;  %v600_v49 = vld [vmem:[#allocation4 + $0x38] sm:$0xff]  ;;  %v617_v53 = vld [vmem:[#allocation4 + $0xc0] sm:$0xff] }
 0x491   : > { %3791 = vmatpush3.bf16.msra.mxu1 %v3790_v14  ;;  %v641_v14 = vld [vmem:[#allocation4 + $0x180] sm:$0xff] }
 0x492   : > { %3780 = vmatpush1.bf16.msra.mxu0 %v3779_v3  ;;  %3793 = vmatprep.subr.bf16.mxu1 %v3792_v2  ;;  %v599_v3 = vld [vmem:[#allocation4 + $0x30] sm:$0xff]  ;;  %v642_v2 = vld [vmem:[#allocation4 + $0x188] sm:$0xff] }
 0x493   : > { %3781 = vmatprep.subr.bf16.mxu0 %v4026_v10  ;;  %v2651_v51 = vld [vmem:[#allocation3 + $0x3e0] sm:$0xff]  ;;  %v3816_v43 = vpack.c.bf16 %v642_v2, %v641_v14 }
 0x495   : > { %3795 = vmatpush3.bf16.msra.mxu1 %v3794_v11 }
 0x496   : > { %3783 = vmatpush1.bf16.msra.mxu0 %v3782_v45  ;;  %v618_v45 = vld [vmem:[#allocation4 + $0xc8] sm:$0xff]  ;;  %3797 = vmatprep.subr.bf16.mxu1 %v3796_v9 }
 0x497   : > { %2872 = vmatprep.subr.mxu0 %v4001_v0  ;;  %v662_v9 = vld [vmem:[#allocation4 + $0x228] sm:$0xff] }
 0x49a   : > { %2873 = vmatpush1.msra.mxu0 %v2651_v51  ;;  %v3798_v51 = vpack.c.bf16 %v600_v49, %v599_v3 }
 0x49b   : > { %2889 = vmatmul.mubr.f32.vlgmr.msra.gmra.mrb[8].mxu0 %v5588_v25  ;;  %v2662_v10 = vpop.permute.xlu0 %2661 }
 0x49c   : > { %3348 = vmatprep.mubr.msk.f32.mxu0 %vm5905_vm4, %v5595_v61  ;;  %3799 = vmatpush3.bf16.msra.mxu1 %v3798_v51  ;;  %v3856_v51 = vpack.c.bf16 %v662_v9, %v661_v44  ;;  %v629_v9 = vld [vmem:[#allocation4 + $0x120] sm:$0xff] }
 0x49f   : > { %2894 = vmatmul.mubr.f32.gmra.mrb[10].mxu0 %v5607_v35 }
 0x530   : > { %v2736_v30 = vpop.f32.mrb[4].mxu0 }
 0x531   : > { %v2738_v57 = vpop.f32.mrb[5].mxu0  ;;  %v5676_v63 = vadd.f32 %v2736_v30, %v2657_v55  ;;  %v3800_v30 = vpack.c.bf16 %v618_v45, %v617_v53 }
 0x532   : > { %v5668_v29 = vadd.f32 %v2738_v57, %v2657_v55  ;;  %v601_v57 = vld [vmem:[#allocation4 + $0x40] sm:$0xff] }
 0x533   : > { %v2899_v16 = vmax.f32 %v5676_v63, 0.0  ;;  %3801 = vmatprep.subr.bf16.mxu1 %v3800_v30 }
 0x534   : > { %v2742_v37 = vpop.f32.mrb[6].mxu0  ;;  %v2900_v61 = vmax.f32 %v5668_v29, 0.0 }
 0x535   : > { %v2744_v12 = vpop.f32.mrb[7].mxu0  ;;  %v5680_v58 = vadd.f32 %v2742_v37, %v2662_v10  ;;  %v602_v37 = vld [vmem:[#allocation4 + $0x48] sm:$0xff] }
 0x536   : > { %v5672_v47 = vadd.f32 %v2744_v12, %v2662_v10  ;;  %v619_v12 = vld [vmem:[#allocation4 + $0xd0] sm:$0xff] }
 0x537   : > { %v2904_v1 = vmax.f32 %v5680_v58, 0.0 }
 0x538   : > { %v2905_v41 = vmax.f32 %v5672_v47, 0.0 }
 0x55f   : > { %v2813_v4 = vpop.f32.mrb[4].mxu1 }
 0x560   : > { %v5670_v60 = vadd.f32 %v2813_v4, %v2657_v55  ;;  %v2815_v0 = vpop.f32.mrb[5].mxu1 }
 0x561   : > { %v5674_v25 = vadd.f32 %v2815_v0, %v2657_v55  ;;  %v603_v0 = vld [vmem:[#allocation4 + $0x50] sm:$0xff] }
 0x562   : > { %v2901_v35 = vmax.f32 %v5670_v60, 0.0 }
 0x563   : > { %v2819_v32 = vpop.f32.mrb[6].mxu1  ;;  %v2902_v59 = vmax.f32 %v5674_v25, 0.0 }
 0x564   : > { %v3917_v50 = vpack.i.bf16 %v2901_v35, %v2900_v61  ;;  %v5687_v28 = vadd.f32 %v2819_v32, %v2662_v10  ;;  %v2821_v52 = vpop.f32.mrb[7].mxu1  ;;  %v604_v32 = vld [vmem:[#allocation4 + $0x58] sm:$0xff] }
 0x565   : > { %v5690_v19 = vadd.f32 %v2821_v52, %v2662_v10  ;;  %v3922_v17 = vpack.i.bf16 %v2899_v16, %v2902_v59  ;;  %v622_v52 = vld [vmem:[#allocation4 + $0xe8] sm:$0xff] }
 0x566   : > { %v2906_v39 = vmax.f32 %v5687_v28, 0.0  ;;  %3918 = vrot.lane.b32.xlu1 %v3917_v50, %s4003_s20  ;;  %v621_v50 = vld [vmem:[#allocation4 + $0xe0] sm:$0xff] }
 0x567   : > { %v2907_v13 = vmax.f32 %v5690_v19, 0.0  ;;  %v643_v19 = vld [vmem:[#allocation4 + $0x190] sm:$0xff] }
 0x568   : > { %v3927_v56 = vpack.i.bf16 %v2906_v39, %v2905_v41 }
 0x569   : > { %v3932_v38 = vpack.i.bf16 %v2904_v1, %v2907_v13 }
 0x56a   : > { %3923 = vrot.lane.b32.xlu1 %v3922_v17, %s4003_s20  ;;  %3928 = vrot.lane.b32.xlu0 %v3927_v56, %s4003_s20  ;;  %v3806_v17 = vpack.c.bf16 %v604_v32, %v603_v0  ;;  %v3808_v56 = vpack.c.bf16 %v622_v52, %v621_v50  ;;  %v664_v32 = vld [vmem:[#allocation4 + $0x238] sm:$0x3f] }
 0x56e   : > { %v2890_v8 = vpop.f32.mrb[8].mxu0  ;;  %3933 = vrot.lane.b32.xlu1 %v3932_v38, %s4003_s20  ;;  %v605_v38 = vld [vmem:[#allocation4 + $0x60] sm:$0xff] }
 0x56f   : > { %v5712_v54 = vadd.f32 %v2890_v8, %v2657_v55  ;;  %v2892_v15 = vpop.f32.mrb[9].mxu0  ;;  %v620_v55 = vld [vmem:[#allocation4 + $0xd8] sm:$0xff]  ;;  %v606_v8 = vld [vmem:[#allocation4 + $0x68] sm:$0xff] }
 0x570   : > { %v3804_v4 = vpack.c.bf16 %v620_v55, %v619_v12  ;;  %v657_v15 = vld [vmem:[#allocation4 + $0x200] sm:$0xff]  ;;  %v3810_v21 = vpack.c.bf16 %v606_v8, %v605_v38 }
 0x571   : > { %v2903_v23 = vmax.f32 %v5712_v54, 0.0  ;;  %v3848_v46 = vpack.c.bf16 %v658_v62, %v657_v15 }
 0x572   : > { %v2895_v36 = vpop.f32.mrb[10].mxu0 }
 0x573   : > { %v5715_v18 = vadd.f32 %v2895_v36, %v2662_v10  ;;  %2927 = vrot.lane.b32.xlu0 %v2903_v23, %s4003_s20  ;;  %v2897_v42 = vpop.f32.mrb[11].mxu0  ;;  %v3802_v10 = vpack.c.bf16 %v602_v37, %v601_v57  ;;  %3849 = vmatprep.subr.bf16.mxu0 %v3848_v46  ;;  %v608_v36 = vld [vmem:[#allocation4 + $0x78] sm:$0xff]  ;;  %v663_v37 = vld [vmem:[#allocation4 + $0x230] sm:$0xff] }
 0x574   : > { %3851 = vmatpush3.bf16.msra.mxu0 %v3848_v46  ;;  %v3814_v40 = vpack.c.bf16 %v608_v36, %v607_v24 }
 0x575   : > { %v2908_v26 = vmax.f32 %v5715_v18, 0.0  ;;  %3803 = vmatpush3.bf16.msra.mxu1 %v3802_v10  ;;  %3853 = vmatprep.subr.bf16.mxu0 %v3852_v48 }
 0x576   : > { %3805 = vmatprep.subr.bf16.mxu1 %v3804_v4 }
 0x577   : > { %2937 = vrot.lane.b32.xlu1 %v2908_v26, %s4003_s20  ;;  %s3354_s20 = sshll.u32 %s5915_s22, 4 }
 0x578   : > { %3855 = vmatpush3.bf16.msra.mxu0 %v3852_v48  ;;  %s266_s29 = scalar_lea.vmem %s5822_s6, %s3354_s20 }
 0x579   : > { %3807 = vmatpush3.bf16.msra.mxu1 %v3806_v17  ;;  %3857 = vmatprep.subr.bf16.mxu0 %v3856_v51  ;;  %v3860_v17 = vpack.c.bf16 %v664_v32, %v663_v37  ;;  %v632_v32 = vld [vmem:[#allocation4 + $0x138] sm:$0xff] }
 0x57a   : > { %3809 = vmatprep.subr.bf16.mxu1 %v3808_v56 }
 0x57c   : > { %3859 = vmatpush3.bf16.msra.mxu0 %v3856_v51  ;;  %v648_v51 = vld [vmem:[#allocation4 + $0x1b8] sm:$0xff] }
 0x57d   : > { %3811 = vmatpush3.bf16.msra.mxu1 %v3810_v21  ;;  %3862 = vmatprep.subr.msk.bf16.mxu0 %vm3861_vm6, %v3860_v17  ;;  %v626_v21 = vld [vmem:[#allocation4 + $0x108] sm:$0xff] }
 0x57e   : > { %3813 = vmatprep.subr.bf16.mxu1 %v3812_v7 }
 0x580   : > { %3865 = vmatpush3.bf16.msk.msra.mxu0 %vm3861_vm6, %v3860_v17 }
 0x581   : > { %3815 = vmatpush3.bf16.msra.mxu1 %v3814_v40  ;;  %v628_v40 = vld [vmem:[#allocation4 + $0x118] sm:$0xff] }
 0x582   : > { %3817 = vmatprep.subr.bf16.mxu1 %v3816_v43 }
 0x5d8   : > { %v3919_v20 = vpop.permute.xlu1 %3918 }
 0x5d9   : > { %v3921_v5 = vunpack.i.h.bf16 %v3919_v20  ;;  %v3920_v42 = vunpack.i.l.bf16 %v3919_v20  ;;  %v627_v20 = vld [vmem:[#allocation4 + $0x110] sm:$0xff] }
 0x5db   : > { %v2940_v22 = vsel %vm5906_vm3, %v3920_v42, %v3921_v5 }
 0x5dc   : > { %v3924_v31 = vpop.permute.xlu1 %3923  ;;  %v3929_v11 = vpop.permute.xlu0 %3928  ;;  %v2958_v12 = vmax.f32 %v2900_v61, %v2940_v22  ;;  %v3822_v22 = vpack.c.bf16 %v628_v40, %v627_v20 }
 0x5dd   : > { %v3926_v3 = vunpack.i.h.bf16 %v3924_v31  ;;  %v3925_v49 = vunpack.i.l.bf16 %v3924_v31  ;;  %v3931_v53 = vunpack.i.h.bf16 %v3929_v11  ;;  %v3930_v45 = vunpack.i.l.bf16 %v3929_v11 }
 0x5df   : > { %v2939_v30 = vsel %vm5907_vm7, %v3926_v3, %v3920_v42  ;;  %v2941_v57 = vsel %vm5908_vm11, %v3921_v5, %v3925_v49  ;;  %v2944_v4 = vsel %vm5909_vm9, %v3930_v45, %v3931_v53  ;;  %v646_v5 = vld [vmem:[#allocation4 + $0x1a8] sm:$0xff] }
 0x5e0   : > { %v2957_v55 = vmax.f32 %v2899_v16, %v2939_v30  ;;  %v5733_v10 = vmax.f32 %v2901_v35, %v2941_v57  ;;  %v3934_v0 = vpop.permute.xlu1 %3933  ;;  %v2963_v60 = vmax.f32 %v2905_v41, %v2944_v4  ;;  %v3824_v11 = vpack.c.bf16 %v646_v5, %v645_v34  ;;  %v630_v3 = vld [vmem:[#allocation4 + $0x128] sm:$0xff] }
 0x5e1   : > { %v3936_v50 = vunpack.i.h.bf16 %v3934_v0  ;;  %v3935_v52 = vunpack.i.l.bf16 %v3934_v0  ;;  %v631_v0 = vld [vmem:[#allocation4 + $0x130] sm:$0xff] }
 0x5e2   : > { %2977 = vrot.lane.b32.xlu1 %v2957_v55, %s4011_s30  ;;  %v3937_v29 = vpack.i.bf16 %v5733_v10, %v2958_v12  ;;  %v3830_v17 = vpack.c.bf16 %v632_v32, %v631_v0 }
 0x5e3   : > { %v2945_v63 = vsel %vm5910_vm14, %v3931_v53, %v3935_v52  ;;  %v2943_v61 = vsel %vm5911_vm1, %v3936_v50, %v3930_v45  ;;  %v647_v45 = vld [vmem:[#allocation4 + $0x1b0] sm:$0xff]  ;;  %v649_v50 = vld [vmem:[#allocation4 + $0x1c0] sm:$0xff] }
 0x5e4   : > { %v5744_v35 = vmax.f32 %v2906_v39, %v2945_v63  ;;  %3938 = vrot.lane.b32.xlu0 %v3937_v29, %s4011_s30  ;;  %v2962_v47 = vmax.f32 %v2904_v1, %v2943_v61  ;;  %v3828_v4 = vpack.c.bf16 %v648_v51, %v647_v45  ;;  %v633_v63 = vld [vmem:[#allocation4 + $0x140] sm:$0xff]  ;;  %v651_v61 = vld [vmem:[#allocation4 + $0x1d0] sm:$0xff] }
 0x5e5   : > { %v2928_v16 = vpop.permute.xlu0 %2927 }
 0x5e6   : > { %v2942_v56 = vsel %vm5912_vm2, %v3925_v49, %v2928_v16  ;;  %v3942_v38 = vpack.i.bf16 %v5744_v35, %v2963_v60  ;;  %v2961_v39 = vmax.f32 %v2903_v23, %v2928_v16  ;;  %v625_v23 = vld [vmem:[#allocation4 + $0x100] sm:$0xff]  ;;  %v652_v16 = vld [vmem:[#allocation4 + $0x1d8] sm:$0xff] }
 0x5e7   : > { %v5751_v8 = vmax.f32 %v2902_v59, %v2942_v56  ;;  %v3818_v7 = vpack.c.bf16 %v626_v21, %v625_v23  ;;  %v655_v23 = vld [vmem:[#allocation4 + $0x1f0] sm:$0xff]  ;;  %v656_v21 = vld [vmem:[#allocation4 + $0x1f8] sm:$0xff] }
 0x5e8   : > { %3943 = vrot.lane.b32.xlu0 %v3942_v38, %s4011_s30  ;;  %v3836_v38 = vpack.c.bf16 %v652_v16, %v651_v61 }
 0x5e9   : > { %v3947_v28 = vpack.i.bf16 %v5751_v8, %v2962_v47  ;;  %v2938_v41 = vpop.permute.xlu1 %2937 }
 0x5ea   : > { %v2946_v15 = vsel %vm5913_vm10, %v3935_v52, %v2938_v41  ;;  %v2966_v58 = vmax.f32 %v2908_v26, %v2938_v41  ;;  %v650_v52 = vld [vmem:[#allocation4 + $0x1c8] sm:$0xff] }
 0x5eb   : > { %3948 = vrot.lane.b32.xlu1 %v3947_v28, %s4011_s30  ;;  %v5764_v25 = vmax.f32 %v2907_v13, %v2946_v15  ;;  %v644_v13 = vld [vmem:[#allocation4 + $0x198] sm:$0xff]  ;;  %v3832_v29 = vpack.c.bf16 %v650_v52, %v649_v50  ;;  %v653_v28 = vld [vmem:[#allocation4 + $0x1e0] sm:$0xff]  ;;  %v654_v41 = vld [vmem:[#allocation4 + $0x1e8] sm:$0xff] }
 0x5ec   : > { %2985 = vrot.lane.b32.xlu0 %v2961_v39, %s4011_s30  ;;  %v3820_v6 = vpack.c.bf16 %v644_v13, %v643_v19  ;;  %v3840_v15 = vpack.c.bf16 %v654_v41, %v653_v28  ;;  %v3844_v19 = vpack.c.bf16 %v656_v21, %v655_v23  ;;  %v639_v13 = vld [vmem:[#allocation4 + $0x170] sm:$0xff] }
 0x5ef   : > { %2993 = vrot.lane.b32.xlu1 %v5764_v25, %s4011_s30 }
 0x5f0   : > { %2995 = vrot.lane.b32.xlu0 %v2966_v58, %s4011_s30 }
 0x654   : > { %v2978_v62 = vpop.permute.xlu1 %2977 }
 0x656   : > { %v5771_v59 = vpop.permute.xlu0 %3938 }
 0x657   : > { %v3941_v1 = vunpack.i.h.bf16 %v5771_v59  ;;  %v3940_v54 = vunpack.i.l.bf16 %v5771_v59 }
 0x659   : > { %v2997_v46 = vsel %vm274_vm0, %v2978_v62, %v3940_v54  ;;  %v2998_v18 = vsel %vm274_vm0, %v3940_v54, %v3941_v1  ;;  %v638_v54 = vld [vmem:[#allocation4 + $0x168] sm:$0xff] }
 0x65a   : > { %v3015_v26 = vmax.f32 %v2957_v55, %v2997_v46  ;;  %v5779_v27 = vpop.permute.xlu0 %3943  ;;  %v3016_v33 = vmax.f32 %v2958_v12, %v2998_v18  ;;  %v3826_v12 = vpack.c.bf16 %v630_v3, %v629_v9  ;;  %v640_v46 = vld [vmem:[#allocation4 + $0x178] sm:$0xff] }
 0x65b   : > { %v3946_v24 = vunpack.i.h.bf16 %v5779_v27  ;;  %v3945_v36 = vunpack.i.l.bf16 %v5779_v27 }
 0x65c   : > { %3099 = vmatprep.mubr.f32.mxu1 %v3016_v33 }
 0x65d   : > { %3100 = vmatmul.mubr.f32.vlgmr.msra.gmra.mrb[8].mxu1 %v3015_v26  ;;  %v5783_v42 = vpop.permute.xlu1 %3948  ;;  %v3002_v48 = vsel %vm274_vm0, %v3945_v36, %v3946_v24  ;;  %v3846_v26 = vpack.c.bf16 %v640_v46, %v639_v13 }
 0x65e   : > { %3819 = vmatpush3.bf16.msra.mxu1 %v3818_v7  ;;  %v3951_v14 = vunpack.i.h.bf16 %v5783_v42  ;;  %v3950_v2 = vunpack.i.l.bf16 %v5783_v42  ;;  %v2986_v43 = vpop.permute.xlu0 %2985  ;;  %v3021_v44 = vmax.f32 %v2963_v60, %v3002_v48  ;;  %v634_v60 = vld [vmem:[#allocation4 + $0x148] sm:$0xff] }
 0x65f   : > { %v3019_v31 = vmax.f32 %v2961_v39, %v2986_v43  ;;  %3821 = vmatprep.subr.bf16.mxu1 %v3820_v6  ;;  %v3834_v56 = vpack.c.bf16 %v634_v60, %v633_v63 }
 0x660   : > { %v3000_v49 = vsel %vm274_vm0, %v3951_v14, %v2986_v43  ;;  %3104 = vmatprep.mubr.f32.mxu1 %v3021_v44  ;;  %v3001_v53 = vsel %vm274_vm0, %v3950_v2, %v3945_v36  ;;  %v2999_v33 = vsel %vm274_vm0, %v3941_v1, %v3951_v14 }
 0x661   : > { %v3018_v30 = vmax.f32 %v5751_v8, %v3000_v49  ;;  %3457 = vmatprep.mubr.msk.f32.mxu0 %vm1152_vm12, %v3019_v31  ;;  %v3020_v57 = vmax.f32 %v2962_v47, %v3001_v53  ;;  %v635_v8 = vld [vmem:[#allocation4 + $0x150] sm:$0xff]  ;;  %v636_v47 = vld [vmem:[#allocation4 + $0x158] sm:$0xff]  ;;  %v2994_v18 = vpop.permute.xlu1 %2993  ;;  %v3017_v36 = vmax.f32 %v5733_v10, %v2999_v33 }
 0x662   : > { %3823 = vmatpush3.bf16.msra.mxu1 %v3822_v22  ;;  %v2996_v37 = vpop.permute.xlu0 %2995  ;;  %v3838_v39 = vpack.c.bf16 %v636_v47, %v635_v8  ;;  %v3003_v6 = vsel %vm274_vm0, %v3946_v24, %v2994_v18 }
 0x663   : > { %v3024_v55 = vmax.f32 %v2966_v58, %v2996_v37  ;;  %3105 = vmatmul.mubr.f32.gmra.mrb[10].mxu1 %v3020_v57  ;;  %3825 = vmatprep.subr.bf16.mxu1 %v3824_v11  ;;  %v637_v58 = vld [vmem:[#allocation4 + $0x160] sm:$0xff]  ;;  %v3004_v7 = vsel %vm274_vm0, %v2994_v18, %v2996_v37  ;;  %v3022_v40 = vmax.f32 %v5744_v35, %v3003_v6 }
 0x664   : > { %3174 = vmatprep.mubr.f32.mxu1 %v3018_v30  ;;  %v3842_v62 = vpack.c.bf16 %v638_v54, %v637_v58  ;;  %v3023_v20 = vmax.f32 %v5764_v25, %v3004_v7 }
 0x665   : > { %3458 = vmatmul.mubr.msk.f32.vlgmr.msra.gmra.mrb[12].mxu0 %vm1152_vm12, %v3024_v55 }
 0x666   : > { %3827 = vmatpush3.bf16.msra.mxu1 %v3826_v12 }
 0x667   : > { %3829 = vmatprep.subr.bf16.mxu1 %v3828_v4 }
 0x66a   : > { %3831 = vmatpush3.bf16.msra.mxu1 %v3830_v17 }
 0x66b   : > { %3833 = vmatprep.subr.bf16.mxu1 %v3832_v29 }
 0x66e   : > { %3835 = vmatpush3.bf16.msra.mxu1 %v3834_v56 }
 0x66f   : > { %3837 = vmatprep.subr.bf16.mxu1 %v3836_v38 }
 0x672   : > { %3839 = vmatpush3.bf16.msra.mxu1 %v3838_v39 }
 0x673   : > { %3841 = vmatprep.subr.bf16.mxu1 %v3840_v15 }
 0x676   : > { %3843 = vmatpush3.bf16.msra.mxu1 %v3842_v62 }
 0x677   : > { %3845 = vmatprep.subr.bf16.mxu1 %v3844_v19 }
 0x67a   : > { %3847 = vmatpush3.bf16.msra.mxu1 %v3846_v26 }
 0x67d   : > { %3175 = vmatmul.mubr.f32.vlgmr.msra.gmra.mrb[12].mxu1 %v3017_v36 }
 0x67e   : > { %3179 = vmatprep.mubr.f32.mxu1 %v3023_v20 }
 0x681   : > { %3180 = vmatmul.mubr.f32.gmra.mrb[14].mxu1 %v3022_v40 }
 0x730   : > { %v3387_v59 = vpop.f32.mrb[8].mxu1 }
 0x731   : > { %v3388_v34 = vpop.f32.mrb[9].mxu1 }
 0x732   : > { %v3389_v1 = vadd.f32 %v3388_v34, %v3387_v59 }
 0x736   : > { %v3390_v5 = vpop.f32.mrb[10].mxu1 }
 0x737   : > { %v3391_v42 = vpop.f32.mrb[11].mxu1 }
 0x738   : > { %v3392_v48 = vadd.f32 %v3391_v42, %v3390_v5  ;;  %v3459_v14 = vpop.f32.mrb[12].mxu0 }
 0x739   : > { %v3251_v10 = vpop.f32.mrb[13].mxu0 }
 0x750   : > { %v3425_v2 = vpop.f32.mrb[12].mxu1 }
 0x751   : > { %v3426_v27 = vpop.f32.mrb[13].mxu1 }
 0x752   : > { %v3427_v24 = vadd.f32 %v3426_v27, %v3425_v2 }
 0x754   : > { %v3177_v43 = vadd.f32 %v3427_v24, %v3389_v1  ;;  %v3428_v44 = vpop.f32.mrb[14].mxu1 }
 0x755   : > { %v3429_v35 = vpop.f32.mrb[15].mxu1 }
 0x756   : > { %v3252_v25 = vadd.f32 %v3251_v10, %v3177_v43  ;;  %v3430_v22 = vadd.f32 %v3429_v35, %v3428_v44 }
 0x758   : > { %3260 = vst [vmem:[%s266_s29] sm:$0xff] %v3252_v25  ;;  %v3182_v31 = vadd.f32 %v3430_v22, %v3392_v48 }
 0x75a   : > { %v3257_v11 = vadd.f32 %v3459_v14, %v3182_v31 }
 0x75c   : > { %3261 = vst [vmem:[%s266_s29 + $0x8] sm:$0xff] %v3257_v11 }
 0x75d PF: > { %s17_s21 = sadd.s32 1, %s3996_s21  }
 0x75e   : > { %p14_p2 = scmp.ge.s32.totalorder %s17_s21, 4  }
 0x760   :  { %16 = sbr.rel (!%p14_p2) target bundleno = 1 (0x1), region = 79 }
 0x767   :  { %3283 = vsyncpa [#allocation5], 1 }
 0x768   :  { %3285 = vsyncpa [#allocation5 + $0x1], 1 }

</bundles_post_ra>
